<compile_context>
chip_gen: v7x
topology: tpu7x:2x2x1
jax: 0.10.0
libtpu: 0.0.40
codegen_flags: <defaults>
</compile_context>

<pallas_src>
import functools

import jax
import jax.numpy as jnp
from jax import lax
from jax.experimental import pallas as pl
from jax.experimental.pallas import tpu as pltpu


def _default_vmem_limit():
    # ~75% of physical VMEM (96 MiB on v5e/v6e's 128 MiB, 48 MiB on v7x's 64 MiB).
    try:
        cap = pltpu.get_tpu_info().vmem_capacity_bytes
        return int(min(cap * 3 // 4, 96 * 1024 * 1024))
    except Exception:
        return 48 * 1024 * 1024


_VMEM_LIMIT = _default_vmem_limit()


def _choose_row_tile(R, target=1024):
    """Pick (tile, padded_R, steps) for row-tiled elementwise/reduction kernels.

    Prefers a multiple-of-8 divisor <= target; pads R (callers pad with zero
    rows, which are harmless for stats and sliced off for elementwise) when no
    aligned divisor exists; splits small-but-splittable R in two so there are
    >= 2 grid steps (pipelining + megacore) whenever possible.
    """
    if R > target:
        for t in range(target, 7, -1):
            if t % 8 == 0 and R % t == 0:
                return t, R, R // t
        rp = pl.cdiv(R, target) * target
        return target, rp, rp // target
    if R >= 16 and R % 16 == 0:
        return R // 2, R, 2
    return R, R, 1


def _fold_channels(M, C):
    """Largest G <= 128//C dividing M: folds G positions into the lane dim so
    BN tiles are lane-dense even for tiny channel counts."""
    G = max(1, 128 // C)
    while G > 1 and M % G:
        G -= 1
    return G


# ----------------------------- Pallas kernels -----------------------------

def _bn_stats_kernel(x_ref, s1_ref, s2_ref):
    # Per-channel sum / sum-of-squares; the (1, GC) outputs stay resident across
    # the row-tiled "arbitrary" axis and act as accumulators.  bf16 in, f32 math.
    @pl.when(pl.program_id(0) == 0)
    def _():
        s1_ref[...] = jnp.zeros_like(s1_ref)
        s2_ref[...] = jnp.zeros_like(s2_ref)

    x = x_ref[...].astype(jnp.float32)
    s1_ref[...] += jnp.sum(x, axis=0, keepdims=True)
    s2_ref[...] += jnp.sum(x * x, axis=0, keepdims=True)


def _affine_relu_kernel(x_ref, scale_ref, shift_ref, o_ref):
    # Lane-dense normalize + ReLU; bf16 in/out, f32 math in-register.
    x = x_ref[...].astype(jnp.float32)
    y = x * scale_ref[...] + shift_ref[...]
    o_ref[...] = jnp.maximum(y, 0.0).astype(o_ref.dtype)


def _make_conv_kernel(K, stride, Ho, Wo, Cin, Cout,
                      has_shortcut, has_residual, want_stats, out_dtype):
    """KxK conv over one phase-packed image tile, taps gathered in VMEM and
    accumulated through K*K MXU matmuls (f32 accumulator).  Optionally fuses the
    1x1 shortcut conv (centre-tap input), the residual add, and the next
    BatchNorm's per-image sum/sumsq partials."""
    s = stride
    M = Ho * Wo

    def kernel(*refs):
        it = iter(refs)
        x_ref = next(it)                               # (1, s*s, NR, NC, Cin) bf16
        w_ref = next(it)                               # (K*K, Cin, Cout) bf16
        wsc_ref = next(it) if has_shortcut else None   # (Cin, Cout) bf16
        res_ref = next(it) if has_residual else None   # (1, Ho, Wo, Cout) bf16
        out_ref = next(it)                             # (1, Ho, Wo, Cout)
        sc_ref = next(it) if has_shortcut else None    # (1, Ho, Wo, Cout)
        s1_ref = next(it) if want_stats else None      # (1, 1, Cout) f32
        s2_ref = next(it) if want_stats else None      # (1, 1, Cout) f32

        acc = jnp.zeros((M, Cout), jnp.float32)
        center = None
        for ky in range(K):
            for kx in range(K):
                q = (ky % s) * s + (kx % s)
                dy, dx = ky // s, kx // s
                # Static, contiguous slice of the resident tile: the stride was
                # folded into the phase axis, so no strided/dynamic gathers.
                slab = x_ref[0, q, dy:dy + Ho, dx:dx + Wo, :].reshape(M, Cin)
                acc = acc + jnp.dot(slab, w_ref[ky * K + kx],
                                    preferred_element_type=jnp.float32)
                if ky == K // 2 and kx == K // 2:
                    center = slab
        if has_residual:
            acc = acc + res_ref[0].reshape(M, Cout).astype(jnp.float32)
        y = acc.astype(out_dtype)
        out_ref[...] = y.reshape(1, Ho, Wo, Cout)
        if has_shortcut:
            # 1x1 stride-s conv == matmul of the centre tap (already resident).
            sc = jnp.dot(center, wsc_ref[...], preferred_element_type=jnp.float32)
            sc_ref[...] = sc.astype(out_dtype).reshape(1, Ho, Wo, Cout)
        if want_stats:
            # Per-image partial stats of the stored activation (consistent with
            # what the next BatchNorm would read back); reduced over B in JAX.
            yf = y.astype(jnp.float32)
            s1_ref[...] = jnp.sum(yf, axis=0).reshape(1, 1, Cout)
            s2_ref[...] = jnp.sum(yf * yf, axis=0).reshape(1, 1, Cout)

    return kernel


# ------------------------------- wrappers ---------------------------------

def bn_stats(x):
    """Per-channel (sum, sumsq, count) over N,H,W.  x: (B,H,W,C), any float dtype.
    Only used for the very first bn1 of the NetworkBlock; later stats are fused
    into the preceding conv kernel."""
    B, H, W, C = x.shape
    M = B * H * W
    G = _fold_channels(M, C)
    GC, R = G * C, M // G
    xg = x.reshape(R, GC)
    TR, Rp, steps = _choose_row_tile(R)
    if Rp != R:
        xg = jnp.pad(xg, ((0, Rp - R), (0, 0)))       # zero rows: no effect on sums

    s1, s2 = pl.pallas_call(
        _bn_stats_kernel,
        out_shape=(jax.ShapeDtypeStruct((1, GC), jnp.float32),
                   jax.ShapeDtypeStruct((1, GC), jnp.float32)),
        grid=(steps,),
        in_specs=[pl.BlockSpec((TR, GC), lambda i: (i, 0))],
        out_specs=(pl.BlockSpec((1, GC), lambda i: (0, 0)),
                   pl.BlockSpec((1, GC), lambda i: (0, 0))),
        compiler_params=pltpu.CompilerParams(
            dimension_semantics=("arbitrary",),
            vmem_limit_bytes=_VMEM_LIMIT),
    )(xg)
    return s1.reshape(G, C).sum(axis=0), s2.reshape(G, C).sum(axis=0), M


def bn_affine_relu(x, scale, shift, out_dtype=jnp.bfloat16):
    """y = relu(x * scale + shift) per channel.  x: (B,H,W,C) bf16.  The channel
    dim is folded into 128-wide lanes (free reshape) so stores are lane-dense."""
    B, H, W, C = x.shape
    M = B * H * W
    G = _fold_channels(M, C)
    GC, R = G * C, M // G
    xg = x.reshape(R, GC)
    scale_g = jnp.tile(scale, (G,)).reshape(1, GC).astype(jnp.float32)
    shift_g = jnp.tile(shift, (G,)).reshape(1, GC).astype(jnp.float32)
    TR, Rp, steps = _choose_row_tile(R)
    if Rp != R:
        xg = jnp.pad(xg, ((0, Rp - R), (0, 0)))

    y = pl.pallas_call(
        _affine_relu_kernel,
        out_shape=jax.ShapeDtypeStruct((Rp, GC), out_dtype),
        grid=(steps,),
        in_specs=[pl.BlockSpec((TR, GC), lambda i: (i, 0)),
                  pl.BlockSpec((1, GC), lambda i: (0, 0)),
                  pl.BlockSpec((1, GC), lambda i: (0, 0))],
        out_specs=pl.BlockSpec((TR, GC), lambda i: (i, 0)),
        compiler_params=pltpu.CompilerParams(
            dimension_semantics=("parallel",),
            vmem_limit_bytes=_VMEM_LIMIT),
    )(xg, scale_g, shift_g)
    if Rp != R:
        y = y[:R]
    return y.reshape(B, H, W, C)


def _phase_pack(x, K, stride):
    """Pad + phase-decompose x (B,H,W,C) for a KxK conv with padding=(K-1)//2.

    Returns (B, stride*stride, NR, NC, C) with
      out[b, sy*stride+sx, r, c, :] = x_padded[b, r*stride+sy, c*stride+sx, :],
    so every conv tap becomes a contiguous static slice inside the kernel.
    Total size == padded input (1x, no K*K expansion); for stride==1 this is
    just a pad + expand_dims."""
    B, H, W, C = x.shape
    s = stride
    pad = (K - 1) // 2
    Ho = (H + 2 * pad - K) // s + 1
    Wo = (W + 2 * pad - K) // s + 1
    NR = Ho + (K - 1) // s
    NC = Wo + (K - 1) // s
    Hp, Wp = NR * s, NC * s
    ph, pw = Hp - H - pad, Wp - W - pad
    assert ph >= 0 and pw >= 0
    xp = jnp.pad(x, ((0, 0), (pad, ph), (pad, pw), (0, 0)))
    xp = xp.reshape(B, NR, s, NC, s, C).transpose(0, 2, 4, 1, 3, 5)
    return xp.reshape(B, s * s, NR, NC, C), Ho, Wo, NR, NC


def conv_block(a, w, stride, *, w_shortcut=None, residual=None, want_stats=False,
               out_dtype=jnp.bfloat16):
    """3x3 conv (padding=1, given stride) with optional fused 1x1-stride-s
    shortcut conv (same input), fused residual add, and fused per-channel
    sum/sumsq statistics of the (post-residual) output for the next BatchNorm.

    a: (B,H,W,Cin) bf16; w: (3,3,Cin,Cout); w_shortcut: (1,1,Cin,Cout) or None;
    residual: (B,Ho,Wo,Cout) or None.
    Returns (out, shortcut_out_or_None, (s1, s2, count)_or_None).
    """
    B, H, W, Cin = a.shape
    K = w.shape[0]
    Cout = w.shape[-1]
    s = stride
    xph, Ho, Wo, NR, NC = _phase_pack(a.astype(jnp.bfloat16), K, s)
    ss = s * s
    wt = w.reshape(K * K, Cin, Cout).astype(jnp.bfloat16)
    has_shortcut = w_shortcut is not None
    has_residual = residual is not None
    M = B * Ho * Wo

    inputs = [xph, wt]
    in_specs = [pl.BlockSpec((1, ss, NR, NC, Cin), lambda b: (b, 0, 0, 0, 0)),
                pl.BlockSpec((K * K, Cin, Cout), lambda b: (0, 0, 0))]
    if has_shortcut:
        inputs.append(w_shortcut.reshape(Cin, Cout).astype(jnp.bfloat16))
        in_specs.append(pl.BlockSpec((Cin, Cout), lambda b: (0, 0)))
    if has_residual:
        inputs.append(residual.astype(jnp.bfloat16))
        in_specs.append(pl.BlockSpec((1, Ho, Wo, Cout), lambda b: (b, 0, 0, 0)))

    out_shapes = [jax.ShapeDtypeStruct((B, Ho, Wo, Cout), out_dtype)]
    out_specs = [pl.BlockSpec((1, Ho, Wo, Cout), lambda b: (b, 0, 0, 0))]
    if has_shortcut:
        out_shapes.append(jax.ShapeDtypeStruct((B, Ho, Wo, Cout), out_dtype))
        out_specs.append(pl.BlockSpec((1, Ho, Wo, Cout), lambda b: (b, 0, 0, 0)))
    if want_stats:
        for _ in range(2):
            out_shapes.append(jax.ShapeDtypeStruct((B, 1, Cout), jnp.float32))
            out_specs.append(pl.BlockSpec((1, 1, Cout), lambda b: (b, 0, 0)))

    kernel = _make_conv_kernel(K, s, Ho, Wo, Cin, Cout,
                               has_shortcut, has_residual, want_stats, out_dtype)
    flops = 2 * M * K * K * Cin * Cout + (2 * M * Cin * Cout if has_shortcut else 0)
    bytes_acc = (xph.size * 2 + wt.size * 2
                 + M * Cout * 2 * (1 + int(has_shortcut) + int(has_residual))
                 + (2 * B * Cout * 4 if want_stats else 0))

    outs = pl.pallas_call(
        kernel,
        out_shape=tuple(out_shapes),
        grid=(B,),
        in_specs=in_specs,
        out_specs=tuple(out_specs),
        compiler_params=pltpu.CompilerParams(
            dimension_semantics=("parallel",),
            vmem_limit_bytes=_VMEM_LIMIT),
        cost_estimate=pl.CostEstimate(flops=flops, transcendentals=0,
                                      bytes_accessed=bytes_acc),
    )(*inputs)
    if not isinstance(outs, (list, tuple)):
        outs = (outs,)

    i = 0
    out = outs[i]; i += 1
    sc = None
    if has_shortcut:
        sc = outs[i]; i += 1
    stats = None
    if want_stats:
        s1, s2 = outs[i], outs[i + 1]
        stats = (jnp.sum(s1, axis=(0, 1)), jnp.sum(s2, axis=(0, 1)), M)
    return out, sc, stats


def _bn_scale_shift(gamma, beta, s1, s2, count, eps=1e-5):
    # Tiny O(C) finalize in plain JAX (training-mode batch stats, biased var).
    # TODO(synk): single-pass E[x^2]-E[x]^2 variance (clamped); a two-pass /
    # Welford form would be more robust for very large activation magnitudes.
    mean = s1 / count
    var = jnp.maximum(s2 / count - mean * mean, 0.0)
    inv = lax.rsqrt(var + eps)
    scale = gamma * inv
    shift = beta - mean * scale
    return scale, shift


# -------------------------- parameters / modules ---------------------------

def _conv_weight(key, k, cin, cout):
    # WideResNet custom init: normal(0, sqrt(2 / (k*k*out_planes))).
    fan = k * k * cout
    return jax.random.normal(key, (k, k, cin, cout), jnp.float32) * (2.0 / fan) ** 0.5


def init_basic_block(key, in_planes, out_planes, stride):
    ks = jax.random.split(key, 3)
    equal = in_planes == out_planes
    p = {
        # PyTorch BatchNorm2d default affine init (gamma=1, beta=0).
        "gamma1": jnp.ones((in_planes,), jnp.float32),
        "beta1": jnp.zeros((in_planes,), jnp.float32),
        "conv1_w": _conv_weight(ks[0], 3, in_planes, out_planes),
        "gamma2": jnp.ones((out_planes,), jnp.float32),
        "beta2": jnp.zeros((out_planes,), jnp.float32),
        "conv2_w": _conv_weight(ks[1], 3, out_planes, out_planes),
    }
    if not equal:
        p["shortcut_w"] = _conv_weight(ks[2], 1, in_planes, out_planes)
    return p, stride, equal


def basic_block_forward(x, in_stats, params, stride, equal_in_out, want_out_stats):
    # TODO(synk): training-mode BatchNorm only (batch statistics); eval-mode
    # running_mean/running_var are not tracked by this benchmark.
    if in_stats is None:
        in_stats = bn_stats(x)                       # only for the first block
    s1, s2, cnt = in_stats
    sc1, sh1 = _bn_scale_shift(params["gamma1"], params["beta1"], s1, s2, cnt)
    a1 = bn_affine_relu(x, sc1, sh1)                 # bf16 MXU operand

    # conv1 (+ fused 1x1 shortcut conv, + fused bn2 statistics).
    wsc = None if equal_in_out else params["shortcut_w"]
    h, sc_out, h_stats = conv_block(a1, params["conv1_w"], stride,
                                    w_shortcut=wsc, want_stats=True)
    shortcut = x if equal_in_out else sc_out

    hs1, hs2, hcnt = h_stats
    sc2, sh2 = _bn_scale_shift(params["gamma2"], params["beta2"], hs1, hs2, hcnt)
    a2 = bn_affine_relu(h, sc2, sh2)

    # conv2 + residual (+ fused bn1 statistics for the NEXT block's input).
    out, _, out_stats = conv_block(a2, params["conv2_w"], 1,
                                   residual=shortcut, want_stats=want_out_stats)
    return out, out_stats


def init_network_block(key, nb_layers, in_planes, out_planes, stride):
    keys = jax.random.split(key, nb_layers)
    layers = []
    for i in range(int(nb_layers)):
        ip = in_planes if i == 0 else out_planes
        st = stride if i == 0 else 1
        layers.append(init_basic_block(keys[i], ip, out_planes, st))
    return layers


def network_block_forward(x, layers):
    x = x.astype(jnp.bfloat16)                       # bf16 inter-kernel activations
    stats = None
    for idx, (params, stride, equal) in enumerate(layers):
        x, stats = basic_block_forward(x, stats, params, stride, equal,
                                       want_out_stats=(idx + 1 < len(layers)))
    return x.astype(jnp.float32)


# ---------------------------------- main -----------------------------------

if __name__ == "__main__":
    key = jax.random.PRNGKey(0)
    kx, kp = jax.random.split(key)

    # NetworkBlock(nb_layers=2, in_planes=4, out_planes=8, block=BasicBlock, stride=2)
    B, C, H, W = 2, 4, 16, 16
    x_nchw = jax.random.normal(kx, (B, C, H, W), jnp.float32)   # torch-style input
    x = jnp.transpose(x_nchw, (0, 2, 3, 1))                      # -> NHWC

    layers = init_network_block(kp, nb_layers=2, in_planes=4, out_planes=8, stride=2)

    fwd = jax.jit(functools.partial(network_block_forward, layers=layers))
    y = fwd(x)
    jax.block_until_ready(y)

    # torch output would be (2, 8, 8, 8) NCHW; ours is (2, 8, 8, 8) NHWC.
    assert y.shape == (B, H // 2, W // 2, 8), y.shape
    assert bool(jnp.all(jnp.isfinite(y)))
    # TODO(synk): the `block` class is not defined in the PyTorch snippet; the
    # standard WideResNet BasicBlock (dropRate=0) is assumed here.
    print("KERNEL_OK")
</pallas_src>

<mosaic_0001>
module attributes {stable_mosaic.version = 11 : i64} {
  func.func @_bn_stats_kernel(%arg0: i32, %arg1: memref<8x128xbf16, #tpu.memory_space<vmem>>, %arg2: memref<1x128xf32, #tpu.memory_space<vmem>>, %arg3: memref<1x128xf32, #tpu.memory_space<vmem>>) attributes {dimension_semantics = [#tpu.dimension_semantics<arbitrary>], iteration_bounds = array<i64: 2>, scalar_prefetch = 0 : i64, scratch_operands = 0 : i64, tpu.core_type = #tpu.core_type<tc>, window_params = [{transform_indices = @transform_0, window_bounds = array<i64: 8, 128>}, {pipeline_mode = #tpu.pipeline_mode<synchronous>, transform_indices = @transform_1, window_bounds = array<i64: 1, 128>}, {pipeline_mode = #tpu.pipeline_mode<synchronous>, transform_indices = @transform_2, window_bounds = array<i64: 1, 128>}]} {
    %c0_i32 = arith.constant 0 : i32
    %0 = arith.cmpi eq, %arg0, %c0_i32 : i32
    %1 = arith.extui %0 : i1 to i32
    %c0_i32_0 = arith.constant 0 : i32
    %2 = arith.cmpi ne, %1, %c0_i32_0 : i32
    scf.if %2 {
      %cst_11 = arith.constant 0.000000e+00 : f32
      %16 = vector.broadcast %cst_11 : f32 to vector<1x128xf32>
      %c0_12 = arith.constant 0 : index
      %c0_13 = arith.constant 0 : index
      %17 = vector.load %arg2[%c0_12, %c0_13] : memref<1x128xf32, #tpu.memory_space<vmem>>, vector<1x128xf32>
      tpu.vector_store %arg2[%c0_12, %c0_13], %16 {strides = array<i32>} : memref<1x128xf32, #tpu.memory_space<vmem>>, vector<1x128xf32>,
      %cst_14 = arith.constant 0.000000e+00 : f32
      %18 = vector.broadcast %cst_14 : f32 to vector<1x128xf32>
      %c0_15 = arith.constant 0 : index
      %c0_16 = arith.constant 0 : index
      %19 = vector.load %arg3[%c0_15, %c0_16] : memref<1x128xf32, #tpu.memory_space<vmem>>, vector<1x128xf32>
      tpu.vector_store %arg3[%c0_15, %c0_16], %18 {strides = array<i32>} : memref<1x128xf32, #tpu.memory_space<vmem>>, vector<1x128xf32>,
    } else {
    }
    %c0 = arith.constant 0 : index
    %c0_1 = arith.constant 0 : index
    %3 = vector.load %arg1[%c0, %c0_1] : memref<8x128xbf16, #tpu.memory_space<vmem>>, vector<8x128xbf16>
    %4 = arith.extf %3 : vector<8x128xbf16> to vector<8x128xf32>
    %c0_2 = arith.constant 0 : index
    %c0_3 = arith.constant 0 : index
    %5 = vector.load %arg2[%c0_2, %c0_3] : memref<1x128xf32, #tpu.memory_space<vmem>>, vector<1x128xf32>
    %cst = arith.constant dense<0.000000e+00> : vector<128xf32>
    %6 = vector.multi_reduction <add>, %4, %cst [0] : vector<8x128xf32> to vector<128xf32>
    %7 = vector.shape_cast %6 : vector<128xf32> to vector<1x128xf32>
    %8 = arith.addf %5, %7 : vector<1x128xf32>
    %c0_4 = arith.constant 0 : index
    %c0_5 = arith.constant 0 : index
    %9 = vector.load %arg2[%c0_4, %c0_5] : memref<1x128xf32, #tpu.memory_space<vmem>>, vector<1x128xf32>
    tpu.vector_store %arg2[%c0_4, %c0_5], %8 {strides = array<i32>} : memref<1x128xf32, #tpu.memory_space<vmem>>, vector<1x128xf32>,
    %c0_6 = arith.constant 0 : index
    %c0_7 = arith.constant 0 : index
    %10 = vector.load %arg3[%c0_6, %c0_7] : memref<1x128xf32, #tpu.memory_space<vmem>>, vector<1x128xf32>
    %11 = arith.mulf %4, %4 : vector<8x128xf32>
    %cst_8 = arith.constant dense<0.000000e+00> : vector<128xf32>
    %12 = vector.multi_reduction <add>, %11, %cst_8 [0] : vector<8x128xf32> to vector<128xf32>
    %13 = vector.shape_cast %12 : vector<128xf32> to vector<1x128xf32>
    %14 = arith.addf %10, %13 : vector<1x128xf32>
    %c0_9 = arith.constant 0 : index
    %c0_10 = arith.constant 0 : index
    %15 = vector.load %arg3[%c0_9, %c0_10] : memref<1x128xf32, #tpu.memory_space<vmem>>, vector<1x128xf32>
    tpu.vector_store %arg3[%c0_9, %c0_10], %14 {strides = array<i32>} : memref<1x128xf32, #tpu.memory_space<vmem>>, vector<1x128xf32>,
    return
  }
  func.func @transform_0(%arg0: i32) -> (i32, i32) {
    %c0_i32 = arith.constant 0 : i32
    %c0_i32_0 = arith.constant 0 : i32
    return %arg0, %c0_i32 : i32, i32
  }
  func.func @transform_1(%arg0: i32) -> (i32, i32) {
    %c0_i32 = arith.constant 0 : i32
    %c0_i32_0 = arith.constant 0 : i32
    %c0_i32_1 = arith.constant 0 : i32
    return %c0_i32, %c0_i32_0 : i32, i32
  }
  func.func @transform_2(%arg0: i32) -> (i32, i32) {
    %c0_i32 = arith.constant 0 : i32
    %c0_i32_0 = arith.constant 0 : i32
    %c0_i32_1 = arith.constant 0 : i32
    return %c0_i32, %c0_i32_0 : i32, i32
  }
}

module attributes {stable_mosaic.version = 11 : i64} {
  func.func @_affine_relu_kernel(%arg0: i32, %arg1: memref<8x128xbf16, #tpu.memory_space<vmem>>, %arg2: memref<1x128xf32, #tpu.memory_space<vmem>>, %arg3: memref<1x128xf32, #tpu.memory_space<vmem>>, %arg4: memref<8x128xbf16, #tpu.memory_space<vmem>>) attributes {dimension_semantics = [#tpu.dimension_semantics<parallel>], iteration_bounds = array<i64: 2>, scalar_prefetch = 0 : i64, scratch_operands = 0 : i64, tpu.core_type = #tpu.core_type<tc>, window_params = [{transform_indices = @transform_0, window_bounds = array<i64: 8, 128>}, {pipeline_mode = #tpu.pipeline_mode<synchronous>, transform_indices = @transform_1, window_bounds = array<i64: 1, 128>}, {pipeline_mode = #tpu.pipeline_mode<synchronous>, transform_indices = @transform_2, window_bounds = array<i64: 1, 128>}, {transform_indices = @transform_3, window_bounds = array<i64: 8, 128>}]} {
    %c0 = arith.constant 0 : index
    %c0_0 = arith.constant 0 : index
    %0 = vector.load %arg1[%c0, %c0_0] : memref<8x128xbf16, #tpu.memory_space<vmem>>, vector<8x128xbf16>
    %1 = arith.extf %0 : vector<8x128xbf16> to vector<8x128xf32>
    %c0_1 = arith.constant 0 : index
    %c0_2 = arith.constant 0 : index
    %2 = vector.load %arg2[%c0_1, %c0_2] : memref<1x128xf32, #tpu.memory_space<vmem>>, vector<1x128xf32>
    %3 = vector.broadcast %2 : vector<1x128xf32> to vector<8x128xf32>
    %4 = arith.mulf %1, %3 : vector<8x128xf32>
    %c0_3 = arith.constant 0 : index
    %c0_4 = arith.constant 0 : index
    %5 = vector.load %arg3[%c0_3, %c0_4] : memref<1x128xf32, #tpu.memory_space<vmem>>, vector<1x128xf32>
    %6 = vector.broadcast %5 : vector<1x128xf32> to vector<8x128xf32>
    %7 = arith.addf %4, %6 : vector<8x128xf32>
    %cst = arith.constant 0.000000e+00 : f32
    %8 = vector.broadcast %cst : f32 to vector<8x128xf32>
    %9 = arith.maximumf %7, %8 : vector<8x128xf32>
    %10 = arith.truncf %9 : vector<8x128xf32> to vector<8x128xbf16>
    %c0_5 = arith.constant 0 : index
    %c0_6 = arith.constant 0 : index
    %11 = vector.load %arg4[%c0_5, %c0_6] : memref<8x128xbf16, #tpu.memory_space<vmem>>, vector<8x128xbf16>
    tpu.vector_store %arg4[%c0_5, %c0_6], %10 {strides = array<i32>} : memref<8x128xbf16, #tpu.memory_space<vmem>>, vector<8x128xbf16>,
    return
  }
  func.func @transform_0(%arg0: i32) -> (i32, i32) {
    %c0_i32 = arith.constant 0 : i32
    %c0_i32_0 = arith.constant 0 : i32
    return %arg0, %c0_i32 : i32, i32
  }
  func.func @transform_1(%arg0: i32) -> (i32, i32) {
    %c0_i32 = arith.constant 0 : i32
    %c0_i32_0 = arith.constant 0 : i32
    %c0_i32_1 = arith.constant 0 : i32
    return %c0_i32, %c0_i32_0 : i32, i32
  }
  func.func @transform_2(%arg0: i32) -> (i32, i32) {
    %c0_i32 = arith.constant 0 : i32
    %c0_i32_0 = arith.constant 0 : i32
    %c0_i32_1 = arith.constant 0 : i32
    return %c0_i32, %c0_i32_0 : i32, i32
  }
  func.func @transform_3(%arg0: i32) -> (i32, i32) {
    %c0_i32 = arith.constant 0 : i32
    %c0_i32_0 = arith.constant 0 : i32
    return %arg0, %c0_i32 : i32, i32
  }
}

module attributes {stable_mosaic.version = 11 : i64} {
  func.func @kernel(%arg0: i32, %arg1: memref<1x4x9x9x4xbf16, #tpu.memory_space<vmem>>, %arg2: memref<9x4x8xbf16, #tpu.memory_space<vmem>>, %arg3: memref<4x8xbf16, #tpu.memory_space<vmem>>, %arg4: memref<1x8x8x8xbf16, #tpu.memory_space<vmem>>, %arg5: memref<1x8x8x8xbf16, #tpu.memory_space<vmem>>, %arg6: memref<1x1x8xf32, #tpu.memory_space<vmem>>, %arg7: memref<1x1x8xf32, #tpu.memory_space<vmem>>) attributes {dimension_semantics = [#tpu.dimension_semantics<parallel>], iteration_bounds = array<i64: 2>, scalar_prefetch = 0 : i64, scratch_operands = 0 : i64, tpu.core_type = #tpu.core_type<tc>, window_params = [{transform_indices = @transform_0, window_bounds = array<i64: 1, 4, 9, 9, 4>}, {pipeline_mode = #tpu.pipeline_mode<synchronous>, transform_indices = @transform_1, window_bounds = array<i64: 9, 4, 8>}, {pipeline_mode = #tpu.pipeline_mode<synchronous>, transform_indices = @transform_2, window_bounds = array<i64: 4, 8>}, {transform_indices = @transform_3, window_bounds = array<i64: 1, 8, 8, 8>}, {transform_indices = @transform_4, window_bounds = array<i64: 1, 8, 8, 8>}, {transform_indices = @transform_5, window_bounds = array<i64: 1, 1, 8>}, {transform_indices = @transform_6, window_bounds = array<i64: 1, 1, 8>}]} {
    %cst = arith.constant 0.000000e+00 : f32
    %0 = vector.broadcast %cst : f32 to vector<64x8xf32>
    %c0 = arith.constant 0 : index
    %c0_0 = arith.constant 0 : index
    %c0_1 = arith.constant 0 : index
    %c0_2 = arith.constant 0 : index
    %c0_3 = arith.constant 0 : index
    %1 = vector.load %arg1[%c0, %c0_0, %c0_1, %c0_2, %c0_3] : memref<1x4x9x9x4xbf16, #tpu.memory_space<vmem>>, vector<1x1x8x8x4xbf16>
    %2 = vector.shape_cast %1 : vector<1x1x8x8x4xbf16> to vector<8x8x4xbf16>
    %3 = vector.shape_cast %2 : vector<8x8x4xbf16> to vector<64x4xbf16>
    %c0_4 = arith.constant 0 : index
    %c0_5 = arith.constant 0 : index
    %c0_6 = arith.constant 0 : index
    %4 = vector.load %arg2[%c0_4, %c0_5, %c0_6] : memref<9x4x8xbf16, #tpu.memory_space<vmem>>, vector<1x4x8xbf16>
    %5 = vector.shape_cast %4 : vector<1x4x8xbf16> to vector<4x8xbf16>
    %cst_7 = arith.constant dense<0.000000e+00> : vector<64x8xf32>
    %6 = tpu.matmul %3, %5, %cst_7 {dimension_numbers = #tpu.dot_dimension_numbers<[1], [0], [0], [1], [0, 0, 1, 1], [], []>} : vector<64x4xbf16>, vector<4x8xbf16>, vector<64x8xf32> -> vector<64x8xf32>
    %7 = arith.addf %0, %6 : vector<64x8xf32>
    %c0_8 = arith.constant 0 : index
    %c1 = arith.constant 1 : index
    %c0_9 = arith.constant 0 : index
    %c0_10 = arith.constant 0 : index
    %c0_11 = arith.constant 0 : index
    %8 = vector.load %arg1[%c0_8, %c1, %c0_9, %c0_10, %c0_11] : memref<1x4x9x9x4xbf16, #tpu.memory_space<vmem>>, vector<1x1x8x8x4xbf16>
    %9 = vector.shape_cast %8 : vector<1x1x8x8x4xbf16> to vector<8x8x4xbf16>
    %10 = vector.shape_cast %9 : vector<8x8x4xbf16> to vector<64x4xbf16>
    %c1_12 = arith.constant 1 : index
    %c0_13 = arith.constant 0 : index
    %c0_14 = arith.constant 0 : index
    %11 = vector.load %arg2[%c1_12, %c0_13, %c0_14] : memref<9x4x8xbf16, #tpu.memory_space<vmem>>, vector<1x4x8xbf16>
    %12 = vector.shape_cast %11 : vector<1x4x8xbf16> to vector<4x8xbf16>
    %cst_15 = arith.constant dense<0.000000e+00> : vector<64x8xf32>
    %13 = tpu.matmul %10, %12, %cst_15 {dimension_numbers = #tpu.dot_dimension_numbers<[1], [0], [0], [1], [0, 0, 1, 1], [], []>} : vector<64x4xbf16>, vector<4x8xbf16>, vector<64x8xf32> -> vector<64x8xf32>
    %14 = arith.addf %7, %13 : vector<64x8xf32>
    %c0_16 = arith.constant 0 : index
    %c0_17 = arith.constant 0 : index
    %c0_18 = arith.constant 0 : index
    %c1_19 = arith.constant 1 : index
    %c0_20 = arith.constant 0 : index
    %15 = vector.load %arg1[%c0_16, %c0_17, %c0_18, %c1_19, %c0_20] : memref<1x4x9x9x4xbf16, #tpu.memory_space<vmem>>, vector<1x1x8x8x4xbf16>
    %16 = vector.shape_cast %15 : vector<1x1x8x8x4xbf16> to vector<8x8x4xbf16>
    %17 = vector.shape_cast %16 : vector<8x8x4xbf16> to vector<64x4xbf16>
    %c2 = arith.constant 2 : index
    %c0_21 = arith.constant 0 : index
    %c0_22 = arith.constant 0 : index
    %18 = vector.load %arg2[%c2, %c0_21, %c0_22] : memref<9x4x8xbf16, #tpu.memory_space<vmem>>, vector<1x4x8xbf16>
    %19 = vector.shape_cast %18 : vector<1x4x8xbf16> to vector<4x8xbf16>
    %cst_23 = arith.constant dense<0.000000e+00> : vector<64x8xf32>
    %20 = tpu.matmul %17, %19, %cst_23 {dimension_numbers = #tpu.dot_dimension_numbers<[1], [0], [0], [1], [0, 0, 1, 1], [], []>} : vector<64x4xbf16>, vector<4x8xbf16>, vector<64x8xf32> -> vector<64x8xf32>
    %21 = arith.addf %14, %20 : vector<64x8xf32>
    %c0_24 = arith.constant 0 : index
    %c2_25 = arith.constant 2 : index
    %c0_26 = arith.constant 0 : index
    %c0_27 = arith.constant 0 : index
    %c0_28 = arith.constant 0 : index
    %22 = vector.load %arg1[%c0_24, %c2_25, %c0_26, %c0_27, %c0_28] : memref<1x4x9x9x4xbf16, #tpu.memory_space<vmem>>, vector<1x1x8x8x4xbf16>
    %23 = vector.shape_cast %22 : vector<1x1x8x8x4xbf16> to vector<8x8x4xbf16>
    %24 = vector.shape_cast %23 : vector<8x8x4xbf16> to vector<64x4xbf16>
    %c3 = arith.constant 3 : index
    %c0_29 = arith.constant 0 : index
    %c0_30 = arith.constant 0 : index
    %25 = vector.load %arg2[%c3, %c0_29, %c0_30] : memref<9x4x8xbf16, #tpu.memory_space<vmem>>, vector<1x4x8xbf16>
    %26 = vector.shape_cast %25 : vector<1x4x8xbf16> to vector<4x8xbf16>
    %cst_31 = arith.constant dense<0.000000e+00> : vector<64x8xf32>
    %27 = tpu.matmul %24, %26, %cst_31 {dimension_numbers = #tpu.dot_dimension_numbers<[1], [0], [0], [1], [0, 0, 1, 1], [], []>} : vector<64x4xbf16>, vector<4x8xbf16>, vector<64x8xf32> -> vector<64x8xf32>
    %28 = arith.addf %21, %27 : vector<64x8xf32>
    %c0_32 = arith.constant 0 : index
    %c3_33 = arith.constant 3 : index
    %c0_34 = arith.constant 0 : index
    %c0_35 = arith.constant 0 : index
    %c0_36 = arith.constant 0 : index
    %29 = vector.load %arg1[%c0_32, %c3_33, %c0_34, %c0_35, %c0_36] : memref<1x4x9x9x4xbf16, #tpu.memory_space<vmem>>, vector<1x1x8x8x4xbf16>
    %30 = vector.shape_cast %29 : vector<1x1x8x8x4xbf16> to vector<8x8x4xbf16>
    %31 = vector.shape_cast %30 : vector<8x8x4xbf16> to vector<64x4xbf16>
    %c4 = arith.constant 4 : index
    %c0_37 = arith.constant 0 : index
    %c0_38 = arith.constant 0 : index
    %32 = vector.load %arg2[%c4, %c0_37, %c0_38] : memref<9x4x8xbf16, #tpu.memory_space<vmem>>, vector<1x4x8xbf16>
    %33 = vector.shape_cast %32 : vector<1x4x8xbf16> to vector<4x8xbf16>
    %cst_39 = arith.constant dense<0.000000e+00> : vector<64x8xf32>
    %34 = tpu.matmul %31, %33, %cst_39 {dimension_numbers = #tpu.dot_dimension_numbers<[1], [0], [0], [1], [0, 0, 1, 1], [], []>} : vector<64x4xbf16>, vector<4x8xbf16>, vector<64x8xf32> -> vector<64x8xf32>
    %35 = arith.addf %28, %34 : vector<64x8xf32>
    %c0_40 = arith.constant 0 : index
    %c2_41 = arith.constant 2 : index
    %c0_42 = arith.constant 0 : index
    %c1_43 = arith.constant 1 : index
    %c0_44 = arith.constant 0 : index
    %36 = vector.load %arg1[%c0_40, %c2_41, %c0_42, %c1_43, %c0_44] : memref<1x4x9x9x4xbf16, #tpu.memory_space<vmem>>, vector<1x1x8x8x4xbf16>
    %37 = vector.shape_cast %36 : vector<1x1x8x8x4xbf16> to vector<8x8x4xbf16>
    %38 = vector.shape_cast %37 : vector<8x8x4xbf16> to vector<64x4xbf16>
    %c5 = arith.constant 5 : index
    %c0_45 = arith.constant 0 : index
    %c0_46 = arith.constant 0 : index
    %39 = vector.load %arg2[%c5, %c0_45, %c0_46] : memref<9x4x8xbf16, #tpu.memory_space<vmem>>, vector<1x4x8xbf16>
    %40 = vector.shape_cast %39 : vector<1x4x8xbf16> to vector<4x8xbf16>
    %cst_47 = arith.constant dense<0.000000e+00> : vector<64x8xf32>
    %41 = tpu.matmul %38, %40, %cst_47 {dimension_numbers = #tpu.dot_dimension_numbers<[1], [0], [0], [1], [0, 0, 1, 1], [], []>} : vector<64x4xbf16>, vector<4x8xbf16>, vector<64x8xf32> -> vector<64x8xf32>
    %42 = arith.addf %35, %41 : vector<64x8xf32>
    %c0_48 = arith.constant 0 : index
    %c0_49 = arith.constant 0 : index
    %c1_50 = arith.constant 1 : index
    %c0_51 = arith.constant 0 : index
    %c0_52 = arith.constant 0 : index
    %43 = vector.load %arg1[%c0_48, %c0_49, %c1_50, %c0_51, %c0_52] : memref<1x4x9x9x4xbf16, #tpu.memory_space<vmem>>, vector<1x1x8x8x4xbf16>
    %44 = vector.shape_cast %43 : vector<1x1x8x8x4xbf16> to vector<8x8x4xbf16>
    %45 = vector.shape_cast %44 : vector<8x8x4xbf16> to vector<64x4xbf16>
    %c6 = arith.constant 6 : index
    %c0_53 = arith.constant 0 : index
    %c0_54 = arith.constant 0 : index
    %46 = vector.load %arg2[%c6, %c0_53, %c0_54] : memref<9x4x8xbf16, #tpu.memory_space<vmem>>, vector<1x4x8xbf16>
    %47 = vector.shape_cast %46 : vector<1x4x8xbf16> to vector<4x8xbf16>
    %cst_55 = arith.constant dense<0.000000e+00> : vector<64x8xf32>
    %48 = tpu.matmul %45, %47, %cst_55 {dimension_numbers = #tpu.dot_dimension_numbers<[1], [0], [0], [1], [0, 0, 1, 1], [], []>} : vector<64x4xbf16>, vector<4x8xbf16>, vector<64x8xf32> -> vector<64x8xf32>
    %49 = arith.addf %42, %48 : vector<64x8xf32>
    %c0_56 = arith.constant 0 : index
    %c1_57 = arith.constant 1 : index
    %c1_58 = arith.constant 1 : index
    %c0_59 = arith.constant 0 : index
    %c0_60 = arith.constant 0 : index
    %50 = vector.load %arg1[%c0_56, %c1_57, %c1_58, %c0_59, %c0_60] : memref<1x4x9x9x4xbf16, #tpu.memory_space<vmem>>, vector<1x1x8x8x4xbf16>
    %51 = vector.shape_cast %50 : vector<1x1x8x8x4xbf16> to vector<8x8x4xbf16>
    %52 = vector.shape_cast %51 : vector<8x8x4xbf16> to vector<64x4xbf16>
    %c7 = arith.constant 7 : index
    %c0_61 = arith.constant 0 : index
    %c0_62 = arith.constant 0 : index
    %53 = vector.load %arg2[%c7, %c0_61, %c0_62] : memref<9x4x8xbf16, #tpu.memory_space<vmem>>, vector<1x4x8xbf16>
    %54 = vector.shape_cast %53 : vector<1x4x8xbf16> to vector<4x8xbf16>
    %cst_63 = arith.constant dense<0.000000e+00> : vector<64x8xf32>
    %55 = tpu.matmul %52, %54, %cst_63 {dimension_numbers = #tpu.dot_dimension_numbers<[1], [0], [0], [1], [0, 0, 1, 1], [], []>} : vector<64x4xbf16>, vector<4x8xbf16>, vector<64x8xf32> -> vector<64x8xf32>
    %56 = arith.addf %49, %55 : vector<64x8xf32>
    %c0_64 = arith.constant 0 : index
    %c0_65 = arith.constant 0 : index
    %c1_66 = arith.constant 1 : index
    %c1_67 = arith.constant 1 : index
    %c0_68 = arith.constant 0 : index
    %57 = vector.load %arg1[%c0_64, %c0_65, %c1_66, %c1_67, %c0_68] : memref<1x4x9x9x4xbf16, #tpu.memory_space<vmem>>, vector<1x1x8x8x4xbf16>
    %58 = vector.shape_cast %57 : vector<1x1x8x8x4xbf16> to vector<8x8x4xbf16>
    %59 = vector.shape_cast %58 : vector<8x8x4xbf16> to vector<64x4xbf16>
    %c8 = arith.constant 8 : index
    %c0_69 = arith.constant 0 : index
    %c0_70 = arith.constant 0 : index
    %60 = vector.load %arg2[%c8, %c0_69, %c0_70] : memref<9x4x8xbf16, #tpu.memory_space<vmem>>, vector<1x4x8xbf16>
    %61 = vector.shape_cast %60 : vector<1x4x8xbf16> to vector<4x8xbf16>
    %cst_71 = arith.constant dense<0.000000e+00> : vector<64x8xf32>
    %62 = tpu.matmul %59, %61, %cst_71 {dimension_numbers = #tpu.dot_dimension_numbers<[1], [0], [0], [1], [0, 0, 1, 1], [], []>} : vector<64x4xbf16>, vector<4x8xbf16>, vector<64x8xf32> -> vector<64x8xf32>
    %63 = arith.addf %56, %62 : vector<64x8xf32>
    %64 = arith.truncf %63 : vector<64x8xf32> to vector<64x8xbf16>
    %65 = vector.shape_cast %64 : vector<64x8xbf16> to vector<1x8x8x8xbf16>
    %c0_72 = arith.constant 0 : index
    %c0_73 = arith.constant 0 : index
    %c0_74 = arith.constant 0 : index
    %c0_75 = arith.constant 0 : index
    %66 = vector.load %arg4[%c0_72, %c0_73, %c0_74, %c0_75] : memref<1x8x8x8xbf16, #tpu.memory_space<vmem>>, vector<1x8x8x8xbf16>
    tpu.vector_store %arg4[%c0_72, %c0_73, %c0_74, %c0_75], %65 {strides = array<i32>} : memref<1x8x8x8xbf16, #tpu.memory_space<vmem>>, vector<1x8x8x8xbf16>,
    %c0_76 = arith.constant 0 : index
    %c0_77 = arith.constant 0 : index
    %67 = vector.load %arg3[%c0_76, %c0_77] : memref<4x8xbf16, #tpu.memory_space<vmem>>, vector<4x8xbf16>
    %cst_78 = arith.constant dense<0.000000e+00> : vector<64x8xf32>
    %68 = tpu.matmul %31, %67, %cst_78 {dimension_numbers = #tpu.dot_dimension_numbers<[1], [0], [0], [1], [0, 0, 1, 1], [], []>} : vector<64x4xbf16>, vector<4x8xbf16>, vector<64x8xf32> -> vector<64x8xf32>
    %69 = arith.truncf %68 : vector<64x8xf32> to vector<64x8xbf16>
    %70 = vector.shape_cast %69 : vector<64x8xbf16> to vector<1x8x8x8xbf16>
    %c0_79 = arith.constant 0 : index
    %c0_80 = arith.constant 0 : index
    %c0_81 = arith.constant 0 : index
    %c0_82 = arith.constant 0 : index
    %71 = vector.load %arg5[%c0_79, %c0_80, %c0_81, %c0_82] : memref<1x8x8x8xbf16, #tpu.memory_space<vmem>>, vector<1x8x8x8xbf16>
    tpu.vector_store %arg5[%c0_79, %c0_80, %c0_81, %c0_82], %70 {strides = array<i32>} : memref<1x8x8x8xbf16, #tpu.memory_space<vmem>>, vector<1x8x8x8xbf16>,
    %72 = arith.extf %64 : vector<64x8xbf16> to vector<64x8xf32>
    %cst_83 = arith.constant dense<0.000000e+00> : vector<8xf32>
    %73 = vector.multi_reduction <add>, %72, %cst_83 [0] : vector<64x8xf32> to vector<8xf32>
    %74 = vector.shape_cast %73 : vector<8xf32> to vector<1x1x8xf32>
    %c0_84 = arith.constant 0 : index
    %c0_85 = arith.constant 0 : index
    %c0_86 = arith.constant 0 : index
    %75 = vector.load %arg6[%c0_84, %c0_85, %c0_86] : memref<1x1x8xf32, #tpu.memory_space<vmem>>, vector<1x1x8xf32>
    tpu.vector_store %arg6[%c0_84, %c0_85, %c0_86], %74 {strides = array<i32>} : memref<1x1x8xf32, #tpu.memory_space<vmem>>, vector<1x1x8xf32>,
    %76 = arith.mulf %72, %72 : vector<64x8xf32>
    %cst_87 = arith.constant dense<0.000000e+00> : vector<8xf32>
    %77 = vector.multi_reduction <add>, %76, %cst_87 [0] : vector<64x8xf32> to vector<8xf32>
    %78 = vector.shape_cast %77 : vector<8xf32> to vector<1x1x8xf32>
    %c0_88 = arith.constant 0 : index
    %c0_89 = arith.constant 0 : index
    %c0_90 = arith.constant 0 : index
    %79 = vector.load %arg7[%c0_88, %c0_89, %c0_90] : memref<1x1x8xf32, #tpu.memory_space<vmem>>, vector<1x1x8xf32>
    tpu.vector_store %arg7[%c0_88, %c0_89, %c0_90], %78 {strides = array<i32>} : memref<1x1x8xf32, #tpu.memory_space<vmem>>, vector<1x1x8xf32>,
    return
  }
  func.func @transform_0(%arg0: i32) -> (i32, i32, i32, i32, i32) {
    %c0_i32 = arith.constant 0 : i32
    %c0_i32_0 = arith.constant 0 : i32
    %c0_i32_1 = arith.constant 0 : i32
    %c0_i32_2 = arith.constant 0 : i32
    %c0_i32_3 = arith.constant 0 : i32
    return %arg0, %c0_i32, %c0_i32_0, %c0_i32_1, %c0_i32_2 : i32, i32, i32, i32, i32
  }
  func.func @transform_1(%arg0: i32) -> (i32, i32, i32) {
    %c0_i32 = arith.constant 0 : i32
    %c0_i32_0 = arith.constant 0 : i32
    %c0_i32_1 = arith.constant 0 : i32
    %c0_i32_2 = arith.constant 0 : i32
    return %c0_i32, %c0_i32_0, %c0_i32_1 : i32, i32, i32
  }
  func.func @transform_2(%arg0: i32) -> (i32, i32) {
    %c0_i32 = arith.constant 0 : i32
    %c0_i32_0 = arith.constant 0 : i32
    %c0_i32_1 = arith.constant 0 : i32
    return %c0_i32, %c0_i32_0 : i32, i32
  }
  func.func @transform_3(%arg0: i32) -> (i32, i32, i32, i32) {
    %c0_i32 = arith.constant 0 : i32
    %c0_i32_0 = arith.constant 0 : i32
    %c0_i32_1 = arith.constant 0 : i32
    %c0_i32_2 = arith.constant 0 : i32
    return %arg0, %c0_i32, %c0_i32_0, %c0_i32_1 : i32, i32, i32, i32
  }
  func.func @transform_4(%arg0: i32) -> (i32, i32, i32, i32) {
    %c0_i32 = arith.constant 0 : i32
    %c0_i32_0 = arith.constant 0 : i32
    %c0_i32_1 = arith.constant 0 : i32
    %c0_i32_2 = arith.constant 0 : i32
    return %arg0, %c0_i32, %c0_i32_0, %c0_i32_1 : i32, i32, i32, i32
  }
  func.func @transform_5(%arg0: i32) -> (i32, i32, i32) {
    %c0_i32 = arith.constant 0 : i32
    %c0_i32_0 = arith.constant 0 : i32
    %c0_i32_1 = arith.constant 0 : i32
    return %arg0, %c0_i32, %c0_i32_0 : i32, i32, i32
  }
  func.func @transform_6(%arg0: i32) -> (i32, i32, i32) {
    %c0_i32 = arith.constant 0 : i32
    %c0_i32_0 = arith.constant 0 : i32
    %c0_i32_1 = arith.constant 0 : i32
    return %arg0, %c0_i32, %c0_i32_0 : i32, i32, i32
  }
}

module attributes {stable_mosaic.version = 11 : i64} {
  func.func @_affine_relu_kernel(%arg0: i32, %arg1: memref<8x128xbf16, #tpu.memory_space<vmem>>, %arg2: memref<1x128xf32, #tpu.memory_space<vmem>>, %arg3: memref<1x128xf32, #tpu.memory_space<vmem>>, %arg4: memref<8x128xbf16, #tpu.memory_space<vmem>>) attributes {dimension_semantics = [#tpu.dimension_semantics<parallel>], iteration_bounds = array<i64: 1>, scalar_prefetch = 0 : i64, scratch_operands = 0 : i64, tpu.core_type = #tpu.core_type<tc>, window_params = [{transform_indices = @transform_0, window_bounds = array<i64: 8, 128>}, {pipeline_mode = #tpu.pipeline_mode<synchronous>, transform_indices = @transform_1, window_bounds = array<i64: 1, 128>}, {pipeline_mode = #tpu.pipeline_mode<synchronous>, transform_indices = @transform_2, window_bounds = array<i64: 1, 128>}, {transform_indices = @transform_3, window_bounds = array<i64: 8, 128>}]} {
    %c0 = arith.constant 0 : index
    %c0_0 = arith.constant 0 : index
    %0 = vector.load %arg1[%c0, %c0_0] : memref<8x128xbf16, #tpu.memory_space<vmem>>, vector<8x128xbf16>
    %1 = arith.extf %0 : vector<8x128xbf16> to vector<8x128xf32>
    %c0_1 = arith.constant 0 : index
    %c0_2 = arith.constant 0 : index
    %2 = vector.load %arg2[%c0_1, %c0_2] : memref<1x128xf32, #tpu.memory_space<vmem>>, vector<1x128xf32>
    %3 = vector.broadcast %2 : vector<1x128xf32> to vector<8x128xf32>
    %4 = arith.mulf %1, %3 : vector<8x128xf32>
    %c0_3 = arith.constant 0 : index
    %c0_4 = arith.constant 0 : index
    %5 = vector.load %arg3[%c0_3, %c0_4] : memref<1x128xf32, #tpu.memory_space<vmem>>, vector<1x128xf32>
    %6 = vector.broadcast %5 : vector<1x128xf32> to vector<8x128xf32>
    %7 = arith.addf %4, %6 : vector<8x128xf32>
    %cst = arith.constant 0.000000e+00 : f32
    %8 = vector.broadcast %cst : f32 to vector<8x128xf32>
    %9 = arith.maximumf %7, %8 : vector<8x128xf32>
    %10 = arith.truncf %9 : vector<8x128xf32> to vector<8x128xbf16>
    %c0_5 = arith.constant 0 : index
    %c0_6 = arith.constant 0 : index
    %11 = vector.load %arg4[%c0_5, %c0_6] : memref<8x128xbf16, #tpu.memory_space<vmem>>, vector<8x128xbf16>
    tpu.vector_store %arg4[%c0_5, %c0_6], %10 {strides = array<i32>} : memref<8x128xbf16, #tpu.memory_space<vmem>>, vector<8x128xbf16>,
    return
  }
  func.func @transform_0(%arg0: i32) -> (i32, i32) {
    %c0_i32 = arith.constant 0 : i32
    %c0_i32_0 = arith.constant 0 : i32
    return %arg0, %c0_i32 : i32, i32
  }
  func.func @transform_1(%arg0: i32) -> (i32, i32) {
    %c0_i32 = arith.constant 0 : i32
    %c0_i32_0 = arith.constant 0 : i32
    %c0_i32_1 = arith.constant 0 : i32
    return %c0_i32, %c0_i32_0 : i32, i32
  }
  func.func @transform_2(%arg0: i32) -> (i32, i32) {
    %c0_i32 = arith.constant 0 : i32
    %c0_i32_0 = arith.constant 0 : i32
    %c0_i32_1 = arith.constant 0 : i32
    return %c0_i32, %c0_i32_0 : i32, i32
  }
  func.func @transform_3(%arg0: i32) -> (i32, i32) {
    %c0_i32 = arith.constant 0 : i32
    %c0_i32_0 = arith.constant 0 : i32
    return %arg0, %c0_i32 : i32, i32
  }
}

module attributes {stable_mosaic.version = 11 : i64} {
  func.func @kernel(%arg0: i32, %arg1: memref<1x1x10x10x8xbf16, #tpu.memory_space<vmem>>, %arg2: memref<9x8x8xbf16, #tpu.memory_space<vmem>>, %arg3: memref<1x8x8x8xbf16, #tpu.memory_space<vmem>>, %arg4: memref<1x8x8x8xbf16, #tpu.memory_space<vmem>>, %arg5: memref<1x1x8xf32, #tpu.memory_space<vmem>>, %arg6: memref<1x1x8xf32, #tpu.memory_space<vmem>>) attributes {dimension_semantics = [#tpu.dimension_semantics<parallel>], iteration_bounds = array<i64: 2>, scalar_prefetch = 0 : i64, scratch_operands = 0 : i64, tpu.core_type = #tpu.core_type<tc>, window_params = [{transform_indices = @transform_0, window_bounds = array<i64: 1, 1, 10, 10, 8>}, {pipeline_mode = #tpu.pipeline_mode<synchronous>, transform_indices = @transform_1, window_bounds = array<i64: 9, 8, 8>}, {transform_indices = @transform_2, window_bounds = array<i64: 1, 8, 8, 8>}, {transform_indices = @transform_3, window_bounds = array<i64: 1, 8, 8, 8>}, {transform_indices = @transform_4, window_bounds = array<i64: 1, 1, 8>}, {transform_indices = @transform_5, window_bounds = array<i64: 1, 1, 8>}]} {
    %cst = arith.constant 0.000000e+00 : f32
    %0 = vector.broadcast %cst : f32 to vector<64x8xf32>
    %c0 = arith.constant 0 : index
    %c0_0 = arith.constant 0 : index
    %c0_1 = arith.constant 0 : index
    %c0_2 = arith.constant 0 : index
    %c0_3 = arith.constant 0 : index
    %1 = vector.load %arg1[%c0, %c0_0, %c0_1, %c0_2, %c0_3] : memref<1x1x10x10x8xbf16, #tpu.memory_space<vmem>>, vector<1x1x8x8x8xbf16>
    %2 = vector.shape_cast %1 : vector<1x1x8x8x8xbf16> to vector<8x8x8xbf16>
    %3 = vector.shape_cast %2 : vector<8x8x8xbf16> to vector<64x8xbf16>
    %c0_4 = arith.constant 0 : index
    %c0_5 = arith.constant 0 : index
    %c0_6 = arith.constant 0 : index
    %4 = vector.load %arg2[%c0_4, %c0_5, %c0_6] : memref<9x8x8xbf16, #tpu.memory_space<vmem>>, vector<1x8x8xbf16>
    %5 = vector.shape_cast %4 : vector<1x8x8xbf16> to vector<8x8xbf16>
    %cst_7 = arith.constant dense<0.000000e+00> : vector<64x8xf32>
    %6 = tpu.matmul %3, %5, %cst_7 {dimension_numbers = #tpu.dot_dimension_numbers<[1], [0], [0], [1], [0, 0, 1, 1], [], []>} : vector<64x8xbf16>, vector<8x8xbf16>, vector<64x8xf32> -> vector<64x8xf32>
    %7 = arith.addf %0, %6 : vector<64x8xf32>
    %c0_8 = arith.constant 0 : index
    %c0_9 = arith.constant 0 : index
    %c0_10 = arith.constant 0 : index
    %c1 = arith.constant 1 : index
    %c0_11 = arith.constant 0 : index
    %8 = vector.load %arg1[%c0_8, %c0_9, %c0_10, %c1, %c0_11] : memref<1x1x10x10x8xbf16, #tpu.memory_space<vmem>>, vector<1x1x8x8x8xbf16>
    %9 = vector.shape_cast %8 : vector<1x1x8x8x8xbf16> to vector<8x8x8xbf16>
    %10 = vector.shape_cast %9 : vector<8x8x8xbf16> to vector<64x8xbf16>
    %c1_12 = arith.constant 1 : index
    %c0_13 = arith.constant 0 : index
    %c0_14 = arith.constant 0 : index
    %11 = vector.load %arg2[%c1_12, %c0_13, %c0_14] : memref<9x8x8xbf16, #tpu.memory_space<vmem>>, vector<1x8x8xbf16>
    %12 = vector.shape_cast %11 : vector<1x8x8xbf16> to vector<8x8xbf16>
    %cst_15 = arith.constant dense<0.000000e+00> : vector<64x8xf32>
    %13 = tpu.matmul %10, %12, %cst_15 {dimension_numbers = #tpu.dot_dimension_numbers<[1], [0], [0], [1], [0, 0, 1, 1], [], []>} : vector<64x8xbf16>, vector<8x8xbf16>, vector<64x8xf32> -> vector<64x8xf32>
    %14 = arith.addf %7, %13 : vector<64x8xf32>
    %c0_16 = arith.constant 0 : index
    %c0_17 = arith.constant 0 : index
    %c0_18 = arith.constant 0 : index
    %c2 = arith.constant 2 : index
    %c0_19 = arith.constant 0 : index
    %15 = vector.load %arg1[%c0_16, %c0_17, %c0_18, %c2, %c0_19] : memref<1x1x10x10x8xbf16, #tpu.memory_space<vmem>>, vector<1x1x8x8x8xbf16>
    %16 = vector.shape_cast %15 : vector<1x1x8x8x8xbf16> to vector<8x8x8xbf16>
    %17 = vector.shape_cast %16 : vector<8x8x8xbf16> to vector<64x8xbf16>
    %c2_20 = arith.constant 2 : index
    %c0_21 = arith.constant 0 : index
    %c0_22 = arith.constant 0 : index
    %18 = vector.load %arg2[%c2_20, %c0_21, %c0_22] : memref<9x8x8xbf16, #tpu.memory_space<vmem>>, vector<1x8x8xbf16>
    %19 = vector.shape_cast %18 : vector<1x8x8xbf16> to vector<8x8xbf16>
    %cst_23 = arith.constant dense<0.000000e+00> : vector<64x8xf32>
    %20 = tpu.matmul %17, %19, %cst_23 {dimension_numbers = #tpu.dot_dimension_numbers<[1], [0], [0], [1], [0, 0, 1, 1], [], []>} : vector<64x8xbf16>, vector<8x8xbf16>, vector<64x8xf32> -> vector<64x8xf32>
    %21 = arith.addf %14, %20 : vector<64x8xf32>
    %c0_24 = arith.constant 0 : index
    %c0_25 = arith.constant 0 : index
    %c1_26 = arith.constant 1 : index
    %c0_27 = arith.constant 0 : index
    %c0_28 = arith.constant 0 : index
    %22 = vector.load %arg1[%c0_24, %c0_25, %c1_26, %c0_27, %c0_28] : memref<1x1x10x10x8xbf16, #tpu.memory_space<vmem>>, vector<1x1x8x8x8xbf16>
    %23 = vector.shape_cast %22 : vector<1x1x8x8x8xbf16> to vector<8x8x8xbf16>
    %24 = vector.shape_cast %23 : vector<8x8x8xbf16> to vector<64x8xbf16>
    %c3 = arith.constant 3 : index
    %c0_29 = arith.constant 0 : index
    %c0_30 = arith.constant 0 : index
    %25 = vector.load %arg2[%c3, %c0_29, %c0_30] : memref<9x8x8xbf16, #tpu.memory_space<vmem>>, vector<1x8x8xbf16>
    %26 = vector.shape_cast %25 : vector<1x8x8xbf16> to vector<8x8xbf16>
    %cst_31 = arith.constant dense<0.000000e+00> : vector<64x8xf32>
    %27 = tpu.matmul %24, %26, %cst_31 {dimension_numbers = #tpu.dot_dimension_numbers<[1], [0], [0], [1], [0, 0, 1, 1], [], []>} : vector<64x8xbf16>, vector<8x8xbf16>, vector<64x8xf32> -> vector<64x8xf32>
    %28 = arith.addf %21, %27 : vector<64x8xf32>
    %c0_32 = arith.constant 0 : index
    %c0_33 = arith.constant 0 : index
    %c1_34 = arith.constant 1 : index
    %c1_35 = arith.constant 1 : index
    %c0_36 = arith.constant 0 : index
    %29 = vector.load %arg1[%c0_32, %c0_33, %c1_34, %c1_35, %c0_36] : memref<1x1x10x10x8xbf16, #tpu.memory_space<vmem>>, vector<1x1x8x8x8xbf16>
    %30 = vector.shape_cast %29 : vector<1x1x8x8x8xbf16> to vector<8x8x8xbf16>
    %31 = vector.shape_cast %30 : vector<8x8x8xbf16> to vector<64x8xbf16>
    %c4 = arith.constant 4 : index
    %c0_37 = arith.constant 0 : index
    %c0_38 = arith.constant 0 : index
    %32 = vector.load %arg2[%c4, %c0_37, %c0_38] : memref<9x8x8xbf16, #tpu.memory_space<vmem>>, vector<1x8x8xbf16>
    %33 = vector.shape_cast %32 : vector<1x8x8xbf16> to vector<8x8xbf16>
    %cst_39 = arith.constant dense<0.000000e+00> : vector<64x8xf32>
    %34 = tpu.matmul %31, %33, %cst_39 {dimension_numbers = #tpu.dot_dimension_numbers<[1], [0], [0], [1], [0, 0, 1, 1], [], []>} : vector<64x8xbf16>, vector<8x8xbf16>, vector<64x8xf32> -> vector<64x8xf32>
    %35 = arith.addf %28, %34 : vector<64x8xf32>
    %c0_40 = arith.constant 0 : index
    %c0_41 = arith.constant 0 : index
    %c1_42 = arith.constant 1 : index
    %c2_43 = arith.constant 2 : index
    %c0_44 = arith.constant 0 : index
    %36 = vector.load %arg1[%c0_40, %c0_41, %c1_42, %c2_43, %c0_44] : memref<1x1x10x10x8xbf16, #tpu.memory_space<vmem>>, vector<1x1x8x8x8xbf16>
    %37 = vector.shape_cast %36 : vector<1x1x8x8x8xbf16> to vector<8x8x8xbf16>
    %38 = vector.shape_cast %37 : vector<8x8x8xbf16> to vector<64x8xbf16>
    %c5 = arith.constant 5 : index
    %c0_45 = arith.constant 0 : index
    %c0_46 = arith.constant 0 : index
    %39 = vector.load %arg2[%c5, %c0_45, %c0_46] : memref<9x8x8xbf16, #tpu.memory_space<vmem>>, vector<1x8x8xbf16>
    %40 = vector.shape_cast %39 : vector<1x8x8xbf16> to vector<8x8xbf16>
    %cst_47 = arith.constant dense<0.000000e+00> : vector<64x8xf32>
    %41 = tpu.matmul %38, %40, %cst_47 {dimension_numbers = #tpu.dot_dimension_numbers<[1], [0], [0], [1], [0, 0, 1, 1], [], []>} : vector<64x8xbf16>, vector<8x8xbf16>, vector<64x8xf32> -> vector<64x8xf32>
    %42 = arith.addf %35, %41 : vector<64x8xf32>
    %c0_48 = arith.constant 0 : index
    %c0_49 = arith.constant 0 : index
    %c2_50 = arith.constant 2 : index
    %c0_51 = arith.constant 0 : index
    %c0_52 = arith.constant 0 : index
    %43 = vector.load %arg1[%c0_48, %c0_49, %c2_50, %c0_51, %c0_52] : memref<1x1x10x10x8xbf16, #tpu.memory_space<vmem>>, vector<1x1x8x8x8xbf16>
    %44 = vector.shape_cast %43 : vector<1x1x8x8x8xbf16> to vector<8x8x8xbf16>
    %45 = vector.shape_cast %44 : vector<8x8x8xbf16> to vector<64x8xbf16>
    %c6 = arith.constant 6 : index
    %c0_53 = arith.constant 0 : index
    %c0_54 = arith.constant 0 : index
    %46 = vector.load %arg2[%c6, %c0_53, %c0_54] : memref<9x8x8xbf16, #tpu.memory_space<vmem>>, vector<1x8x8xbf16>
    %47 = vector.shape_cast %46 : vector<1x8x8xbf16> to vector<8x8xbf16>
    %cst_55 = arith.constant dense<0.000000e+00> : vector<64x8xf32>
    %48 = tpu.matmul %45, %47, %cst_55 {dimension_numbers = #tpu.dot_dimension_numbers<[1], [0], [0], [1], [0, 0, 1, 1], [], []>} : vector<64x8xbf16>, vector<8x8xbf16>, vector<64x8xf32> -> vector<64x8xf32>
    %49 = arith.addf %42, %48 : vector<64x8xf32>
    %c0_56 = arith.constant 0 : index
    %c0_57 = arith.constant 0 : index
    %c2_58 = arith.constant 2 : index
    %c1_59 = arith.constant 1 : index
    %c0_60 = arith.constant 0 : index
    %50 = vector.load %arg1[%c0_56, %c0_57, %c2_58, %c1_59, %c0_60] : memref<1x1x10x10x8xbf16, #tpu.memory_space<vmem>>, vector<1x1x8x8x8xbf16>
    %51 = vector.shape_cast %50 : vector<1x1x8x8x8xbf16> to vector<8x8x8xbf16>
    %52 = vector.shape_cast %51 : vector<8x8x8xbf16> to vector<64x8xbf16>
    %c7 = arith.constant 7 : index
    %c0_61 = arith.constant 0 : index
    %c0_62 = arith.constant 0 : index
    %53 = vector.load %arg2[%c7, %c0_61, %c0_62] : memref<9x8x8xbf16, #tpu.memory_space<vmem>>, vector<1x8x8xbf16>
    %54 = vector.shape_cast %53 : vector<1x8x8xbf16> to vector<8x8xbf16>
    %cst_63 = arith.constant dense<0.000000e+00> : vector<64x8xf32>
    %55 = tpu.matmul %52, %54, %cst_63 {dimension_numbers = #tpu.dot_dimension_numbers<[1], [0], [0], [1], [0, 0, 1, 1], [], []>} : vector<64x8xbf16>, vector<8x8xbf16>, vector<64x8xf32> -> vector<64x8xf32>
    %56 = arith.addf %49, %55 : vector<64x8xf32>
    %c0_64 = arith.constant 0 : index
    %c0_65 = arith.constant 0 : index
    %c2_66 = arith.constant 2 : index
    %c2_67 = arith.constant 2 : index
    %c0_68 = arith.constant 0 : index
    %57 = vector.load %arg1[%c0_64, %c0_65, %c2_66, %c2_67, %c0_68] : memref<1x1x10x10x8xbf16, #tpu.memory_space<vmem>>, vector<1x1x8x8x8xbf16>
    %58 = vector.shape_cast %57 : vector<1x1x8x8x8xbf16> to vector<8x8x8xbf16>
    %59 = vector.shape_cast %58 : vector<8x8x8xbf16> to vector<64x8xbf16>
    %c8 = arith.constant 8 : index
    %c0_69 = arith.constant 0 : index
    %c0_70 = arith.constant 0 : index
    %60 = vector.load %arg2[%c8, %c0_69, %c0_70] : memref<9x8x8xbf16, #tpu.memory_space<vmem>>, vector<1x8x8xbf16>
    %61 = vector.shape_cast %60 : vector<1x8x8xbf16> to vector<8x8xbf16>
    %cst_71 = arith.constant dense<0.000000e+00> : vector<64x8xf32>
    %62 = tpu.matmul %59, %61, %cst_71 {dimension_numbers = #tpu.dot_dimension_numbers<[1], [0], [0], [1], [0, 0, 1, 1], [], []>} : vector<64x8xbf16>, vector<8x8xbf16>, vector<64x8xf32> -> vector<64x8xf32>
    %63 = arith.addf %56, %62 : vector<64x8xf32>
    %c0_72 = arith.constant 0 : index
    %c0_73 = arith.constant 0 : index
    %c0_74 = arith.constant 0 : index
    %c0_75 = arith.constant 0 : index
    %64 = vector.load %arg3[%c0_72, %c0_73, %c0_74, %c0_75] : memref<1x8x8x8xbf16, #tpu.memory_space<vmem>>, vector<1x8x8x8xbf16>
    %65 = vector.shape_cast %64 : vector<1x8x8x8xbf16> to vector<8x8x8xbf16>
    %66 = vector.shape_cast %65 : vector<8x8x8xbf16> to vector<64x8xbf16>
    %67 = arith.extf %66 : vector<64x8xbf16> to vector<64x8xf32>
    %68 = arith.addf %63, %67 : vector<64x8xf32>
    %69 = arith.truncf %68 : vector<64x8xf32> to vector<64x8xbf16>
    %70 = vector.shape_cast %69 : vector<64x8xbf16> to vector<1x8x8x8xbf16>
    %c0_76 = arith.constant 0 : index
    %c0_77 = arith.constant 0 : index
    %c0_78 = arith.constant 0 : index
    %c0_79 = arith.constant 0 : index
    %71 = vector.load %arg4[%c0_76, %c0_77, %c0_78, %c0_79] : memref<1x8x8x8xbf16, #tpu.memory_space<vmem>>, vector<1x8x8x8xbf16>
    tpu.vector_store %arg4[%c0_76, %c0_77, %c0_78, %c0_79], %70 {strides = array<i32>} : memref<1x8x8x8xbf16, #tpu.memory_space<vmem>>, vector<1x8x8x8xbf16>,
    %72 = arith.extf %69 : vector<64x8xbf16> to vector<64x8xf32>
    %cst_80 = arith.constant dense<0.000000e+00> : vector<8xf32>
    %73 = vector.multi_reduction <add>, %72, %cst_80 [0] : vector<64x8xf32> to vector<8xf32>
    %74 = vector.shape_cast %73 : vector<8xf32> to vector<1x1x8xf32>
    %c0_81 = arith.constant 0 : index
    %c0_82 = arith.constant 0 : index
    %c0_83 = arith.constant 0 : index
    %75 = vector.load %arg5[%c0_81, %c0_82, %c0_83] : memref<1x1x8xf32, #tpu.memory_space<vmem>>, vector<1x1x8xf32>
    tpu.vector_store %arg5[%c0_81, %c0_82, %c0_83], %74 {strides = array<i32>} : memref<1x1x8xf32, #tpu.memory_space<vmem>>, vector<1x1x8xf32>,
    %76 = arith.mulf %72, %72 : vector<64x8xf32>
    %cst_84 = arith.constant dense<0.000000e+00> : vector<8xf32>
    %77 = vector.multi_reduction <add>, %76, %cst_84 [0] : vector<64x8xf32> to vector<8xf32>
    %78 = vector.shape_cast %77 : vector<8xf32> to vector<1x1x8xf32>
    %c0_85 = arith.constant 0 : index
    %c0_86 = arith.constant 0 : index
    %c0_87 = arith.constant 0 : index
    %79 = vector.load %arg6[%c0_85, %c0_86, %c0_87] : memref<1x1x8xf32, #tpu.memory_space<vmem>>, vector<1x1x8xf32>
    tpu.vector_store %arg6[%c0_85, %c0_86, %c0_87], %78 {strides = array<i32>} : memref<1x1x8xf32, #tpu.memory_space<vmem>>, vector<1x1x8xf32>,
    return
  }
  func.func @transform_0(%arg0: i32) -> (i32, i32, i32, i32, i32) {
    %c0_i32 = arith.constant 0 : i32
    %c0_i32_0 = arith.constant 0 : i32
    %c0_i32_1 = arith.constant 0 : i32
    %c0_i32_2 = arith.constant 0 : i32
    %c0_i32_3 = arith.constant 0 : i32
    return %arg0, %c0_i32, %c0_i32_0, %c0_i32_1, %c0_i32_2 : i32, i32, i32, i32, i32
  }
  func.func @transform_1(%arg0: i32) -> (i32, i32, i32) {
    %c0_i32 = arith.constant 0 : i32
    %c0_i32_0 = arith.constant 0 : i32
    %c0_i32_1 = arith.constant 0 : i32
    %c0_i32_2 = arith.constant 0 : i32
    return %c0_i32, %c0_i32_0, %c0_i32_1 : i32, i32, i32
  }
  func.func @transform_2(%arg0: i32) -> (i32, i32, i32, i32) {
    %c0_i32 = arith.constant 0 : i32
    %c0_i32_0 = arith.constant 0 : i32
    %c0_i32_1 = arith.constant 0 : i32
    %c0_i32_2 = arith.constant 0 : i32
    return %arg0, %c0_i32, %c0_i32_0, %c0_i32_1 : i32, i32, i32, i32
  }
  func.func @transform_3(%arg0: i32) -> (i32, i32, i32, i32) {
    %c0_i32 = arith.constant 0 : i32
    %c0_i32_0 = arith.constant 0 : i32
    %c0_i32_1 = arith.constant 0 : i32
    %c0_i32_2 = arith.constant 0 : i32
    return %arg0, %c0_i32, %c0_i32_0, %c0_i32_1 : i32, i32, i32, i32
  }
  func.func @transform_4(%arg0: i32) -> (i32, i32, i32) {
    %c0_i32 = arith.constant 0 : i32
    %c0_i32_0 = arith.constant 0 : i32
    %c0_i32_1 = arith.constant 0 : i32
    return %arg0, %c0_i32, %c0_i32_0 : i32, i32, i32
  }
  func.func @transform_5(%arg0: i32) -> (i32, i32, i32) {
    %c0_i32 = arith.constant 0 : i32
    %c0_i32_0 = arith.constant 0 : i32
    %c0_i32_1 = arith.constant 0 : i32
    return %arg0, %c0_i32, %c0_i32_0 : i32, i32, i32
  }
}

module attributes {stable_mosaic.version = 11 : i64} {
  func.func @kernel(%arg0: i32, %arg1: memref<1x1x10x10x8xbf16, #tpu.memory_space<vmem>>, %arg2: memref<9x8x8xbf16, #tpu.memory_space<vmem>>, %arg3: memref<1x8x8x8xbf16, #tpu.memory_space<vmem>>, %arg4: memref<1x1x8xf32, #tpu.memory_space<vmem>>, %arg5: memref<1x1x8xf32, #tpu.memory_space<vmem>>) attributes {dimension_semantics = [#tpu.dimension_semantics<parallel>], iteration_bounds = array<i64: 2>, scalar_prefetch = 0 : i64, scratch_operands = 0 : i64, tpu.core_type = #tpu.core_type<tc>, window_params = [{transform_indices = @transform_0, window_bounds = array<i64: 1, 1, 10, 10, 8>}, {pipeline_mode = #tpu.pipeline_mode<synchronous>, transform_indices = @transform_1, window_bounds = array<i64: 9, 8, 8>}, {transform_indices = @transform_2, window_bounds = array<i64: 1, 8, 8, 8>}, {transform_indices = @transform_3, window_bounds = array<i64: 1, 1, 8>}, {transform_indices = @transform_4, window_bounds = array<i64: 1, 1, 8>}]} {
    %cst = arith.constant 0.000000e+00 : f32
    %0 = vector.broadcast %cst : f32 to vector<64x8xf32>
    %c0 = arith.constant 0 : index
    %c0_0 = arith.constant 0 : index
    %c0_1 = arith.constant 0 : index
    %c0_2 = arith.constant 0 : index
    %c0_3 = arith.constant 0 : index
    %1 = vector.load %arg1[%c0, %c0_0, %c0_1, %c0_2, %c0_3] : memref<1x1x10x10x8xbf16, #tpu.memory_space<vmem>>, vector<1x1x8x8x8xbf16>
    %2 = vector.shape_cast %1 : vector<1x1x8x8x8xbf16> to vector<8x8x8xbf16>
    %3 = vector.shape_cast %2 : vector<8x8x8xbf16> to vector<64x8xbf16>
    %c0_4 = arith.constant 0 : index
    %c0_5 = arith.constant 0 : index
    %c0_6 = arith.constant 0 : index
    %4 = vector.load %arg2[%c0_4, %c0_5, %c0_6] : memref<9x8x8xbf16, #tpu.memory_space<vmem>>, vector<1x8x8xbf16>
    %5 = vector.shape_cast %4 : vector<1x8x8xbf16> to vector<8x8xbf16>
    %cst_7 = arith.constant dense<0.000000e+00> : vector<64x8xf32>
    %6 = tpu.matmul %3, %5, %cst_7 {dimension_numbers = #tpu.dot_dimension_numbers<[1], [0], [0], [1], [0, 0, 1, 1], [], []>} : vector<64x8xbf16>, vector<8x8xbf16>, vector<64x8xf32> -> vector<64x8xf32>
    %7 = arith.addf %0, %6 : vector<64x8xf32>
    %c0_8 = arith.constant 0 : index
    %c0_9 = arith.constant 0 : index
    %c0_10 = arith.constant 0 : index
    %c1 = arith.constant 1 : index
    %c0_11 = arith.constant 0 : index
    %8 = vector.load %arg1[%c0_8, %c0_9, %c0_10, %c1, %c0_11] : memref<1x1x10x10x8xbf16, #tpu.memory_space<vmem>>, vector<1x1x8x8x8xbf16>
    %9 = vector.shape_cast %8 : vector<1x1x8x8x8xbf16> to vector<8x8x8xbf16>
    %10 = vector.shape_cast %9 : vector<8x8x8xbf16> to vector<64x8xbf16>
    %c1_12 = arith.constant 1 : index
    %c0_13 = arith.constant 0 : index
    %c0_14 = arith.constant 0 : index
    %11 = vector.load %arg2[%c1_12, %c0_13, %c0_14] : memref<9x8x8xbf16, #tpu.memory_space<vmem>>, vector<1x8x8xbf16>
    %12 = vector.shape_cast %11 : vector<1x8x8xbf16> to vector<8x8xbf16>
    %cst_15 = arith.constant dense<0.000000e+00> : vector<64x8xf32>
    %13 = tpu.matmul %10, %12, %cst_15 {dimension_numbers = #tpu.dot_dimension_numbers<[1], [0], [0], [1], [0, 0, 1, 1], [], []>} : vector<64x8xbf16>, vector<8x8xbf16>, vector<64x8xf32> -> vector<64x8xf32>
    %14 = arith.addf %7, %13 : vector<64x8xf32>
    %c0_16 = arith.constant 0 : index
    %c0_17 = arith.constant 0 : index
    %c0_18 = arith.constant 0 : index
    %c2 = arith.constant 2 : index
    %c0_19 = arith.constant 0 : index
    %15 = vector.load %arg1[%c0_16, %c0_17, %c0_18, %c2, %c0_19] : memref<1x1x10x10x8xbf16, #tpu.memory_space<vmem>>, vector<1x1x8x8x8xbf16>
    %16 = vector.shape_cast %15 : vector<1x1x8x8x8xbf16> to vector<8x8x8xbf16>
    %17 = vector.shape_cast %16 : vector<8x8x8xbf16> to vector<64x8xbf16>
    %c2_20 = arith.constant 2 : index
    %c0_21 = arith.constant 0 : index
    %c0_22 = arith.constant 0 : index
    %18 = vector.load %arg2[%c2_20, %c0_21, %c0_22] : memref<9x8x8xbf16, #tpu.memory_space<vmem>>, vector<1x8x8xbf16>
    %19 = vector.shape_cast %18 : vector<1x8x8xbf16> to vector<8x8xbf16>
    %cst_23 = arith.constant dense<0.000000e+00> : vector<64x8xf32>
    %20 = tpu.matmul %17, %19, %cst_23 {dimension_numbers = #tpu.dot_dimension_numbers<[1], [0], [0], [1], [0, 0, 1, 1], [], []>} : vector<64x8xbf16>, vector<8x8xbf16>, vector<64x8xf32> -> vector<64x8xf32>
    %21 = arith.addf %14, %20 : vector<64x8xf32>
    %c0_24 = arith.constant 0 : index
    %c0_25 = arith.constant 0 : index
    %c1_26 = arith.constant 1 : index
    %c0_27 = arith.constant 0 : index
    %c0_28 = arith.constant 0 : index
    %22 = vector.load %arg1[%c0_24, %c0_25, %c1_26, %c0_27, %c0_28] : memref<1x1x10x10x8xbf16, #tpu.memory_space<vmem>>, vector<1x1x8x8x8xbf16>
    %23 = vector.shape_cast %22 : vector<1x1x8x8x8xbf16> to vector<8x8x8xbf16>
    %24 = vector.shape_cast %23 : vector<8x8x8xbf16> to vector<64x8xbf16>
    %c3 = arith.constant 3 : index
    %c0_29 = arith.constant 0 : index
    %c0_30 = arith.constant 0 : index
    %25 = vector.load %arg2[%c3, %c0_29, %c0_30] : memref<9x8x8xbf16, #tpu.memory_space<vmem>>, vector<1x8x8xbf16>
    %26 = vector.shape_cast %25 : vector<1x8x8xbf16> to vector<8x8xbf16>
    %cst_31 = arith.constant dense<0.000000e+00> : vector<64x8xf32>
    %27 = tpu.matmul %24, %26, %cst_31 {dimension_numbers = #tpu.dot_dimension_numbers<[1], [0], [0], [1], [0, 0, 1, 1], [], []>} : vector<64x8xbf16>, vector<8x8xbf16>, vector<64x8xf32> -> vector<64x8xf32>
    %28 = arith.addf %21, %27 : vector<64x8xf32>
    %c0_32 = arith.constant 0 : index
    %c0_33 = arith.constant 0 : index
    %c1_34 = arith.constant 1 : index
    %c1_35 = arith.constant 1 : index
    %c0_36 = arith.constant 0 : index
    %29 = vector.load %arg1[%c0_32, %c0_33, %c1_34, %c1_35, %c0_36] : memref<1x1x10x10x8xbf16, #tpu.memory_space<vmem>>, vector<1x1x8x8x8xbf16>
    %30 = vector.shape_cast %29 : vector<1x1x8x8x8xbf16> to vector<8x8x8xbf16>
    %31 = vector.shape_cast %30 : vector<8x8x8xbf16> to vector<64x8xbf16>
    %c4 = arith.constant 4 : index
    %c0_37 = arith.constant 0 : index
    %c0_38 = arith.constant 0 : index
    %32 = vector.load %arg2[%c4, %c0_37, %c0_38] : memref<9x8x8xbf16, #tpu.memory_space<vmem>>, vector<1x8x8xbf16>
    %33 = vector.shape_cast %32 : vector<1x8x8xbf16> to vector<8x8xbf16>
    %cst_39 = arith.constant dense<0.000000e+00> : vector<64x8xf32>
    %34 = tpu.matmul %31, %33, %cst_39 {dimension_numbers = #tpu.dot_dimension_numbers<[1], [0], [0], [1], [0, 0, 1, 1], [], []>} : vector<64x8xbf16>, vector<8x8xbf16>, vector<64x8xf32> -> vector<64x8xf32>
    %35 = arith.addf %28, %34 : vector<64x8xf32>
    %c0_40 = arith.constant 0 : index
    %c0_41 = arith.constant 0 : index
    %c1_42 = arith.constant 1 : index
    %c2_43 = arith.constant 2 : index
    %c0_44 = arith.constant 0 : index
    %36 = vector.load %arg1[%c0_40, %c0_41, %c1_42, %c2_43, %c0_44] : memref<1x1x10x10x8xbf16, #tpu.memory_space<vmem>>, vector<1x1x8x8x8xbf16>
    %37 = vector.shape_cast %36 : vector<1x1x8x8x8xbf16> to vector<8x8x8xbf16>
    %38 = vector.shape_cast %37 : vector<8x8x8xbf16> to vector<64x8xbf16>
    %c5 = arith.constant 5 : index
    %c0_45 = arith.constant 0 : index
    %c0_46 = arith.constant 0 : index
    %39 = vector.load %arg2[%c5, %c0_45, %c0_46] : memref<9x8x8xbf16, #tpu.memory_space<vmem>>, vector<1x8x8xbf16>
    %40 = vector.shape_cast %39 : vector<1x8x8xbf16> to vector<8x8xbf16>
    %cst_47 = arith.constant dense<0.000000e+00> : vector<64x8xf32>
    %41 = tpu.matmul %38, %40, %cst_47 {dimension_numbers = #tpu.dot_dimension_numbers<[1], [0], [0], [1], [0, 0, 1, 1], [], []>} : vector<64x8xbf16>, vector<8x8xbf16>, vector<64x8xf32> -> vector<64x8xf32>
    %42 = arith.addf %35, %41 : vector<64x8xf32>
    %c0_48 = arith.constant 0 : index
    %c0_49 = arith.constant 0 : index
    %c2_50 = arith.constant 2 : index
    %c0_51 = arith.constant 0 : index
    %c0_52 = arith.constant 0 : index
    %43 = vector.load %arg1[%c0_48, %c0_49, %c2_50, %c0_51, %c0_52] : memref<1x1x10x10x8xbf16, #tpu.memory_space<vmem>>, vector<1x1x8x8x8xbf16>
    %44 = vector.shape_cast %43 : vector<1x1x8x8x8xbf16> to vector<8x8x8xbf16>
    %45 = vector.shape_cast %44 : vector<8x8x8xbf16> to vector<64x8xbf16>
    %c6 = arith.constant 6 : index
    %c0_53 = arith.constant 0 : index
    %c0_54 = arith.constant 0 : index
    %46 = vector.load %arg2[%c6, %c0_53, %c0_54] : memref<9x8x8xbf16, #tpu.memory_space<vmem>>, vector<1x8x8xbf16>
    %47 = vector.shape_cast %46 : vector<1x8x8xbf16> to vector<8x8xbf16>
    %cst_55 = arith.constant dense<0.000000e+00> : vector<64x8xf32>
    %48 = tpu.matmul %45, %47, %cst_55 {dimension_numbers = #tpu.dot_dimension_numbers<[1], [0], [0], [1], [0, 0, 1, 1], [], []>} : vector<64x8xbf16>, vector<8x8xbf16>, vector<64x8xf32> -> vector<64x8xf32>
    %49 = arith.addf %42, %48 : vector<64x8xf32>
    %c0_56 = arith.constant 0 : index
    %c0_57 = arith.constant 0 : index
    %c2_58 = arith.constant 2 : index
    %c1_59 = arith.constant 1 : index
    %c0_60 = arith.constant 0 : index
    %50 = vector.load %arg1[%c0_56, %c0_57, %c2_58, %c1_59, %c0_60] : memref<1x1x10x10x8xbf16, #tpu.memory_space<vmem>>, vector<1x1x8x8x8xbf16>
    %51 = vector.shape_cast %50 : vector<1x1x8x8x8xbf16> to vector<8x8x8xbf16>
    %52 = vector.shape_cast %51 : vector<8x8x8xbf16> to vector<64x8xbf16>
    %c7 = arith.constant 7 : index
    %c0_61 = arith.constant 0 : index
    %c0_62 = arith.constant 0 : index
    %53 = vector.load %arg2[%c7, %c0_61, %c0_62] : memref<9x8x8xbf16, #tpu.memory_space<vmem>>, vector<1x8x8xbf16>
    %54 = vector.shape_cast %53 : vector<1x8x8xbf16> to vector<8x8xbf16>
    %cst_63 = arith.constant dense<0.000000e+00> : vector<64x8xf32>
    %55 = tpu.matmul %52, %54, %cst_63 {dimension_numbers = #tpu.dot_dimension_numbers<[1], [0], [0], [1], [0, 0, 1, 1], [], []>} : vector<64x8xbf16>, vector<8x8xbf16>, vector<64x8xf32> -> vector<64x8xf32>
    %56 = arith.addf %49, %55 : vector<64x8xf32>
    %c0_64 = arith.constant 0 : index
    %c0_65 = arith.constant 0 : index
    %c2_66 = arith.constant 2 : index
    %c2_67 = arith.constant 2 : index
    %c0_68 = arith.constant 0 : index
    %57 = vector.load %arg1[%c0_64, %c0_65, %c2_66, %c2_67, %c0_68] : memref<1x1x10x10x8xbf16, #tpu.memory_space<vmem>>, vector<1x1x8x8x8xbf16>
    %58 = vector.shape_cast %57 : vector<1x1x8x8x8xbf16> to vector<8x8x8xbf16>
    %59 = vector.shape_cast %58 : vector<8x8x8xbf16> to vector<64x8xbf16>
    %c8 = arith.constant 8 : index
    %c0_69 = arith.constant 0 : index
    %c0_70 = arith.constant 0 : index
    %60 = vector.load %arg2[%c8, %c0_69, %c0_70] : memref<9x8x8xbf16, #tpu.memory_space<vmem>>, vector<1x8x8xbf16>
    %61 = vector.shape_cast %60 : vector<1x8x8xbf16> to vector<8x8xbf16>
    %cst_71 = arith.constant dense<0.000000e+00> : vector<64x8xf32>
    %62 = tpu.matmul %59, %61, %cst_71 {dimension_numbers = #tpu.dot_dimension_numbers<[1], [0], [0], [1], [0, 0, 1, 1], [], []>} : vector<64x8xbf16>, vector<8x8xbf16>, vector<64x8xf32> -> vector<64x8xf32>
    %63 = arith.addf %56, %62 : vector<64x8xf32>
    %64 = arith.truncf %63 : vector<64x8xf32> to vector<64x8xbf16>
    %65 = vector.shape_cast %64 : vector<64x8xbf16> to vector<1x8x8x8xbf16>
    %c0_72 = arith.constant 0 : index
    %c0_73 = arith.constant 0 : index
    %c0_74 = arith.constant 0 : index
    %c0_75 = arith.constant 0 : index
    %66 = vector.load %arg3[%c0_72, %c0_73, %c0_74, %c0_75] : memref<1x8x8x8xbf16, #tpu.memory_space<vmem>>, vector<1x8x8x8xbf16>
    tpu.vector_store %arg3[%c0_72, %c0_73, %c0_74, %c0_75], %65 {strides = array<i32>} : memref<1x8x8x8xbf16, #tpu.memory_space<vmem>>, vector<1x8x8x8xbf16>,
    %67 = arith.extf %64 : vector<64x8xbf16> to vector<64x8xf32>
    %cst_76 = arith.constant dense<0.000000e+00> : vector<8xf32>
    %68 = vector.multi_reduction <add>, %67, %cst_76 [0] : vector<64x8xf32> to vector<8xf32>
    %69 = vector.shape_cast %68 : vector<8xf32> to vector<1x1x8xf32>
    %c0_77 = arith.constant 0 : index
    %c0_78 = arith.constant 0 : index
    %c0_79 = arith.constant 0 : index
    %70 = vector.load %arg4[%c0_77, %c0_78, %c0_79] : memref<1x1x8xf32, #tpu.memory_space<vmem>>, vector<1x1x8xf32>
    tpu.vector_store %arg4[%c0_77, %c0_78, %c0_79], %69 {strides = array<i32>} : memref<1x1x8xf32, #tpu.memory_space<vmem>>, vector<1x1x8xf32>,
    %71 = arith.mulf %67, %67 : vector<64x8xf32>
    %cst_80 = arith.constant dense<0.000000e+00> : vector<8xf32>
    %72 = vector.multi_reduction <add>, %71, %cst_80 [0] : vector<64x8xf32> to vector<8xf32>
    %73 = vector.shape_cast %72 : vector<8xf32> to vector<1x1x8xf32>
    %c0_81 = arith.constant 0 : index
    %c0_82 = arith.constant 0 : index
    %c0_83 = arith.constant 0 : index
    %74 = vector.load %arg5[%c0_81, %c0_82, %c0_83] : memref<1x1x8xf32, #tpu.memory_space<vmem>>, vector<1x1x8xf32>
    tpu.vector_store %arg5[%c0_81, %c0_82, %c0_83], %73 {strides = array<i32>} : memref<1x1x8xf32, #tpu.memory_space<vmem>>, vector<1x1x8xf32>,
    return
  }
  func.func @transform_0(%arg0: i32) -> (i32, i32, i32, i32, i32) {
    %c0_i32 = arith.constant 0 : i32
    %c0_i32_0 = arith.constant 0 : i32
    %c0_i32_1 = arith.constant 0 : i32
    %c0_i32_2 = arith.constant 0 : i32
    %c0_i32_3 = arith.constant 0 : i32
    return %arg0, %c0_i32, %c0_i32_0, %c0_i32_1, %c0_i32_2 : i32, i32, i32, i32, i32
  }
  func.func @transform_1(%arg0: i32) -> (i32, i32, i32) {
    %c0_i32 = arith.constant 0 : i32
    %c0_i32_0 = arith.constant 0 : i32
    %c0_i32_1 = arith.constant 0 : i32
    %c0_i32_2 = arith.constant 0 : i32
    return %c0_i32, %c0_i32_0, %c0_i32_1 : i32, i32, i32
  }
  func.func @transform_2(%arg0: i32) -> (i32, i32, i32, i32) {
    %c0_i32 = arith.constant 0 : i32
    %c0_i32_0 = arith.constant 0 : i32
    %c0_i32_1 = arith.constant 0 : i32
    %c0_i32_2 = arith.constant 0 : i32
    return %arg0, %c0_i32, %c0_i32_0, %c0_i32_1 : i32, i32, i32, i32
  }
  func.func @transform_3(%arg0: i32) -> (i32, i32, i32) {
    %c0_i32 = arith.constant 0 : i32
    %c0_i32_0 = arith.constant 0 : i32
    %c0_i32_1 = arith.constant 0 : i32
    return %arg0, %c0_i32, %c0_i32_0 : i32, i32, i32
  }
  func.func @transform_4(%arg0: i32) -> (i32, i32, i32) {
    %c0_i32 = arith.constant 0 : i32
    %c0_i32_0 = arith.constant 0 : i32
    %c0_i32_1 = arith.constant 0 : i32
    return %arg0, %c0_i32, %c0_i32_0 : i32, i32, i32
  }
}

module attributes {stable_mosaic.version = 11 : i64} {
  func.func @kernel(%arg0: i32, %arg1: memref<1x1x10x10x8xbf16, #tpu.memory_space<vmem>>, %arg2: memref<9x8x8xbf16, #tpu.memory_space<vmem>>, %arg3: memref<1x8x8x8xbf16, #tpu.memory_space<vmem>>, %arg4: memref<1x8x8x8xbf16, #tpu.memory_space<vmem>>) attributes {dimension_semantics = [#tpu.dimension_semantics<parallel>], iteration_bounds = array<i64: 2>, scalar_prefetch = 0 : i64, scratch_operands = 0 : i64, tpu.core_type = #tpu.core_type<tc>, window_params = [{transform_indices = @transform_0, window_bounds = array<i64: 1, 1, 10, 10, 8>}, {pipeline_mode = #tpu.pipeline_mode<synchronous>, transform_indices = @transform_1, window_bounds = array<i64: 9, 8, 8>}, {transform_indices = @transform_2, window_bounds = array<i64: 1, 8, 8, 8>}, {transform_indices = @transform_3, window_bounds = array<i64: 1, 8, 8, 8>}]} {
    %cst = arith.constant 0.000000e+00 : f32
    %0 = vector.broadcast %cst : f32 to vector<64x8xf32>
    %c0 = arith.constant 0 : index
    %c0_0 = arith.constant 0 : index
    %c0_1 = arith.constant 0 : index
    %c0_2 = arith.constant 0 : index
    %c0_3 = arith.constant 0 : index
    %1 = vector.load %arg1[%c0, %c0_0, %c0_1, %c0_2, %c0_3] : memref<1x1x10x10x8xbf16, #tpu.memory_space<vmem>>, vector<1x1x8x8x8xbf16>
    %2 = vector.shape_cast %1 : vector<1x1x8x8x8xbf16> to vector<8x8x8xbf16>
    %3 = vector.shape_cast %2 : vector<8x8x8xbf16> to vector<64x8xbf16>
    %c0_4 = arith.constant 0 : index
    %c0_5 = arith.constant 0 : index
    %c0_6 = arith.constant 0 : index
    %4 = vector.load %arg2[%c0_4, %c0_5, %c0_6] : memref<9x8x8xbf16, #tpu.memory_space<vmem>>, vector<1x8x8xbf16>
    %5 = vector.shape_cast %4 : vector<1x8x8xbf16> to vector<8x8xbf16>
    %cst_7 = arith.constant dense<0.000000e+00> : vector<64x8xf32>
    %6 = tpu.matmul %3, %5, %cst_7 {dimension_numbers = #tpu.dot_dimension_numbers<[1], [0], [0], [1], [0, 0, 1, 1], [], []>} : vector<64x8xbf16>, vector<8x8xbf16>, vector<64x8xf32> -> vector<64x8xf32>
    %7 = arith.addf %0, %6 : vector<64x8xf32>
    %c0_8 = arith.constant 0 : index
    %c0_9 = arith.constant 0 : index
    %c0_10 = arith.constant 0 : index
    %c1 = arith.constant 1 : index
    %c0_11 = arith.constant 0 : index
    %8 = vector.load %arg1[%c0_8, %c0_9, %c0_10, %c1, %c0_11] : memref<1x1x10x10x8xbf16, #tpu.memory_space<vmem>>, vector<1x1x8x8x8xbf16>
    %9 = vector.shape_cast %8 : vector<1x1x8x8x8xbf16> to vector<8x8x8xbf16>
    %10 = vector.shape_cast %9 : vector<8x8x8xbf16> to vector<64x8xbf16>
    %c1_12 = arith.constant 1 : index
    %c0_13 = arith.constant 0 : index
    %c0_14 = arith.constant 0 : index
    %11 = vector.load %arg2[%c1_12, %c0_13, %c0_14] : memref<9x8x8xbf16, #tpu.memory_space<vmem>>, vector<1x8x8xbf16>
    %12 = vector.shape_cast %11 : vector<1x8x8xbf16> to vector<8x8xbf16>
    %cst_15 = arith.constant dense<0.000000e+00> : vector<64x8xf32>
    %13 = tpu.matmul %10, %12, %cst_15 {dimension_numbers = #tpu.dot_dimension_numbers<[1], [0], [0], [1], [0, 0, 1, 1], [], []>} : vector<64x8xbf16>, vector<8x8xbf16>, vector<64x8xf32> -> vector<64x8xf32>
    %14 = arith.addf %7, %13 : vector<64x8xf32>
    %c0_16 = arith.constant 0 : index
    %c0_17 = arith.constant 0 : index
    %c0_18 = arith.constant 0 : index
    %c2 = arith.constant 2 : index
    %c0_19 = arith.constant 0 : index
    %15 = vector.load %arg1[%c0_16, %c0_17, %c0_18, %c2, %c0_19] : memref<1x1x10x10x8xbf16, #tpu.memory_space<vmem>>, vector<1x1x8x8x8xbf16>
    %16 = vector.shape_cast %15 : vector<1x1x8x8x8xbf16> to vector<8x8x8xbf16>
    %17 = vector.shape_cast %16 : vector<8x8x8xbf16> to vector<64x8xbf16>
    %c2_20 = arith.constant 2 : index
    %c0_21 = arith.constant 0 : index
    %c0_22 = arith.constant 0 : index
    %18 = vector.load %arg2[%c2_20, %c0_21, %c0_22] : memref<9x8x8xbf16, #tpu.memory_space<vmem>>, vector<1x8x8xbf16>
    %19 = vector.shape_cast %18 : vector<1x8x8xbf16> to vector<8x8xbf16>
    %cst_23 = arith.constant dense<0.000000e+00> : vector<64x8xf32>
    %20 = tpu.matmul %17, %19, %cst_23 {dimension_numbers = #tpu.dot_dimension_numbers<[1], [0], [0], [1], [0, 0, 1, 1], [], []>} : vector<64x8xbf16>, vector<8x8xbf16>, vector<64x8xf32> -> vector<64x8xf32>
    %21 = arith.addf %14, %20 : vector<64x8xf32>
    %c0_24 = arith.constant 0 : index
    %c0_25 = arith.constant 0 : index
    %c1_26 = arith.constant 1 : index
    %c0_27 = arith.constant 0 : index
    %c0_28 = arith.constant 0 : index
    %22 = vector.load %arg1[%c0_24, %c0_25, %c1_26, %c0_27, %c0_28] : memref<1x1x10x10x8xbf16, #tpu.memory_space<vmem>>, vector<1x1x8x8x8xbf16>
    %23 = vector.shape_cast %22 : vector<1x1x8x8x8xbf16> to vector<8x8x8xbf16>
    %24 = vector.shape_cast %23 : vector<8x8x8xbf16> to vector<64x8xbf16>
    %c3 = arith.constant 3 : index
    %c0_29 = arith.constant 0 : index
    %c0_30 = arith.constant 0 : index
    %25 = vector.load %arg2[%c3, %c0_29, %c0_30] : memref<9x8x8xbf16, #tpu.memory_space<vmem>>, vector<1x8x8xbf16>
    %26 = vector.shape_cast %25 : vector<1x8x8xbf16> to vector<8x8xbf16>
    %cst_31 = arith.constant dense<0.000000e+00> : vector<64x8xf32>
    %27 = tpu.matmul %24, %26, %cst_31 {dimension_numbers = #tpu.dot_dimension_numbers<[1], [0], [0], [1], [0, 0, 1, 1], [], []>} : vector<64x8xbf16>, vector<8x8xbf16>, vector<64x8xf32> -> vector<64x8xf32>
    %28 = arith.addf %21, %27 : vector<64x8xf32>
    %c0_32 = arith.constant 0 : index
    %c0_33 = arith.constant 0 : index
    %c1_34 = arith.constant 1 : index
    %c1_35 = arith.constant 1 : index
    %c0_36 = arith.constant 0 : index
    %29 = vector.load %arg1[%c0_32, %c0_33, %c1_34, %c1_35, %c0_36] : memref<1x1x10x10x8xbf16, #tpu.memory_space<vmem>>, vector<1x1x8x8x8xbf16>
    %30 = vector.shape_cast %29 : vector<1x1x8x8x8xbf16> to vector<8x8x8xbf16>
    %31 = vector.shape_cast %30 : vector<8x8x8xbf16> to vector<64x8xbf16>
    %c4 = arith.constant 4 : index
    %c0_37 = arith.constant 0 : index
    %c0_38 = arith.constant 0 : index
    %32 = vector.load %arg2[%c4, %c0_37, %c0_38] : memref<9x8x8xbf16, #tpu.memory_space<vmem>>, vector<1x8x8xbf16>
    %33 = vector.shape_cast %32 : vector<1x8x8xbf16> to vector<8x8xbf16>
    %cst_39 = arith.constant dense<0.000000e+00> : vector<64x8xf32>
    %34 = tpu.matmul %31, %33, %cst_39 {dimension_numbers = #tpu.dot_dimension_numbers<[1], [0], [0], [1], [0, 0, 1, 1], [], []>} : vector<64x8xbf16>, vector<8x8xbf16>, vector<64x8xf32> -> vector<64x8xf32>
    %35 = arith.addf %28, %34 : vector<64x8xf32>
    %c0_40 = arith.constant 0 : index
    %c0_41 = arith.constant 0 : index
    %c1_42 = arith.constant 1 : index
    %c2_43 = arith.constant 2 : index
    %c0_44 = arith.constant 0 : index
    %36 = vector.load %arg1[%c0_40, %c0_41, %c1_42, %c2_43, %c0_44] : memref<1x1x10x10x8xbf16, #tpu.memory_space<vmem>>, vector<1x1x8x8x8xbf16>
    %37 = vector.shape_cast %36 : vector<1x1x8x8x8xbf16> to vector<8x8x8xbf16>
    %38 = vector.shape_cast %37 : vector<8x8x8xbf16> to vector<64x8xbf16>
    %c5 = arith.constant 5 : index
    %c0_45 = arith.constant 0 : index
    %c0_46 = arith.constant 0 : index
    %39 = vector.load %arg2[%c5, %c0_45, %c0_46] : memref<9x8x8xbf16, #tpu.memory_space<vmem>>, vector<1x8x8xbf16>
    %40 = vector.shape_cast %39 : vector<1x8x8xbf16> to vector<8x8xbf16>
    %cst_47 = arith.constant dense<0.000000e+00> : vector<64x8xf32>
    %41 = tpu.matmul %38, %40, %cst_47 {dimension_numbers = #tpu.dot_dimension_numbers<[1], [0], [0], [1], [0, 0, 1, 1], [], []>} : vector<64x8xbf16>, vector<8x8xbf16>, vector<64x8xf32> -> vector<64x8xf32>
    %42 = arith.addf %35, %41 : vector<64x8xf32>
    %c0_48 = arith.constant 0 : index
    %c0_49 = arith.constant 0 : index
    %c2_50 = arith.constant 2 : index
    %c0_51 = arith.constant 0 : index
    %c0_52 = arith.constant 0 : index
    %43 = vector.load %arg1[%c0_48, %c0_49, %c2_50, %c0_51, %c0_52] : memref<1x1x10x10x8xbf16, #tpu.memory_space<vmem>>, vector<1x1x8x8x8xbf16>
    %44 = vector.shape_cast %43 : vector<1x1x8x8x8xbf16> to vector<8x8x8xbf16>
    %45 = vector.shape_cast %44 : vector<8x8x8xbf16> to vector<64x8xbf16>
    %c6 = arith.constant 6 : index
    %c0_53 = arith.constant 0 : index
    %c0_54 = arith.constant 0 : index
    %46 = vector.load %arg2[%c6, %c0_53, %c0_54] : memref<9x8x8xbf16, #tpu.memory_space<vmem>>, vector<1x8x8xbf16>
    %47 = vector.shape_cast %46 : vector<1x8x8xbf16> to vector<8x8xbf16>
    %cst_55 = arith.constant dense<0.000000e+00> : vector<64x8xf32>
    %48 = tpu.matmul %45, %47, %cst_55 {dimension_numbers = #tpu.dot_dimension_numbers<[1], [0], [0], [1], [0, 0, 1, 1], [], []>} : vector<64x8xbf16>, vector<8x8xbf16>, vector<64x8xf32> -> vector<64x8xf32>
    %49 = arith.addf %42, %48 : vector<64x8xf32>
    %c0_56 = arith.constant 0 : index
    %c0_57 = arith.constant 0 : index
    %c2_58 = arith.constant 2 : index
    %c1_59 = arith.constant 1 : index
    %c0_60 = arith.constant 0 : index
    %50 = vector.load %arg1[%c0_56, %c0_57, %c2_58, %c1_59, %c0_60] : memref<1x1x10x10x8xbf16, #tpu.memory_space<vmem>>, vector<1x1x8x8x8xbf16>
    %51 = vector.shape_cast %50 : vector<1x1x8x8x8xbf16> to vector<8x8x8xbf16>
    %52 = vector.shape_cast %51 : vector<8x8x8xbf16> to vector<64x8xbf16>
    %c7 = arith.constant 7 : index
    %c0_61 = arith.constant 0 : index
    %c0_62 = arith.constant 0 : index
    %53 = vector.load %arg2[%c7, %c0_61, %c0_62] : memref<9x8x8xbf16, #tpu.memory_space<vmem>>, vector<1x8x8xbf16>
    %54 = vector.shape_cast %53 : vector<1x8x8xbf16> to vector<8x8xbf16>
    %cst_63 = arith.constant dense<0.000000e+00> : vector<64x8xf32>
    %55 = tpu.matmul %52, %54, %cst_63 {dimension_numbers = #tpu.dot_dimension_numbers<[1], [0], [0], [1], [0, 0, 1, 1], [], []>} : vector<64x8xbf16>, vector<8x8xbf16>, vector<64x8xf32> -> vector<64x8xf32>
    %56 = arith.addf %49, %55 : vector<64x8xf32>
    %c0_64 = arith.constant 0 : index
    %c0_65 = arith.constant 0 : index
    %c2_66 = arith.constant 2 : index
    %c2_67 = arith.constant 2 : index
    %c0_68 = arith.constant 0 : index
    %57 = vector.load %arg1[%c0_64, %c0_65, %c2_66, %c2_67, %c0_68] : memref<1x1x10x10x8xbf16, #tpu.memory_space<vmem>>, vector<1x1x8x8x8xbf16>
    %58 = vector.shape_cast %57 : vector<1x1x8x8x8xbf16> to vector<8x8x8xbf16>
    %59 = vector.shape_cast %58 : vector<8x8x8xbf16> to vector<64x8xbf16>
    %c8 = arith.constant 8 : index
    %c0_69 = arith.constant 0 : index
    %c0_70 = arith.constant 0 : index
    %60 = vector.load %arg2[%c8, %c0_69, %c0_70] : memref<9x8x8xbf16, #tpu.memory_space<vmem>>, vector<1x8x8xbf16>
    %61 = vector.shape_cast %60 : vector<1x8x8xbf16> to vector<8x8xbf16>
    %cst_71 = arith.constant dense<0.000000e+00> : vector<64x8xf32>
    %62 = tpu.matmul %59, %61, %cst_71 {dimension_numbers = #tpu.dot_dimension_numbers<[1], [0], [0], [1], [0, 0, 1, 1], [], []>} : vector<64x8xbf16>, vector<8x8xbf16>, vector<64x8xf32> -> vector<64x8xf32>
    %63 = arith.addf %56, %62 : vector<64x8xf32>
    %c0_72 = arith.constant 0 : index
    %c0_73 = arith.constant 0 : index
    %c0_74 = arith.constant 0 : index
    %c0_75 = arith.constant 0 : index
    %64 = vector.load %arg3[%c0_72, %c0_73, %c0_74, %c0_75] : memref<1x8x8x8xbf16, #tpu.memory_space<vmem>>, vector<1x8x8x8xbf16>
    %65 = vector.shape_cast %64 : vector<1x8x8x8xbf16> to vector<8x8x8xbf16>
    %66 = vector.shape_cast %65 : vector<8x8x8xbf16> to vector<64x8xbf16>
    %67 = arith.extf %66 : vector<64x8xbf16> to vector<64x8xf32>
    %68 = arith.addf %63, %67 : vector<64x8xf32>
    %69 = arith.truncf %68 : vector<64x8xf32> to vector<64x8xbf16>
    %70 = vector.shape_cast %69 : vector<64x8xbf16> to vector<1x8x8x8xbf16>
    %c0_76 = arith.constant 0 : index
    %c0_77 = arith.constant 0 : index
    %c0_78 = arith.constant 0 : index
    %c0_79 = arith.constant 0 : index
    %71 = vector.load %arg4[%c0_76, %c0_77, %c0_78, %c0_79] : memref<1x8x8x8xbf16, #tpu.memory_space<vmem>>, vector<1x8x8x8xbf16>
    tpu.vector_store %arg4[%c0_76, %c0_77, %c0_78, %c0_79], %70 {strides = array<i32>} : memref<1x8x8x8xbf16, #tpu.memory_space<vmem>>, vector<1x8x8x8xbf16>,
    return
  }
  func.func @transform_0(%arg0: i32) -> (i32, i32, i32, i32, i32) {
    %c0_i32 = arith.constant 0 : i32
    %c0_i32_0 = arith.constant 0 : i32
    %c0_i32_1 = arith.constant 0 : i32
    %c0_i32_2 = arith.constant 0 : i32
    %c0_i32_3 = arith.constant 0 : i32
    return %arg0, %c0_i32, %c0_i32_0, %c0_i32_1, %c0_i32_2 : i32, i32, i32, i32, i32
  }
  func.func @transform_1(%arg0: i32) -> (i32, i32, i32) {
    %c0_i32 = arith.constant 0 : i32
    %c0_i32_0 = arith.constant 0 : i32
    %c0_i32_1 = arith.constant 0 : i32
    %c0_i32_2 = arith.constant 0 : i32
    return %c0_i32, %c0_i32_0, %c0_i32_1 : i32, i32, i32
  }
  func.func @transform_2(%arg0: i32) -> (i32, i32, i32, i32) {
    %c0_i32 = arith.constant 0 : i32
    %c0_i32_0 = arith.constant 0 : i32
    %c0_i32_1 = arith.constant 0 : i32
    %c0_i32_2 = arith.constant 0 : i32
    return %arg0, %c0_i32, %c0_i32_0, %c0_i32_1 : i32, i32, i32, i32
  }
  func.func @transform_3(%arg0: i32) -> (i32, i32, i32, i32) {
    %c0_i32 = arith.constant 0 : i32
    %c0_i32_0 = arith.constant 0 : i32
    %c0_i32_1 = arith.constant 0 : i32
    %c0_i32_2 = arith.constant 0 : i32
    return %arg0, %c0_i32, %c0_i32_0, %c0_i32_1 : i32, i32, i32, i32
  }
}

</mosaic_0001>

<bundles_post_ra>
// kernel: network_block_forward.9
= control target key start
LH: loop header
LB: loop body
LE: loop exit
PB: predicated region body
PF: predicated region fallthrough
CT: control target
= control target key end

     0   :  { %s226_s9 = smov 0   ;;  %s258_s0 = inlined_call_operand.vmem [shape: bf16[16,128], index: 0, kind: input, shape index: {}]   ;;  %s259_s1 = inlined_call_operand.vmem [shape: f32[1,128], index: 1, kind: output, shape index: {0}]   ;;  %s260_s2 = inlined_call_operand.vmem [shape: f32[1,128], index: 2, kind: output, shape index: {1}]  }
   0x1 LB: > { %s185_s10 = sadd.s32 4294967295, %s208_s9   ;;  %p188_p0 = scmp.ge.s32.totalorder %s208_s9, 1  ;;  %s208_s9 = sphi %s226_s9, %s13_s9  }
   0x2   : > { %p104_p1 = scmp.lt.s32.totalorder %s208_s9, 3 }
   0x4   : > { %p105_p2 = pnand %p188_p0, %p104_p1 }
   0x5   : > { %p120_p3 = scmp.lt.s32.totalorder (!%p105_p2), %s185_s10, 1  ;;  %p190_p4 = scmp.ne.s32.totalorder (!%p105_p2), %s185_s10, 0 }
   0x6   : > { %108 = sbr.rel (%p105_p2) target bundleno = 41 (0x29), region = 24 }
   0xd   : > { %s121_s11 = scalar_select %p120_p3, %s185_s10, 1 }
   0xe   : > { %127 = sbr.rel (%p190_p4) target bundleno = 21 (0x15), region = 28  ;;  %v210_v0 = vmov (!%p190_p4), 0.0  }
   0xf   : > { %s189_s12 = sshll.u32 %s121_s11, 2  ;;  %128 = vst [vmem:[%s259_s1] sm:$0x1] (!%p190_p4), %v210_v0  ;;  %129 = vst [vmem:[%s260_s2] sm:$0x1] (!%p190_p4), %v210_v0 }
  0x10   : > { %s123_s15 = scalar_lea.vmem %s258_s0, %s189_s12 }
  0x15 PF: > { %v130_v1 = vld [vmem:[%s123_s15] sm:$0xf] }
  0x16   : > { %v131_v2 = vunpack.c.l.bf16 %v130_v1  ;;  %v132_v13 = vld [vmem:[%s259_s1] sm:$0x1] }
  0x17   : > { %v141_v16 = vld [vmem:[%s260_s2] sm:$0x1] }
  0x18   : > { %v133_v3 = vrot.slane %v131_v2, 4  ;;  %v142_v4 = vmul.f32 %v131_v2, %v131_v2 }
  0x1a   : > { %v134_v5 = vadd.f32 %v133_v3, %v131_v2  ;;  %v143_v6 = vrot.slane %v142_v4, 4 }
  0x1c   : > { %v135_v7 = vrot.slane %v134_v5, 2  ;;  %v144_v8 = vadd.f32 %v143_v6, %v142_v4 }
  0x1e   : > { %v136_v9 = vadd.f32 %v135_v7, %v134_v5  ;;  %v145_v10 = vrot.slane %v144_v8, 2 }
  0x20   : > { %v137_v11 = vrot.slane %v136_v9, 1  ;;  %v146_v12 = vadd.f32 %v145_v10, %v144_v8 }
  0x22   : > { %v138_v14 = vadd.f32 %v137_v11, %v136_v9  ;;  %v147_v15 = vrot.slane %v146_v12, 1 }
  0x24   : > { %v139_v17 = vadd.f32 %v138_v14, %v132_v13  ;;  %v148_v18 = vadd.f32 %v147_v15, %v146_v12 }
  0x26   : > { %140 = vst [vmem:[%s259_s1] sm:$0x1] %v139_v17  ;;  %v149_v19 = vadd.f32 %v148_v18, %v141_v16 }
  0x28   : > { %150 = vst [vmem:[%s260_s2] sm:$0x1] %v149_v19 }
  0x29 PF: > { %s13_s9 = sadd.s32 1, %s208_s9  }
  0x2a   : > { %p10_p5 = scmp.ge.s32.totalorder %s13_s9, 4  }
  0x2c   :  { %12 = sbr.rel (!%p10_p5) target bundleno = 1 (0x1), region = 62 }

// kernel: tile.48
= control target key start
LH: loop header
LB: loop body
LE: loop exit
PB: predicated region body
PF: predicated region fallthrough
CT: control target
= control target key end

     0   :  { %s40_s0 = inlined_call_operand.vmem [shape: f32[4], index: 0, kind: input, shape index: {}]   ;;  %s41_s1 = inlined_call_operand.vmem [shape: f32[32,4], index: 1, kind: output, shape index: {}]  }
   0x1   :  { %v4_v0 = vld [vmem:[%s40_s0] ss:$0 sm:$0xff] }
   0x2   :  { %5 = vst [vmem:[%s41_s1] sm:$0xff] %v4_v0  ;;  %12 = vst [vmem:[%s41_s1 + $0x8] sm:$0xff] %v4_v0 }
   0x3   :  { %13 = vst [vmem:[%s41_s1 + $0x10] sm:$0xff] %v4_v0  ;;  %14 = vst [vmem:[%s41_s1 + $0x18] sm:$0xff] %v4_v0 }

// kernel: tile.49
= control target key start
LH: loop header
LB: loop body
LE: loop exit
PB: predicated region body
PF: predicated region fallthrough
CT: control target
= control target key end

     0   :  { %s259_s10 = smov 124   ;;  %s260_s11 = smov 116   ;;  %vm3_vm0 = vcmask 31744   ;;  %vm9_vm1 = vcmask 1048544   ;;  %vm15_vm2 = vcmask 1015744   ;;  %vm21_vm3 = vcmask 982944   ;;  %s399_s0 = inlined_call_operand.vmem [shape: f32[32,4], index: 0, kind: input, shape index: {}]   ;;  %s400_s1 = inlined_call_operand.vmem [shape: f32[1,128], index: 1, kind: output, shape index: {}]  }
   0x1   :  { %v197_v0 = vld [vmem:[%s399_s0 + $0x1f] sm:$0x1]   ;;  %v199_v1 = vld [vmem:[%s399_s0 + $0x1d] sm:$0x1]   ;;  %v198_v2 = vld [vmem:[%s399_s0 + $0x1e] sm:$0x1]  }
   0x2   :  { %7 = vrot.lane.b32.xlu0 %v197_v0, %s259_s10  ;;  %19 = vrot.lane.b32.xlu1 %v199_v1, %s260_s11  ;;  %v200_v3 = vld [vmem:[%s399_s0 + $0x1c] sm:$0x1]   ;;  %s261_s16 = smov 120   ;;  %s262_s17 = smov 112   ;;  %v201_v4 = vld [vmem:[%s399_s0 + $0x1b] sm:$0x1]  }
   0x3   :  { %v202_v5 = vld [vmem:[%s399_s0 + $0x1a] sm:$0x1]   ;;  %s263_s22 = smov 108   ;;  %s264_s23 = smov 104   ;;  %v203_v6 = vld [vmem:[%s399_s0 + $0x19] sm:$0x1]  }
   0x4   :  { %v204_v7 = vld [vmem:[%s399_s0 + $0x18] sm:$0x1]   ;;  %s265_s28 = smov 100   ;;  %s266_s29 = smov 96   ;;  %v205_v8 = vld [vmem:[%s399_s0 + $0x17] sm:$0x1]  }
   0x5   :  { %v206_v9 = vld [vmem:[%s399_s0 + $0x16] sm:$0x1]   ;;  %v2_v10 = vld [vmem:[%s399_s0] sm:$0x1]   ;;  %s267_s7 = smov 92   ;;  %s268_s8 = smov 88  }
   0x6   :  { %13 = vrot.lane.b32.xlu0 %v198_v2, %s261_s16  ;;  %25 = vrot.lane.b32.xlu1 %v200_v3, %s262_s17  ;;  %4 = vst.msk [vmem:[#allocation0] sm:$0x1] %vm3_vm0, %v2_v10   ;;  %v207_v11 = vld [vmem:[%s399_s0 + $0x15] sm:$0x1]   ;;  %v208_v12 = vld [vmem:[%s399_s0 + $0x14] sm:$0x1]  }
   0x7   :  { %s269_s13 = smov 84   ;;  %s270_s14 = smov 80   ;;  %v209_v13 = vld [vmem:[%s399_s0 + $0x13] sm:$0x1]   ;;  %v210_v14 = vld [vmem:[%s399_s0 + $0x12] sm:$0x1]  }
   0x8   :  { %s271_s19 = smov 76   ;;  %s272_s20 = smov 72   ;;  %v211_v15 = vld [vmem:[%s399_s0 + $0x11] sm:$0x1]   ;;  %v212_v16 = vld [vmem:[%s399_s0 + $0x10] sm:$0x1]  }
   0x9   :  { %s273_s25 = smov 68   ;;  %s274_s26 = smov 64   ;;  %v213_v17 = vld [vmem:[%s399_s0 + $0xf] sm:$0x1]   ;;  %v214_v18 = vld [vmem:[%s399_s0 + $0xe] sm:$0x1]  }
   0xa   :  { %31 = vrot.lane.b32.xlu0 %v201_v4, %s263_s22  ;;  %37 = vrot.lane.b32.xlu1 %v202_v5, %s264_s23  ;;  %s275_s2 = smov 60   ;;  %s276_s3 = smov 56   ;;  %v215_v19 = vld [vmem:[%s399_s0 + $0xd] sm:$0x1]   ;;  %v216_v20 = vld [vmem:[%s399_s0 + $0xc] sm:$0x1]  }
   0xb   :  { %s278_s9 = smov 48   ;;  %v217_v21 = vld [vmem:[%s399_s0 + $0xb] sm:$0x1]   ;;  %v218_v22 = vld [vmem:[%s399_s0 + $0xa] sm:$0x1]   ;;  %s280_s15 = smov 40  }
   0xc   :  { %v219_v23 = vld [vmem:[%s399_s0 + $0x9] sm:$0x1]   ;;  %v220_v24 = vld [vmem:[%s399_s0 + $0x8] sm:$0x1]   ;;  %s282_s21 = smov 32   ;;  %s284_s27 = smov 24  }
   0xd   :  { %v221_v25 = vld [vmem:[%s399_s0 + $0x7] sm:$0x1]   ;;  %v222_v26 = vld [vmem:[%s399_s0 + $0x6] sm:$0x1]   ;;  %v223_v27 = vld [vmem:[%s399_s0 + $0x5] sm:$0x1]  }
   0xe   :  { %43 = vrot.lane.b32.xlu0 %v203_v6, %s265_s28  ;;  %49 = vrot.lane.b32.xlu1 %v204_v7, %s266_s29  ;;  %v224_v28 = vld [vmem:[%s399_s0 + $0x4] sm:$0x1]   ;;  %s286_s4 = smov 16   ;;  %v225_v29 = vld [vmem:[%s399_s0 + $0x3] sm:$0x1]   ;;  %s288_s10 = smov 8  }
   0xf   :  { %v226_v30 = vld [vmem:[%s399_s0 + $0x2] sm:$0x1]   ;;  %v227_v31 = vld [vmem:[%s399_s0 + $0x1] sm:$0x1]   ;;  %s289_s0 = smov 4   ;;  %vm27_vm4 = vcmask 950144  }
  0x10   :  { %vm33_vm5 = vcmask 917344   ;;  %vm39_vm6 = vcmask 884544   ;;  %vm45_vm7 = vcmask 851744   ;;  %vm51_vm8 = vcmask 818944  }
  0x11   :  { %vm57_vm9 = vcmask 786144   ;;  %vm63_vm10 = vcmask 753344   ;;  %vm69_vm11 = vcmask 720544   ;;  %vm75_vm12 = vcmask 687744  }
  0x12   :  { %55 = vrot.lane.b32.xlu0 %v205_v8, %s267_s7  ;;  %61 = vrot.lane.b32.xlu1 %v206_v9, %s268_s8  ;;  %s277_s8 = smov 52   ;;  %vm81_vm13 = vcmask 654944   ;;  %vm87_vm14 = vcmask 622144   ;;  %vm93_vm15 = vcmask 589344   ;;  %vm99_vm0 = vcmask 556544  }
  0x16   :  { %67 = vrot.lane.b32.xlu0 %v207_v11, %s269_s13  ;;  %73 = vrot.lane.b32.xlu1 %v208_v12, %s270_s14  ;;  %s279_s14 = smov 44  }
  0x1a   :  { %79 = vrot.lane.b32.xlu0 %v209_v13, %s271_s19  ;;  %85 = vrot.lane.b32.xlu1 %v210_v14, %s272_s20  ;;  %s281_s20 = smov 36  }
  0x1e   :  { %91 = vrot.lane.b32.xlu0 %v211_v15, %s273_s25  ;;  %97 = vrot.lane.b32.xlu1 %v212_v16, %s274_s26  ;;  %s283_s26 = smov 28  }
  0x22   :  { %103 = vrot.lane.b32.xlu0 %v213_v17, %s275_s2  ;;  %109 = vrot.lane.b32.xlu1 %v214_v18, %s276_s3  ;;  %s285_s3 = smov 20  }
  0x26   :  { %115 = vrot.lane.b32.xlu0 %v215_v19, %s277_s8  ;;  %121 = vrot.lane.b32.xlu1 %v216_v20, %s278_s9  ;;  %s287_s9 = smov 12  }
  0x2a   :  { %127 = vrot.lane.b32.xlu0 %v217_v21, %s279_s14  ;;  %133 = vrot.lane.b32.xlu1 %v218_v22, %s280_s15 }
  0x2e   :  { %139 = vrot.lane.b32.xlu0 %v219_v23, %s281_s20  ;;  %145 = vrot.lane.b32.xlu1 %v220_v24, %s282_s21 }
  0x32   :  { %151 = vrot.lane.b32.xlu0 %v221_v25, %s283_s26  ;;  %157 = vrot.lane.b32.xlu1 %v222_v26, %s284_s27 }
  0x36   :  { %163 = vrot.lane.b32.xlu0 %v223_v27, %s285_s3  ;;  %169 = vrot.lane.b32.xlu1 %v224_v28, %s286_s4 }
  0x3a   :  { %175 = vrot.lane.b32.xlu0 %v225_v29, %s287_s9  ;;  %181 = vrot.lane.b32.xlu1 %v226_v30, %s288_s10 }
  0x3e   :  { %187 = vrot.lane.b32.xlu0 %v227_v31, %s289_s0 }
  0x74   :  { %v8_v32 = vpop.permute.xlu0 %7   ;;  %v20_v33 = vpop.permute.xlu1 %19  }
  0x75   :  { %10 = vst.msk [vmem:[#allocation0] sm:$0x1] %vm9_vm1, %v8_v32   ;;  %vm105_vm1 = vcmask 523744  }
  0x78   :  { %v14_v34 = vpop.permute.xlu0 %13   ;;  %v26_v35 = vpop.permute.xlu1 %25  }
  0x79   :  { %16 = vst.msk [vmem:[#allocation0] sm:$0x1] %vm15_vm2, %v14_v34   ;;  %vm111_vm2 = vcmask 490944  }
  0x7a   :  { %22 = vst.msk [vmem:[#allocation0] sm:$0x1] %vm21_vm3, %v20_v33   ;;  %vm117_vm3 = vcmask 458144  }
  0x7b   :  { %28 = vst.msk [vmem:[#allocation0] sm:$0x1] %vm27_vm4, %v26_v35   ;;  %vm123_vm4 = vcmask 425344  }
  0x7c   :  { %v32_v36 = vpop.permute.xlu0 %31   ;;  %v38_v37 = vpop.permute.xlu1 %37  }
  0x7d   :  { %34 = vst.msk [vmem:[#allocation0] sm:$0x1] %vm33_vm5, %v32_v36   ;;  %vm129_vm5 = vcmask 392544  }
  0x7e   :  { %40 = vst.msk [vmem:[#allocation0] sm:$0x1] %vm39_vm6, %v38_v37   ;;  %vm135_vm6 = vcmask 359744  }
  0x80   :  { %v44_v38 = vpop.permute.xlu0 %43   ;;  %v50_v39 = vpop.permute.xlu1 %49  }
  0x81   :  { %46 = vst.msk [vmem:[#allocation0] sm:$0x1] %vm45_vm7, %v44_v38   ;;  %vm141_vm7 = vcmask 326944  }
  0x82   :  { %52 = vst.msk [vmem:[#allocation0] sm:$0x1] %vm51_vm8, %v50_v39   ;;  %vm147_vm8 = vcmask 294144  }
  0x84   :  { %v56_v40 = vpop.permute.xlu0 %55   ;;  %v62_v41 = vpop.permute.xlu1 %61  }
  0x85   :  { %58 = vst.msk [vmem:[#allocation0] sm:$0x1] %vm57_vm9, %v56_v40   ;;  %vm153_vm9 = vcmask 261344  }
  0x86   :  { %64 = vst.msk [vmem:[#allocation0] sm:$0x1] %vm63_vm10, %v62_v41   ;;  %vm159_vm10 = vcmask 228544  }
  0x88   :  { %v68_v42 = vpop.permute.xlu0 %67   ;;  %v74_v43 = vpop.permute.xlu1 %73  }
  0x89   :  { %70 = vst.msk [vmem:[#allocation0] sm:$0x1] %vm69_vm11, %v68_v42   ;;  %vm165_vm11 = vcmask 195744  }
  0x8a   :  { %76 = vst.msk [vmem:[#allocation0] sm:$0x1] %vm75_vm12, %v74_v43   ;;  %vm171_vm12 = vcmask 162944  }
  0x8c   :  { %v80_v44 = vpop.permute.xlu0 %79   ;;  %v86_v45 = vpop.permute.xlu1 %85  }
  0x8d   :  { %82 = vst.msk [vmem:[#allocation0] sm:$0x1] %vm81_vm13, %v80_v44   ;;  %vm177_vm13 = vcmask 130144  }
  0x8e   :  { %88 = vst.msk [vmem:[#allocation0] sm:$0x1] %vm87_vm14, %v86_v45   ;;  %vm183_vm14 = vcmask 97344  }
  0x90   :  { %v92_v46 = vpop.permute.xlu0 %91   ;;  %v98_v47 = vpop.permute.xlu1 %97  }
  0x91   :  { %94 = vst.msk [vmem:[#allocation0] sm:$0x1] %vm93_vm15, %v92_v46   ;;  %vm189_vm15 = vcmask 64544  }
  0x92   :  { %100 = vst.msk [vmem:[#allocation0] sm:$0x1] %vm99_vm0, %v98_v47  }
  0x94   :  { %v104_v48 = vpop.permute.xlu0 %103   ;;  %v110_v49 = vpop.permute.xlu1 %109  }
  0x95   :  { %106 = vst.msk [vmem:[#allocation0] sm:$0x1] %vm105_vm1, %v104_v48  }
  0x96   :  { %112 = vst.msk [vmem:[#allocation0] sm:$0x1] %vm111_vm2, %v110_v49  }
  0x98   :  { %v116_v50 = vpop.permute.xlu0 %115   ;;  %v122_v51 = vpop.permute.xlu1 %121  }
  0x99   :  { %118 = vst.msk [vmem:[#allocation0] sm:$0x1] %vm117_vm3, %v116_v50  }
  0x9a   :  { %124 = vst.msk [vmem:[#allocation0] sm:$0x1] %vm123_vm4, %v122_v51  }
  0x9c   :  { %v128_v52 = vpop.permute.xlu0 %127   ;;  %v134_v53 = vpop.permute.xlu1 %133  }
  0x9d   :  { %130 = vst.msk [vmem:[#allocation0] sm:$0x1] %vm129_vm5, %v128_v52  }
  0x9e   :  { %136 = vst.msk [vmem:[#allocation0] sm:$0x1] %vm135_vm6, %v134_v53  }
  0xa0   :  { %v140_v54 = vpop.permute.xlu0 %139   ;;  %v146_v55 = vpop.permute.xlu1 %145  }
  0xa1   :  { %142 = vst.msk [vmem:[#allocation0] sm:$0x1] %vm141_vm7, %v140_v54  }
  0xa2   :  { %148 = vst.msk [vmem:[#allocation0] sm:$0x1] %vm147_vm8, %v146_v55  }
  0xa4   :  { %v152_v56 = vpop.permute.xlu0 %151   ;;  %v158_v57 = vpop.permute.xlu1 %157  }
  0xa5   :  { %154 = vst.msk [vmem:[#allocation0] sm:$0x1] %vm153_vm9, %v152_v56  }
  0xa6   :  { %160 = vst.msk [vmem:[#allocation0] sm:$0x1] %vm159_vm10, %v158_v57  }
  0xa8   :  { %v164_v58 = vpop.permute.xlu0 %163   ;;  %v170_v59 = vpop.permute.xlu1 %169  }
  0xa9   :  { %166 = vst.msk [vmem:[#allocation0] sm:$0x1] %vm165_vm11, %v164_v58  }
  0xaa   :  { %172 = vst.msk [vmem:[#allocation0] sm:$0x1] %vm171_vm12, %v170_v59  }
  0xac   :  { %v176_v60 = vpop.permute.xlu0 %175   ;;  %v182_v61 = vpop.permute.xlu1 %181  }
  0xad   :  { %178 = vst.msk [vmem:[#allocation0] sm:$0x1] %vm177_vm13, %v176_v60  }
  0xae   :  { %184 = vst.msk [vmem:[#allocation0] sm:$0x1] %vm183_vm14, %v182_v61  }
  0xb0   :  { %v188_v62 = vpop.permute.xlu0 %187  }
  0xb1   :  { %190 = vst.msk [vmem:[#allocation0] sm:$0x1] %vm189_vm15, %v188_v62  }
  0xb8   :  { %v194_v63 = vld [vmem:[#allocation0] sm:$0x1] }
  0xb9   :  { %196 = vst [vmem:[%s400_s1] sm:$0x1] %v194_v63 }

// kernel: network_block_forward.10
= control target key start
LH: loop header
LB: loop body
LE: loop exit
PB: predicated region body
PF: predicated region fallthrough
CT: control target
= control target key end

     0   :  { %s263_s12 = smov 0   ;;  %s299_s0 = inlined_call_operand.vmem [shape: bf16[16,128], index: 0, kind: input, shape index: {}]   ;;  %s300_s1 = inlined_call_operand.vmem [shape: f32[1,128], index: 1, kind: input, shape index: {}]   ;;  %s301_s2 = inlined_call_operand.vmem [shape: f32[1,128], index: 2, kind: input, shape index: {}]   ;;  %s302_s3 = inlined_call_operand.vmem [shape: bf16[16,128], index: 3, kind: output, shape index: {}]  }
   0x1 LB: > { %s240_s13 = sadd.s32 4294967295, %s265_s12   ;;  %p244_p0 = scmp.ge.s32.totalorder %s265_s12, 1  ;;  %s265_s12 = sphi %s263_s12, %s13_s12  }
   0x2   : > { %p136_p1 = scmp.lt.s32.totalorder %s265_s12, 3 }
   0x4   : > { %p137_p2 = pnand %p244_p0, %p136_p1 }
   0x5   : > { %p158_p3 = scmp.lt.s32.totalorder (!%p137_p2), %s240_s13, 1  ;;  %v247_v1 = vld [vmem:[%s300_s1] ss:$0 sm:$0xff] (!%p137_p2) }
   0x6   : > { %140 = sbr.rel (%p137_p2) target bundleno = 28 (0x1c), region = 32  ;;  %v248_v3 = vld [vmem:[%s301_s2] ss:$0 sm:$0xff] (!%p137_p2) }
   0xd   : > { %s304_s13 = smov (!%p158_p3, %s240_s13), 1 }
   0xe   : > { %s245_s14 = sshll.u32 %s304_s13, 2 }
   0xf   : > { %s161_s17 = scalar_lea.vmem %s299_s0, %s245_s14  ;;  %s165_s24 = scalar_lea.vmem %s302_s3, %s245_s14 }
  0x10   : > { %v166_v0 = vld [vmem:[%s161_s17] sm:$0xf] }
  0x11   : > { %v167_v2 = vunpack.c.l.bf16 %v166_v0 }
  0x13   : > { %v175_v4 = vmul.f32 %v247_v1, %v167_v2 }
  0x15   : > { %v183_v5 = vadd.f32 %v248_v3, %v175_v4 }
  0x17   : > { %v184_v6 = vmax.f32 %v183_v5, 0.0 }
  0x19   : > { %v185_v7 = vpack.c.bf16 %v184_v6, %v184_v6 }
  0x1b   : > { %186 = vst [vmem:[%s165_s24] sm:$0xf] %v185_v7 }
  0x1c PF: > { %s13_s12 = sadd.s32 1, %s265_s12  }
  0x1d   : > { %p10_p4 = scmp.ge.s32.totalorder %s13_s12, 4  }
  0x1f   :  { %12 = sbr.rel (!%p10_p4) target bundleno = 1 (0x1), region = 62 }

// kernel: tile.58
= control target key start
LH: loop header
LB: loop body
LE: loop exit
PB: predicated region body
PF: predicated region fallthrough
CT: control target
= control target key end

     0   :  { %s28_s0 = inlined_call_operand.vmem [shape: f32[8], index: 0, kind: input, shape index: {}]   ;;  %s29_s1 = inlined_call_operand.vmem [shape: f32[16,8], index: 1, kind: output, shape index: {}]  }
   0x1   :  { %v4_v0 = vld [vmem:[%s28_s0] ss:$0 sm:$0xff] }
   0x2   :  { %5 = vst [vmem:[%s29_s1] sm:$0xff] %v4_v0  ;;  %8 = vst [vmem:[%s29_s1 + $0x8] sm:$0xff] %v4_v0 }

// kernel: tile.59
= control target key start
LH: loop header
LB: loop body
LE: loop exit
PB: predicated region body
PF: predicated region fallthrough
CT: control target
= control target key end

     0   :  { %s131_s10 = smov 120   ;;  %s132_s11 = smov 104   ;;  %vm3_vm0 = vcmask 64512   ;;  %vm9_vm1 = vcmask 1048512   ;;  %vm15_vm2 = vcmask 982912   ;;  %vm21_vm3 = vcmask 917312   ;;  %s207_s0 = inlined_call_operand.vmem [shape: f32[16,8], index: 0, kind: input, shape index: {}]   ;;  %s208_s1 = inlined_call_operand.vmem [shape: f32[1,128], index: 1, kind: output, shape index: {}]  }
   0x1   :  { %v101_v0 = vld [vmem:[%s207_s0 + $0xf] sm:$0x1]   ;;  %v103_v1 = vld [vmem:[%s207_s0 + $0xd] sm:$0x1]   ;;  %v102_v2 = vld [vmem:[%s207_s0 + $0xe] sm:$0x1]  }
   0x2   :  { %7 = vrot.lane.b32.xlu0 %v101_v0, %s131_s10  ;;  %19 = vrot.lane.b32.xlu1 %v103_v1, %s132_s11  ;;  %v104_v3 = vld [vmem:[%s207_s0 + $0xc] sm:$0x1]   ;;  %s133_s16 = smov 112   ;;  %s134_s17 = smov 96   ;;  %v105_v4 = vld [vmem:[%s207_s0 + $0xb] sm:$0x1]  }
   0x3   :  { %v106_v5 = vld [vmem:[%s207_s0 + $0xa] sm:$0x1]   ;;  %v2_v6 = vld [vmem:[%s207_s0] sm:$0x1]   ;;  %s135_s24 = smov 88   ;;  %s136_s25 = smov 80  }
   0x4   :  { %4 = vst.msk [vmem:[#allocation0] sm:$0x1] %vm3_vm0, %v2_v6   ;;  %v107_v7 = vld [vmem:[%s207_s0 + $0x9] sm:$0x1]   ;;  %v108_v8 = vld [vmem:[%s207_s0 + $0x8] sm:$0x1]  }
   0x5   :  { %s137_s30 = smov 72   ;;  %s138_s2 = smov 64   ;;  %v109_v9 = vld [vmem:[%s207_s0 + $0x7] sm:$0x1]   ;;  %v110_v10 = vld [vmem:[%s207_s0 + $0x6] sm:$0x1]  }
   0x6   :  { %13 = vrot.lane.b32.xlu0 %v102_v2, %s133_s16  ;;  %25 = vrot.lane.b32.xlu1 %v104_v3, %s134_s17  ;;  %s139_s7 = smov 56   ;;  %s140_s8 = smov 48   ;;  %v111_v11 = vld [vmem:[%s207_s0 + $0x5] sm:$0x1]   ;;  %v112_v12 = vld [vmem:[%s207_s0 + $0x4] sm:$0x1]  }
   0x7   :  { %s141_s13 = smov 40   ;;  %s142_s14 = smov 32   ;;  %v113_v13 = vld [vmem:[%s207_s0 + $0x3] sm:$0x1]   ;;  %v114_v14 = vld [vmem:[%s207_s0 + $0x2] sm:$0x1]  }
   0x8   :  { %s143_s19 = smov 24   ;;  %s144_s20 = smov 16   ;;  %v115_v15 = vld [vmem:[%s207_s0 + $0x1] sm:$0x1]   ;;  %vm27_vm4 = vcmask 851712   ;;  %vm33_vm5 = vcmask 786112  }
   0x9   :  { %s145_s0 = smov 8   ;;  %vm39_vm6 = vcmask 720512   ;;  %vm45_vm7 = vcmask 654912   ;;  %vm51_vm8 = vcmask 589312   ;;  %vm57_vm9 = vcmask 523712  }
   0xa   :  { %31 = vrot.lane.b32.xlu0 %v105_v4, %s135_s24  ;;  %37 = vrot.lane.b32.xlu1 %v106_v5, %s136_s25  ;;  %vm63_vm10 = vcmask 458112   ;;  %vm69_vm11 = vcmask 392512   ;;  %vm75_vm12 = vcmask 326912   ;;  %vm81_vm13 = vcmask 261312  }
   0xb   :  { %vm87_vm14 = vcmask 195712   ;;  %vm93_vm15 = vcmask 130112  }
   0xe   :  { %43 = vrot.lane.b32.xlu0 %v107_v7, %s137_s30  ;;  %49 = vrot.lane.b32.xlu1 %v108_v8, %s138_s2 }
  0x12   :  { %55 = vrot.lane.b32.xlu0 %v109_v9, %s139_s7  ;;  %61 = vrot.lane.b32.xlu1 %v110_v10, %s140_s8 }
  0x16   :  { %67 = vrot.lane.b32.xlu0 %v111_v11, %s141_s13  ;;  %73 = vrot.lane.b32.xlu1 %v112_v12, %s142_s14 }
  0x1a   :  { %79 = vrot.lane.b32.xlu0 %v113_v13, %s143_s19  ;;  %85 = vrot.lane.b32.xlu1 %v114_v14, %s144_s20 }
  0x1e   :  { %91 = vrot.lane.b32.xlu0 %v115_v15, %s145_s0 }
  0x74   :  { %v8_v16 = vpop.permute.xlu0 %7   ;;  %v20_v17 = vpop.permute.xlu1 %19  }
  0x75   :  { %10 = vst.msk [vmem:[#allocation0] sm:$0x1] %vm9_vm1, %v8_v16  }
  0x78   :  { %v14_v18 = vpop.permute.xlu0 %13   ;;  %v26_v19 = vpop.permute.xlu1 %25  }
  0x79   :  { %16 = vst.msk [vmem:[#allocation0] sm:$0x1] %vm15_vm2, %v14_v18  }
  0x7a   :  { %22 = vst.msk [vmem:[#allocation0] sm:$0x1] %vm21_vm3, %v20_v17  }
  0x7b   :  { %28 = vst.msk [vmem:[#allocation0] sm:$0x1] %vm27_vm4, %v26_v19  }
  0x7c   :  { %v32_v20 = vpop.permute.xlu0 %31   ;;  %v38_v21 = vpop.permute.xlu1 %37  }
  0x7d   :  { %34 = vst.msk [vmem:[#allocation0] sm:$0x1] %vm33_vm5, %v32_v20  }
  0x7e   :  { %40 = vst.msk [vmem:[#allocation0] sm:$0x1] %vm39_vm6, %v38_v21  }
  0x80   :  { %v44_v22 = vpop.permute.xlu0 %43   ;;  %v50_v23 = vpop.permute.xlu1 %49  }
  0x81   :  { %46 = vst.msk [vmem:[#allocation0] sm:$0x1] %vm45_vm7, %v44_v22  }
  0x82   :  { %52 = vst.msk [vmem:[#allocation0] sm:$0x1] %vm51_vm8, %v50_v23  }
  0x84   :  { %v56_v24 = vpop.permute.xlu0 %55   ;;  %v62_v25 = vpop.permute.xlu1 %61  }
  0x85   :  { %58 = vst.msk [vmem:[#allocation0] sm:$0x1] %vm57_vm9, %v56_v24  }
  0x86   :  { %64 = vst.msk [vmem:[#allocation0] sm:$0x1] %vm63_vm10, %v62_v25  }
  0x88   :  { %v68_v26 = vpop.permute.xlu0 %67   ;;  %v74_v27 = vpop.permute.xlu1 %73  }
  0x89   :  { %70 = vst.msk [vmem:[#allocation0] sm:$0x1] %vm69_vm11, %v68_v26  }
  0x8a   :  { %76 = vst.msk [vmem:[#allocation0] sm:$0x1] %vm75_vm12, %v74_v27  }
  0x8c   :  { %v80_v28 = vpop.permute.xlu0 %79   ;;  %v86_v29 = vpop.permute.xlu1 %85  }
  0x8d   :  { %82 = vst.msk [vmem:[#allocation0] sm:$0x1] %vm81_vm13, %v80_v28  }
  0x8e   :  { %88 = vst.msk [vmem:[#allocation0] sm:$0x1] %vm87_vm14, %v86_v29  }
  0x90   :  { %v92_v30 = vpop.permute.xlu0 %91  }
  0x91   :  { %94 = vst.msk [vmem:[#allocation0] sm:$0x1] %vm93_vm15, %v92_v30  }
  0x98   :  { %v98_v31 = vld [vmem:[#allocation0] sm:$0x1] }
  0x99   :  { %100 = vst [vmem:[%s208_s1] sm:$0x1] %v98_v31 }

// kernel: network_block_forward.12
= control target key start
LH: loop header
LB: loop body
LE: loop exit
PB: predicated region body
PF: predicated region fallthrough
CT: control target
= control target key end

     0   :  { %s73_s0 = inlined_call_operand.vmem [shape: bf16[8,128], index: 0, kind: input, shape index: {}]   ;;  %s74_s1 = inlined_call_operand.vmem [shape: f32[1,128], index: 1, kind: input, shape index: {}]   ;;  %s75_s2 = inlined_call_operand.vmem [shape: f32[1,128], index: 2, kind: input, shape index: {}]   ;;  %s76_s3 = inlined_call_operand.vmem [shape: bf16[8,128], index: 3, kind: output, shape index: {}]  }
   0x1   :  { %v14_v0 = vld [vmem:[%s73_s0] sm:$0xf] }
   0x2   :  { %v39_v1 = vld [vmem:[%s74_s1] ss:$0 sm:$0xff]  ;;  %v15_v2 = vunpack.c.l.bf16 %v14_v0 }
   0x3   :  { %v40_v3 = vld [vmem:[%s75_s2] ss:$0 sm:$0xff] }
   0x4   :  { %v23_v4 = vmul.f32 %v39_v1, %v15_v2 }
   0x6   :  { %v31_v5 = vadd.f32 %v40_v3, %v23_v4 }
   0x8   :  { %v32_v6 = vmax.f32 %v31_v5, 0.0 }
   0xa   :  { %v33_v7 = vpack.c.bf16 %v32_v6, %v32_v6 }
   0xc   :  { %34 = vst [vmem:[%s76_s3] sm:$0xf] %v33_v7 }

// kernel: network_block_forward.11
= control target key start
LH: loop header
LB: loop body
LE: loop exit
PB: predicated region body
PF: predicated region fallthrough
CT: control target
= control target key end

     0   :  { %s2525_s21 = smov 0   ;;  %s2863_s0 = inlined_call_operand.vmem [shape: bf16[2,4,9,9,4], index: 0, kind: input, shape index: {}]   ;;  %s2864_s1 = inlined_call_operand.vmem [shape: bf16[9,4,8], index: 1, kind: input, shape index: {}]   ;;  %s2865_s2 = inlined_call_operand.vmem [shape: bf16[4,8], index: 2, kind: input, shape index: {}]   ;;  %s2866_s3 = inlined_call_operand.vmem [shape: bf16[2,8,8,8], index: 3, kind: output, shape index: {0}]   ;;  %s2867_s4 = inlined_call_operand.vmem [shape: bf16[2,8,8,8], index: 4, kind: output, shape index: {1}]   ;;  %s2868_s5 = inlined_call_operand.vmem [shape: f32[2,1,8], index: 5, kind: output, shape index: {2}]   ;;  %s2869_s6 = inlined_call_operand.vmem [shape: f32[2,1,8], index: 6, kind: output, shape index: {3}]  }
   0x1 LB: > { %s2023_s22 = sadd.s32 4294967295, %s2488_s21   ;;  %p2027_p0 = scmp.ge.s32.totalorder %s2488_s21, 1  ;;  %s2488_s21 = sphi %s2525_s21, %s17_s21  }
   0x2   : > { %p219_p1 = scmp.lt.s32.totalorder %s2488_s21, 3 }
   0x4   : > { %p220_p2 = pnand %p2027_p0, %p219_p1 }
   0x5   : > { %vm335_vm0 = vcmask (!%p220_p2), 1041408   ;;  %v2092_v0 = vld [vmem:[%s2864_s1 + $0x8] sm:$0x3] (!%p220_p2)  ;;  %v2041_v1 = vld [vmem:[%s2864_s1 + $0x2] sm:$0x3] (!%p220_p2)  ;;  %p260_p3 = scmp.lt.s32.totalorder (!%p220_p2), %s2023_s22, 1 }
   0x6   : > { %223 = sbr.rel (%p220_p2) target bundleno = 340 (0x154), region = 32  ;;  %2443 = vmatprep.subr.msk.bf16.mxu0 (!%p220_p2), %vm335_vm0, %v2092_v0  ;;  %2439 = vmatprep.subr.msk.bf16.mxu1 (!%p220_p2), %vm335_vm0, %v2041_v1  ;;  %v900_v2 = vsel (!%p220_p2), %vm335_vm0, %v2092_v0, 0  ;;  %v337_v3 = vsel (!%p220_p2), %vm335_vm0, %v2041_v1, 0  ;;  %v2117_v4 = vld [vmem:[%s2864_s1 + $0xa] sm:$0x3] (!%p220_p2)  ;;  %vm322_vm1 = vcmask (!%p220_p2), 31744  }
   0x7   : > { %2316 = vmatpush3.bf16.msra.mxu0 (!%p220_p2), %v900_v2  ;;  %2276 = vmatpush3.bf16.msra.mxu1 (!%p220_p2), %v337_v3  ;;  %v290_v5 = vld [vmem:[%s2864_s1] sm:$0x3] (!%p220_p2)  ;;  %v2134_v6 = vld [vmem:[%s2864_s1 + $0xc] sm:$0x3] (!%p220_p2)  ;;  %v1130_v7 = vsel (!%p220_p2), %vm335_vm0, %v2117_v4, 0  ;;  %vm1705_vm5 = vcmask (!%p220_p2), 60416  }
   0x8   : > { %2444 = vmatprep.subr.msk.bf16.mxu0 (!%p220_p2), %vm335_vm0, %v2117_v4  ;;  %2440 = vmatprep.subr.msk.bf16.mxu1 (!%p220_p2), %vm335_vm0, %v290_v5  ;;  %v437_v8 = vsel (!%p220_p2), %vm335_vm0, %v290_v5, 0  ;;  %v2565_v9 = vsel (!%p220_p2), %vm335_vm0, %v2134_v6, 0  ;;  %v2058_v14 = vld [vmem:[%s2864_s1 + $0x4] sm:$0x3] (!%p220_p2)  ;;  %vm520_vm2 = vsmask.f32 (!%p220_p2), 3328 }
   0x9   : > { %vm521_vm3 = vsmask.f32 (!%p220_p2), 7440  ;;  %v662_v57 = vsel (!%p220_p2), %vm335_vm0, %v2058_v14, 0  ;;  %v2622_v58 = vld [vmem:[%s2864_s1 + $0xe] sm:$0x3] (!%p220_p2)  ;;  %vm1831_vm6 = vcmask (!%p220_p2), 64512  }
   0xa   : > { %vm2613_vm4 = vmor (!%p220_p2), %vm520_vm2, %vm521_vm3  ;;  %v2627_v59 = vld [vmem:[%s2864_s1 + $0x6] sm:$0x3] (!%p220_p2)  ;;  %vm1853_vm7 = vcmask (!%p220_p2), 57344  }
   0xd   : > { %s2873_s22 = smov (!%p260_p3, %s2023_s22), 1 }
   0xe   : > { %s2449_s9 = smul.u32 288, %s2873_s22  ;;  %s2207_s25 = sshll.u32 %s2873_s22, 5 }
   0xf   : > { %s2796_s28 = scalar_lea.vmem %s2866_s3, %s2207_s25  ;;  %s2801_s7 = scalar_lea.vmem %s2867_s4, %s2207_s25 }
  0x10   : > { %s2560_s12 = scalar_lea.vmem %s2863_s0, %s2449_s9  ;;  %s277_s10 = scalar_lea.vmem %s2868_s5, %s2873_s22 }
  0x11   : > { %v2458_v10 = vld [vmem:[%s2560_s12 + $0x48] ss:$8 sps:$4 sm:$0xff]   ;;  %v2569_v11 = vld [vmem:[%s2560_s12 + $0xd8] ss:$8 sps:$4 sm:$0xff]   ;;  %v2102_v21 = vld [vmem:[%s2560_s12 + $0x94] sm:$0x1]  ;;  %s280_s13 = scalar_lea.vmem %s2869_s6, %s2873_s22 }
  0x12   : > { %2277 = vmatprep.mubr.msk.bf16.mxu1 %vm322_vm1, %v2458_v10  ;;  %v2460_v12 = vld [vmem:[%s2560_s12 + $0x58] ss:$8 sps:$4 sm:$0xff]   ;;  %2317 = vmatprep.mubr.msk.bf16.mxu0 %vm322_vm1, %v2569_v11  ;;  %v2576_v13 = vld [vmem:[%s2560_s12 + $0xe8] ss:$8 sps:$4 sm:$0xff]   ;;  %v2104_v23 = vld [vmem:[%s2560_s12 + $0x9c] sm:$0x1] }
  0x13   : > { %2278 = vmatmul.mubr.msk.bf16.vlgmr.msra.gmra.mrb[0].mxu1 %vm322_vm1, %v2460_v12  ;;  %v2462_v15 = vld [vmem:[%s2560_s12 + $0x68] ss:$8 sps:$4 sm:$0xff]   ;;  %2318 = vmatmul.mubr.msk.bf16.vlgmr.msra.gmra.mrb[0].mxu0 %vm322_vm1, %v2576_v13  ;;  %v2586_v16 = vld [vmem:[%s2560_s12 + $0xf8] ss:$8 sps:$4 sm:$0xff]   ;;  %v1001_v26 = vshll.u32 %v2102_v21, 16  ;;  %v1015_v29 = vshll.u32 %v2104_v23, 16 }
  0x14   : > { %2286 = vmatpush3.bf16.msra.mxu1 %v437_v8  ;;  %2326 = vmatpush3.bf16.msra.mxu0 %v1130_v7  ;;  %v2464_v17 = vld [vmem:[%s2560_s12 + $0x78] ss:$8 sps:$4 sm:$0xff]   ;;  %v2593_v18 = vld [vmem:[%s2560_s12 + $0x108] ss:$8 sps:$4 sm:$0xff]   ;;  %v2106_v37 = vld [vmem:[%s2560_s12 + $0xa4] sm:$0x1] }
  0x15   : > { %2281 = vmatprep.mubr.msk.bf16.mxu1 %vm322_vm1, %v2462_v15  ;;  %2321 = vmatprep.mubr.msk.bf16.mxu0 %vm322_vm1, %v2586_v16  ;;  %v2466_v19 = vld [vmem:[%s2560_s12] ss:$8 sps:$4 sm:$0xff]   ;;  %v2101_v20 = vld [vmem:[%s2560_s12 + $0x90] sm:$0xf]  ;;  %v2103_v22 = vld [vmem:[%s2560_s12 + $0x98] sm:$0xf] }
  0x16   : > { %2445 = vmatprep.subr.msk.bf16.mxu0 %vm335_vm0, %v2134_v6  ;;  %2441 = vmatprep.subr.msk.bf16.mxu1 %vm335_vm0, %v2058_v14  ;;  %v992_v24 = vshrl.u32 %v2101_v20, 16  ;;  %v995_v25 = vshll.u32 %v2101_v20, 16  ;;  %v1006_v27 = vshrl.u32 %v2103_v22, 16  ;;  %v1009_v28 = vshll.u32 %v2103_v22, 16  ;;  %v2105_v36 = vld [vmem:[%s2560_s12 + $0xa0] sm:$0xf] }
  0x17   : > { %v1003_v32 = vrot.slane %v1001_v26, 5  ;;  %v1017_v35 = vrot.slane %v1015_v29, 5  ;;  %v2467_v39 = vld [vmem:[%s2560_s12 + $0x10] ss:$8 sps:$4 sm:$0xff]   ;;  %v2107_v40 = vld [vmem:[%s2560_s12 + $0xa8] sm:$0xf] }
  0x18   : > { %v994_v30 = vrot.slane %v992_v24, 4  ;;  %v997_v31 = vrot.slane %v995_v25, 5  ;;  %v1008_v33 = vrot.slane %v1006_v27, 4  ;;  %v1011_v34 = vrot.slane %v1009_v28, 5  ;;  %v2108_v41 = vld [vmem:[%s2560_s12 + $0xac] sm:$0x1] }
  0x19   : > { %v1020_v42 = vshrl.u32 %v2105_v36, 16  ;;  %v1023_v43 = vshll.u32 %v2105_v36, 16  ;;  %v1029_v46 = vshll.u32 %v2106_v37, 16  ;;  %v1034_v47 = vshrl.u32 %v2107_v40, 16  ;;  %v2468_v56 = vld [vmem:[%s2560_s12 + $0x20] ss:$8 sps:$4 sm:$0xff]  }
  0x1a   : > { %v998_v38 = vor.u32 %v997_v31, %v994_v30  ;;  %v1012_v45 = vor.u32 %v1011_v34, %v1008_v33  ;;  %v1037_v48 = vshll.u32 %v2107_v40, 16  ;;  %v1043_v52 = vshll.u32 %v2108_v41, 16  ;;  %v2109_v0 = vld [vmem:[%s2560_s12 + $0xb0] sm:$0xf]  ;;  %v2110_v1 = vld [vmem:[%s2560_s12 + $0xb4] sm:$0x1] }
  0x1b   : > { %2282 = vmatmul.mubr.msk.bf16.gmra.mrb[4].mxu1 %vm322_vm1, %v2464_v17  ;;  %2322 = vmatmul.mubr.msk.bf16.gmra.mrb[4].mxu0 %vm322_vm1, %v2593_v18  ;;  %v1022_v50 = vrot.slane %v1020_v42, 4  ;;  %v1025_v51 = vrot.slane %v1023_v43, 5  ;;  %v1036_v54 = vrot.slane %v1034_v47, 4  ;;  %v1031_v62 = vrot.slane %v1029_v46, 5  ;;  %v2111_v4 = vld [vmem:[%s2560_s12 + $0xb8] sm:$0xf] }
  0x1c   : > { %2287 = vmatprep.mubr.msk.bf16.mxu1 %vm322_vm1, %v2466_v19  ;;  %v999_v49 = vrot.slane %v998_v38, 4  ;;  %v1013_v53 = vrot.slane %v1012_v45, 4  ;;  %v1039_v55 = vrot.slane %v1037_v48, 5  ;;  %v1045_v63 = vrot.slane %v1043_v52, 5  ;;  %v2112_v5 = vld [vmem:[%s2560_s12 + $0xbc] sm:$0x1] }
  0x1d   : > { %v1026_v61 = vor.u32 %v1025_v51, %v1022_v50  ;;  %v1048_v6 = vshrl.u32 %v2109_v0, 16  ;;  %v1051_v7 = vshll.u32 %v2109_v0, 16  ;;  %v1057_v12 = vshll.u32 %v2110_v1, 16  ;;  %v2469_v24 = vld [vmem:[%s2560_s12 + $0x30] ss:$8 sps:$4 sm:$0xff]  }
  0x1e   : > { %v1004_v60 = vsel %vm2613_vm4, %v999_v49, %v1003_v32  ;;  %v1018_v2 = vsel %vm2613_vm4, %v1013_v53, %v1017_v35  ;;  %v1040_v3 = vor.u32 %v1039_v55, %v1036_v54  ;;  %v1062_v14 = vshrl.u32 %v2111_v4, 16  ;;  %v2113_v30 = vld [vmem:[%s2560_s12 + $0xc0] sm:$0xf]  ;;  %v2114_v31 = vld [vmem:[%s2560_s12 + $0xc4] sm:$0x1] }
  0x1f   : > { %v2118_v8 = vcombine.low %v1004_v60, %v1018_v2  ;;  %v1027_v10 = vrot.slane %v1026_v61, 4  ;;  %v1050_v17 = vrot.slane %v1048_v6, 4  ;;  %v1053_v19 = vrot.slane %v1051_v7, 5  ;;  %v2115_v34 = vld [vmem:[%s2560_s12 + $0xc8] sm:$0xf] }
  0x20   : > { %v1041_v15 = vrot.slane %v1040_v3, 4  ;;  %v1065_v20 = vshll.u32 %v2111_v4, 16  ;;  %v1064_v22 = vrot.slane %v1062_v14, 4  ;;  %v1071_v23 = vshll.u32 %v2112_v5, 16  ;;  %v2116_v35 = vld [vmem:[%s2560_s12 + $0xcc] sm:$0x1] }
  0x21   : > { %2327 = vmatprep.mubr.msk.bf16.mxu0 %vm322_vm1, %v2118_v8  ;;  %v1032_v21 = vsel %vm2613_vm4, %v1027_v10, %v1031_v62  ;;  %v2645_v25 = vsel %vm335_vm0, %v2622_v58, 0  ;;  %v1054_v27 = vor.u32 %v1053_v19, %v1050_v17  ;;  %v1059_v28 = vrot.slane %v1057_v12, 5  ;;  %v504_v41 = vld [vmem:[%s2560_s12] sm:$0xf]  ;;  %v505_v47 = vld [vmem:[%s2560_s12 + $0x4] sm:$0x1] }
  0x22   : > { %v1046_v26 = vsel %vm2613_vm4, %v1041_v15, %v1045_v63  ;;  %v1067_v29 = vrot.slane %v1065_v20, 5  ;;  %v1073_v33 = vrot.slane %v1071_v23, 5  ;;  %v1076_v36 = vshrl.u32 %v2113_v30, 16  ;;  %v506_v52 = vld [vmem:[%s2560_s12 + $0x8] sm:$0xf] }
  0x23   : > { %2288 = vmatmul.mubr.msk.bf16.vlgmr.msra.gmra.mrb[0].mxu1 %vm322_vm1, %v2467_v39  ;;  %v2119_v32 = vcombine.low %v1032_v21, %v1046_v26  ;;  %v1055_v37 = vrot.slane %v1054_v27, 4  ;;  %v1079_v39 = vshll.u32 %v2113_v30, 16  ;;  %v1085_v40 = vshll.u32 %v2114_v31, 16  ;;  %v508_v3 = vld [vmem:[%s2560_s12 + $0x10] sm:$0xf] }
  0x24   : > { %2291 = vmatprep.mubr.msk.bf16.mxu1 %vm322_vm1, %v2468_v56  ;;  %2296 = vmatpush3.bf16.msra.mxu1 %v662_v57  ;;  %v1068_v38 = vor.u32 %v1067_v29, %v1064_v22  ;;  %v1078_v42 = vrot.slane %v1076_v36, 4  ;;  %v1090_v43 = vshrl.u32 %v2115_v34, 16  ;;  %v1093_v45 = vshll.u32 %v2115_v34, 16  ;;  %v507_v56 = vld [vmem:[%s2560_s12 + $0xc] sm:$0x1] }
  0x25   : > { %2442 = vmatprep.subr.msk.bf16.mxu1 %vm335_vm0, %v2627_v59  ;;  %2328 = vmatmul.mubr.msk.bf16.vlgmr.msra.gmra.mrb[0].mxu0 %vm322_vm1, %v2119_v32  ;;  %v1099_v46 = vshll.u32 %v2116_v35, 16  ;;  %v1060_v48 = vsel %vm2613_vm4, %v1055_v37, %v1059_v28  ;;  %v1081_v50 = vrot.slane %v1079_v39, 5  ;;  %v1087_v51 = vrot.slane %v1085_v40, 5  ;;  %v509_v8 = vld [vmem:[%s2560_s12 + $0x14] sm:$0x1] }
  0x26   : > { %2336 = vmatpush3.bf16.msra.mxu0 %v2565_v9  ;;  %v1069_v49 = vrot.slane %v1068_v38, 4  ;;  %v1092_v53 = vrot.slane %v1090_v43, 4  ;;  %v1095_v54 = vrot.slane %v1093_v45, 5  ;;  %v524_v57 = vshrl.u32 %v504_v41, 16  ;;  %v2470_v14 = vld [vmem:[%s2560_s12 + $0x8] ss:$8 sps:$4 sm:$0xff]  }
  0x27   : > { %v1101_v55 = vrot.slane %v1099_v46, 5  ;;  %2446 = vmatprep.subr.msk.bf16.mxu0 %vm335_vm0, %v2622_v58  ;;  %v1082_v60 = vor.u32 %v1081_v50, %v1078_v42  ;;  %v527_v61 = vshll.u32 %v504_v41, 16  ;;  %v533_v62 = vshll.u32 %v505_v47, 16  ;;  %v510_v15 = vld [vmem:[%s2560_s12 + $0x18] sm:$0xf] }
  0x28   : > { %v1074_v9 = vsel %vm2613_vm4, %v1069_v49, %v1073_v33  ;;  %v1096_v0 = vor.u32 %v1095_v54, %v1092_v53  ;;  %v526_v1 = vrot.slane %v524_v57, 4  ;;  %v538_v2 = vshrl.u32 %v506_v52, 16  ;;  %v511_v22 = vld [vmem:[%s2560_s12 + $0x1c] sm:$0x1]  ;;  %v512_v33 = vld [vmem:[%s2560_s12 + $0x20] sm:$0xf] }
  0x29   : > { %v2120_v63 = vcombine.low %v1060_v48, %v1074_v9  ;;  %v1083_v4 = vrot.slane %v1082_v60, 4  ;;  %v529_v5 = vrot.slane %v527_v61, 5  ;;  %v535_v6 = vrot.slane %v533_v62, 5  ;;  %v513_v38 = vld [vmem:[%s2560_s12 + $0x24] sm:$0x1] }
  0x2a   : > { %v541_v7 = vshll.u32 %v506_v52, 16  ;;  %v1097_v58 = vrot.slane %v1096_v0, 4  ;;  %v540_v10 = vrot.slane %v538_v2, 4  ;;  %v547_v12 = vshll.u32 %v507_v56, 16  ;;  %v514_v42 = vld [vmem:[%s2560_s12 + $0x28] sm:$0xf] }
  0x2b   : > { %2292 = vmatmul.mubr.msk.bf16.gmra.mrb[4].mxu1 %vm322_vm1, %v2469_v24  ;;  %2331 = vmatprep.mubr.msk.bf16.mxu0 %vm322_vm1, %v2120_v63  ;;  %v552_v17 = vshrl.u32 %v508_v3, 16  ;;  %v1088_v19 = vsel %vm2613_vm4, %v1083_v4, %v1087_v51  ;;  %v530_v20 = vor.u32 %v529_v5, %v526_v1  ;;  %v555_v23 = vshll.u32 %v508_v3, 16  ;;  %v515_v43 = vld [vmem:[%s2560_s12 + $0x2c] sm:$0x1]  ;;  %v2471_v52 = vld [vmem:[%s2560_s12 + $0x18] ss:$8 sps:$4 sm:$0xff]  }
  0x2c   : > { %v543_v21 = vrot.slane %v541_v7, 5  ;;  %v1102_v24 = vsel %vm2613_vm4, %v1097_v58, %v1101_v55  ;;  %v549_v26 = vrot.slane %v547_v12, 5  ;;  %v561_v28 = vshll.u32 %v509_v8, 16  ;;  %v2472_v60 = vld [vmem:[%s2560_s12 + $0x28] ss:$8 sps:$4 sm:$0xff]  }
  0x2d   : > { %v554_v27 = vrot.slane %v552_v17, 4  ;;  %v2121_v29 = vcombine.low %v1088_v19, %v1102_v24  ;;  %v531_v30 = vrot.slane %v530_v20, 4  ;;  %v557_v32 = vrot.slane %v555_v23, 5  ;;  %v516_v61 = vld [vmem:[%s2560_s12 + $0x30] sm:$0xf] }
  0x2e   : > { %v544_v31 = vor.u32 %v543_v21, %v540_v10  ;;  %v563_v34 = vrot.slane %v561_v28, 5  ;;  %v566_v35 = vshrl.u32 %v510_v15, 16  ;;  %v569_v36 = vshll.u32 %v510_v15, 16  ;;  %v517_v1 = vld [vmem:[%s2560_s12 + $0x34] sm:$0x1] }
  0x2f   : > { %v575_v37 = vshll.u32 %v511_v22, 16  ;;  %2332 = vmatmul.mubr.msk.bf16.gmra.mrb[4].mxu0 %vm322_vm1, %v2121_v29  ;;  %v536_v39 = vsel %vm2613_vm4, %v531_v30, %v535_v6  ;;  %v558_v41 = vor.u32 %v557_v32, %v554_v27  ;;  %v580_v45 = vshrl.u32 %v512_v33, 16  ;;  %v518_v7 = vld [vmem:[%s2560_s12 + $0x38] sm:$0xf]  ;;  %v519_v8 = vld [vmem:[%s2560_s12 + $0x3c] sm:$0x1] }
  0x30   : > { %v545_v40 = vrot.slane %v544_v31, 4  ;;  %2337 = vmatprep.mubr.msk.bf16.mxu0 %vm322_vm1, %v2470_v14  ;;  %v568_v46 = vrot.slane %v566_v35, 4  ;;  %v571_v47 = vrot.slane %v569_v36, 5  ;;  %v583_v49 = vshll.u32 %v512_v33, 16  ;;  %v2176_v58 = vld [vmem:[%s2864_s1 + $0x10] sm:$0x3] }
  0x31   : > { %v577_v48 = vrot.slane %v575_v37, 5  ;;  %v559_v51 = vrot.slane %v558_v41, 4  ;;  %v582_v53 = vrot.slane %v580_v45, 4  ;;  %v589_v54 = vshll.u32 %v513_v38, 16  ;;  %v1714_v28 = vld [vmem:[%s2865_s2] sm:$0x3] }
  0x32   : > { %v550_v50 = vsel %vm2613_vm4, %v545_v40, %v549_v26  ;;  %v572_v56 = vor.u32 %v571_v47, %v568_v46  ;;  %v585_v57 = vrot.slane %v583_v49, 5  ;;  %v594_v9 = vshrl.u32 %v514_v42, 16  ;;  %v2473_v33 = vld [vmem:[%s2560_s12 + $0x38] ss:$8 sps:$4 sm:$0xff]  }
  0x33   : > { %v2059_v55 = vcombine.low %v536_v39, %v550_v50  ;;  %v591_v62 = vrot.slane %v589_v54, 5  ;;  %v597_v63 = vshll.u32 %v514_v42, 16  ;;  %v603_v0 = vshll.u32 %v515_v43, 16  ;;  %v2475_v35 = vld [vmem:[%s2560_s12 + $0x50] ss:$8 sps:$4 sm:$0xff]  }
  0x34   : > { %v781_v2 = vsel %vm335_vm0, %v2627_v59, 0  ;;  %v564_v3 = vsel %vm2613_vm4, %v559_v51, %v563_v34  ;;  %v573_v4 = vrot.slane %v572_v56, 4  ;;  %v586_v5 = vor.u32 %v585_v57, %v582_v53  ;;  %v2474_v47 = vld [vmem:[%s2560_s12 + $0x90] ss:$8 sps:$4 sm:$0xff]   ;;  %v2477_v49 = vld [vmem:[%s2560_s12 + $0x60] ss:$8 sps:$4 sm:$0xff]  }
  0x35   : > { %2297 = vmatprep.mubr.msk.bf16.mxu1 %vm322_vm1, %v2059_v55  ;;  %v596_v6 = vrot.slane %v594_v9, 4  ;;  %v599_v10 = vrot.slane %v597_v63, 5  ;;  %v605_v12 = vrot.slane %v603_v0, 5  ;;  %v608_v14 = vshrl.u32 %v516_v61, 16  ;;  %v2160_v50 = vld [vmem:[%s2560_s12 + $0x8] sm:$0xf] }
  0x36   : > { %v611_v15 = vshll.u32 %v516_v61, 16  ;;  %v578_v59 = vsel %vm2613_vm4, %v573_v4, %v577_v48  ;;  %v587_v17 = vrot.slane %v586_v5, 4  ;;  %v617_v19 = vshll.u32 %v517_v1, 16  ;;  %v2479_v51 = vld [vmem:[%s2560_s12 + $0x70] ss:$8 sps:$4 sm:$0xff]  }
  0x37   : > { %v622_v20 = vshrl.u32 %v518_v7, 16  ;;  %v2060_v21 = vcombine.low %v564_v3, %v578_v59  ;;  %2338 = vmatmul.mubr.msk.bf16.vlgmr.msra.gmra.mrb[0].mxu0 %vm322_vm1, %v2471_v52  ;;  %v600_v22 = vor.u32 %v599_v10, %v596_v6  ;;  %v610_v23 = vrot.slane %v608_v14, 4  ;;  %v2161_v52 = vld [vmem:[%s2560_s12 + $0xc] sm:$0x1]  ;;  %v2162_v53 = vld [vmem:[%s2560_s12 + $0x10] sm:$0xf] }
  0x38   : > { %v613_v24 = vrot.slane %v611_v15, 5  ;;  %2346 = vmatpush3.bf16.msra.mxu0 %v2645_v25  ;;  %2341 = vmatprep.mubr.msk.bf16.mxu0 %vm322_vm1, %v2472_v60  ;;  %v625_v27 = vshll.u32 %v518_v7, 16  ;;  %v592_v29 = vsel %vm2613_vm4, %v587_v17, %v591_v62  ;;  %v631_v32 = vshll.u32 %v519_v8, 16  ;;  %v2163_v54 = vld [vmem:[%s2560_s12 + $0x14] sm:$0x1] }
  0x39   : > { %v624_v26 = vrot.slane %v622_v20, 4  ;;  %2298 = vmatmul.mubr.msk.bf16.vlgmr.msra.gmra.mrb[0].mxu1 %vm322_vm1, %v2060_v21  ;;  %v601_v30 = vrot.slane %v600_v22, 4  ;;  %2447 = vmatprep.subr.msk.bf16.mxu0 %vm335_vm0, %v2176_v58  ;;  %v619_v25 = vrot.slane %v617_v19, 5  ;;  %v1598_v43 = vsel %vm335_vm0, %v2176_v58, 0  ;;  %v2164_v60 = vld [vmem:[%s2560_s12 + $0x18] sm:$0xf] }
  0x3a   : > { %v614_v31 = vor.u32 %v613_v24, %v610_v23  ;;  %v627_v34 = vrot.slane %v625_v27, 5  ;;  %2306 = vmatpush3.bf16.msra.mxu1 %v781_v2  ;;  %v633_v40 = vrot.slane %v631_v32, 5  ;;  %v2725_v45 = vsel %vm335_vm0, %v1714_v28, 0  ;;  %v2165_v63 = vld [vmem:[%s2560_s12 + $0x1c] sm:$0x1] }
  0x3b   : > { %v606_v36 = vsel %vm2613_vm4, %v601_v30, %v605_v12  ;;  %2448 = vmatprep.subr.msk.bf16.mxu1 %vm335_vm0, %v1714_v28  ;;  %v1460_v55 = vshrl.u32 %v2160_v50, 16  ;;  %v1463_v56 = vshll.u32 %v2160_v50, 16  ;;  %v1469_v57 = vshll.u32 %v2161_v52, 16  ;;  %v2166_v0 = vld [vmem:[%s2560_s12 + $0x20] sm:$0xf] }
  0x3c   : > { %v615_v37 = vrot.slane %v614_v31, 4  ;;  %v2061_v38 = vcombine.low %v592_v29, %v606_v36  ;;  %v628_v39 = vor.u32 %v627_v34, %v624_v26  ;;  %v1474_v9 = vshrl.u32 %v2162_v53, 16  ;;  %v2476_v1 = vld [vmem:[%s2560_s12 + $0xa0] ss:$8 sps:$4 sm:$0xff]   ;;  %v2167_v6 = vld [vmem:[%s2560_s12 + $0x24] sm:$0x1] }
  0x3d   : > { %v1477_v61 = vshll.u32 %v2162_v53, 16  ;;  %v1483_v62 = vshll.u32 %v2163_v54, 16  ;;  %v1462_v2 = vrot.slane %v1460_v55, 4  ;;  %v1465_v3 = vrot.slane %v1463_v56, 5  ;;  %v2478_v7 = vld [vmem:[%s2560_s12 + $0xb0] ss:$8 sps:$4 sm:$0xff]  }
  0x3e   : > { %2301 = vmatprep.mubr.msk.bf16.mxu1 %vm322_vm1, %v2061_v38  ;;  %v620_v41 = vsel %vm2613_vm4, %v615_v37, %v619_v25  ;;  %v629_v42 = vrot.slane %v628_v39, 4  ;;  %v1471_v4 = vrot.slane %v1469_v57, 5  ;;  %v1476_v5 = vrot.slane %v1474_v9, 4  ;;  %v2168_v19 = vld [vmem:[%s2560_s12 + $0x28] sm:$0xf] }
  0x3f   : > { %2342 = vmatmul.mubr.msk.bf16.gmra.mrb[4].mxu0 %vm322_vm1, %v2473_v33  ;;  %v1479_v8 = vrot.slane %v1477_v61, 5  ;;  %v1485_v58 = vrot.slane %v1483_v62, 5  ;;  %v1488_v10 = vshrl.u32 %v2164_v60, 16  ;;  %v1491_v12 = vshll.u32 %v2164_v60, 16  ;;  %v2169_v24 = vld [vmem:[%s2560_s12 + $0x2c] sm:$0x1] }
  0x40   : > { %v634_v46 = vsel %vm2613_vm4, %v629_v42, %v633_v40  ;;  %2347 = vmatprep.mubr.msk.bf16.mxu0 %vm322_vm1, %v2475_v35  ;;  %v1466_v14 = vor.u32 %v1465_v3, %v1462_v2  ;;  %v1497_v15 = vshll.u32 %v2165_v63, 16  ;;  %v1502_v59 = vshrl.u32 %v2166_v0, 16  ;;  %v2170_v30 = vld [vmem:[%s2560_s12 + $0x30] sm:$0xf]  ;;  %v2481_v34 = vld [vmem:[%s2560_s12 + $0x80] ss:$8 sps:$4 sm:$0xff]  }
  0x41   : > { %v2062_v48 = vcombine.low %v620_v41, %v634_v46  ;;  %v1505_v17 = vshll.u32 %v2166_v0, 16  ;;  %v1480_v20 = vor.u32 %v1479_v8, %v1476_v5  ;;  %v1490_v21 = vrot.slane %v1488_v10, 4  ;;  %v2171_v37 = vld [vmem:[%s2560_s12 + $0x34] sm:$0x1]  ;;  %v2172_v46 = vld [vmem:[%s2560_s12 + $0x38] sm:$0xf] }
  0x42   : > { %v1493_v22 = vrot.slane %v1491_v12, 5  ;;  %v1511_v23 = vshll.u32 %v2167_v6, 16  ;;  %v1467_v26 = vrot.slane %v1466_v14, 4  ;;  %v1499_v27 = vrot.slane %v1497_v15, 5  ;;  %v2174_v55 = vld [vmem:[%s2560_s12 + $0x40] sm:$0xf] }
  0x43   : > { %2302 = vmatmul.mubr.msk.bf16.gmra.mrb[4].mxu1 %vm322_vm1, %v2062_v48  ;;  %v1504_v28 = vrot.slane %v1502_v59, 4  ;;  %v1507_v29 = vrot.slane %v1505_v17, 5  ;;  %v1481_v31 = vrot.slane %v1480_v20, 4  ;;  %v1516_v25 = vshrl.u32 %v2168_v19, 16  ;;  %v2175_v9 = vld [vmem:[%s2560_s12 + $0x44] sm:$0x1] }
  0x44   : > { %2307 = vmatprep.mubr.msk.bf16.mxu1 %vm322_vm1, %v2474_v47  ;;  %v1494_v32 = vor.u32 %v1493_v22, %v1490_v21  ;;  %v1513_v33 = vrot.slane %v1511_v23, 5  ;;  %v1472_v35 = vsel %vm2613_vm4, %v1467_v26, %v1471_v4  ;;  %v1519_v38 = vshll.u32 %v2168_v19, 16  ;;  %v2480_v47 = vld [vmem:[%s2560_s12 + $0xc0] ss:$8 sps:$4 sm:$0xff]  }
  0x45   : > { %v1508_v36 = vor.u32 %v1507_v29, %v1504_v28  ;;  %v1525_v39 = vshll.u32 %v2169_v24, 16  ;;  %v1486_v40 = vsel %vm2613_vm4, %v1481_v31, %v1485_v58  ;;  %v1518_v42 = vrot.slane %v1516_v25, 4 }
  0x46   : > { %v1495_v41 = vrot.slane %v1494_v32, 4  ;;  %v2177_v48 = vcombine.low %v1472_v35, %v1486_v40  ;;  %v1521_v50 = vrot.slane %v1519_v38, 5  ;;  %v1533_v53 = vshll.u32 %v2170_v30, 16 }
  0x47   : > { %2348 = vmatmul.mubr.msk.bf16.vlgmr.msra.gmra.mrb[0].mxu0 %vm322_vm1, %v2477_v49  ;;  %v1509_v49 = vrot.slane %v1508_v36, 4  ;;  %v1539_v54 = vshll.u32 %v2171_v37, 16  ;;  %v1527_v57 = vrot.slane %v1525_v39, 5  ;;  %v1544_v60 = vshrl.u32 %v2172_v46, 16 }
  0x48   : > { %2356 = vmatpush3.bf16.msra.mxu0 %v1598_v43  ;;  %2351 = vmatprep.mubr.msk.bf16.mxu0 %vm322_vm1, %v2479_v51  ;;  %v1530_v43 = vshrl.u32 %v2170_v30, 16  ;;  %v2173_v51 = vld [vmem:[%s2560_s12 + $0x3c] sm:$0x1]  ;;  %v1522_v56 = vor.u32 %v1521_v50, %v1518_v42  ;;  %v1547_v61 = vshll.u32 %v2172_v46, 16  ;;  %v1535_v63 = vrot.slane %v1533_v53, 5 }
  0x49   : > { %v1514_v62 = vsel %vm2613_vm4, %v1509_v49, %v1513_v33  ;;  %v1553_v0 = vshll.u32 %v2173_v51, 16  ;;  %v1546_v2 = vrot.slane %v1544_v60, 4  ;;  %v1558_v4 = vshrl.u32 %v2174_v55, 16 }
  0x4a   : > { %v1532_v52 = vrot.slane %v1530_v43, 4  ;;  %v1549_v3 = vrot.slane %v1547_v61, 5  ;;  %v1541_v6 = vrot.slane %v1539_v54, 5  ;;  %v1567_v8 = vshll.u32 %v2175_v9, 16 }
  0x4b   : > { %2308 = vmatmul.mubr.msk.bf16.vlgmr.msra.gmra.mrb[0].mxu1 %vm322_vm1, %v2476_v1  ;;  %v1523_v1 = vrot.slane %v1522_v56, 4  ;;  %v1560_v12 = vrot.slane %v1558_v4, 4  ;;  %v1555_v59 = vrot.slane %v1553_v0, 5 }
  0x4c   : > { %2311 = vmatprep.mubr.msk.bf16.mxu1 %vm322_vm1, %v2478_v7  ;;  %2366 = vmatpush3.bf16.msra.mxu1 %v2725_v45  ;;  %v1500_v45 = vsel %vm2613_vm4, %v1495_v41, %v1499_v27  ;;  %v1536_v5 = vor.u32 %v1535_v63, %v1532_v52  ;;  %v1561_v7 = vshll.u32 %v2174_v55, 16  ;;  %v1550_v10 = vor.u32 %v1549_v3, %v1546_v2 }
  0x4d   : > { %v2178_v58 = vcombine.low %v1500_v45, %v1514_v62  ;;  %v1528_v14 = vsel %vm2613_vm4, %v1523_v1, %v1527_v57  ;;  %v1569_v22 = vrot.slane %v1567_v8, 5 }
  0x4e   : > { %v1537_v15 = vrot.slane %v1536_v5, 4  ;;  %v1563_v17 = vrot.slane %v1561_v7, 5  ;;  %v1551_v19 = vrot.slane %v1550_v10, 4 }
  0x4f   : > { %2352 = vmatmul.mubr.msk.bf16.gmra.mrb[4].mxu0 %vm322_vm1, %v2481_v34 }
  0x50   : > { %2357 = vmatprep.mubr.msk.bf16.mxu0 %vm322_vm1, %v2177_v48  ;;  %v1542_v20 = vsel %vm2613_vm4, %v1537_v15, %v1541_v6  ;;  %v1564_v21 = vor.u32 %v1563_v17, %v1560_v12  ;;  %v1556_v24 = vsel %vm2613_vm4, %v1551_v19, %v1555_v59 }
  0x51   : > { %v2179_v23 = vcombine.low %v1528_v14, %v1542_v20 }
  0x52   : > { %v1565_v26 = vrot.slane %v1564_v21, 4 }
  0x53   : > { %2312 = vmatmul.mubr.msk.bf16.gmra.mrb[4].mxu1 %vm322_vm1, %v2480_v47 }
  0x54   : > { %2367 = vmatprep.mubr.msk.bf16.mxu1 %vm322_vm1, %v2569_v11  ;;  %v1570_v27 = vsel %vm2613_vm4, %v1565_v26, %v1569_v22 }
  0x55   : > { %v2180_v11 = vcombine.low %v1556_v24, %v1570_v27 }
  0x57   : > { %2358 = vmatmul.mubr.msk.bf16.vlgmr.msra.gmra.mrb[0].mxu0 %vm322_vm1, %v2178_v58 }
  0x58   : > { %2361 = vmatprep.mubr.msk.bf16.mxu0 %vm322_vm1, %v2179_v23 }
  0x5b   : > { %2368 = vmatmul.mubr.msk.bf16.vlgmr.msra.gmra.mrb[8].mxu1 %vm322_vm1, %v2576_v13 }
  0x5c   : > { %2371 = vmatprep.mubr.msk.bf16.mxu1 %vm322_vm1, %v2586_v16 }
  0x5f   : > { %2362 = vmatmul.mubr.msk.bf16.gmra.mrb[4].mxu0 %vm322_vm1, %v2180_v11 }
  0x63   : > { %2372 = vmatmul.mubr.msk.bf16.gmra.mrb[12].mxu1 %vm322_vm1, %v2593_v18 }
 0x11e   : > { %v2309_v28 = vpop.f32.mrb[0].mxu1 }
 0x11f   : > { %v817_v29 = vpop.f32.mrb[1].mxu1 }
 0x120   : > { %v2310_v30 = vpop.f32.mrb[2].mxu1 }
 0x121   : > { %v820_v31 = vpop.f32.mrb[3].mxu1 }
 0x126   : > { %v2313_v32 = vpop.f32.mrb[4].mxu1 }
 0x127   : > { %v833_v33 = vpop.f32.mrb[5].mxu1 }
 0x128   : > { %v2314_v44 = vpop.f32.mrb[6].mxu1 }
 0x129   : > { %v2790_v25 = vpop.f32.mrb[7].mxu1 }
 0x12a   : > { %v2359_v34 = vpop.f32.mrb[0].mxu0 }
 0x12b   : > { %v2375_v13 = vadd.f32 %v2359_v34, %v2309_v28  ;;  %v1634_v35 = vpop.f32.mrb[1].mxu0 }
 0x12c   : > { %v2376_v16 = vadd.f32 %v1634_v35, %v817_v29  ;;  %v2360_v18 = vpop.f32.mrb[2].mxu0 }
 0x12d   : > { %v2211_v36 = vpack.c.bf16 %v2375_v13, %v2375_v13  ;;  %v2377_v37 = vadd.f32 %v2360_v18, %v2310_v30  ;;  %v1637_v38 = vpop.f32.mrb[3].mxu0 }
 0x12e   : > { %v2209_v39 = vpack.c.bf16 %v2376_v16, %v2376_v16  ;;  %v2378_v40 = vadd.f32 %v1637_v38, %v820_v31  ;;  %v2369_v41 = vpop.f32.mrb[8].mxu1 }
 0x12f   : > { %1708 = vst.msk [vmem:[%s2796_s28 + $0x8] sm:$0xf] %vm1705_vm5, %v2211_v36  ;;  %v1674_v42 = vpack.c.bf16 %v2377_v37, %v2375_v13  ;;  %v2212_v43 = vpack.c.bf16 %v2377_v37, %v2377_v37  ;;  %v2219_v46 = vpack.c.bf16 %v2369_v41, %v2369_v41  ;;  %v1752_v47 = vpop.f32.mrb[9].mxu1 }
 0x130   : > { %1706 = vst.msk [vmem:[%s2796_s28] sm:$0xf] %vm1705_vm5, %v2209_v39  ;;  %v1673_v48 = vpack.c.bf16 %v2378_v40, %v2376_v16  ;;  %v2210_v49 = vpack.c.bf16 %v2378_v40, %v2378_v40  ;;  %v2217_v50 = vpack.c.bf16 %v1752_v47, %v1752_v47  ;;  %v2370_v51 = vpop.f32.mrb[10].mxu1 }
 0x131   : > { %1709 = vst.msk [vmem:[%s2796_s28 + $0xc] sm:$0xf] %vm1705_vm5, %v2212_v43  ;;  %v1825_v52 = vunpack.c.l.bf16 %v1674_v42  ;;  %v1826_v53 = vunpack.c.h.bf16 %v1674_v42  ;;  %1817 = vst.msk [vmem:[%s2801_s7 + $0x8] sm:$0xf] %vm1705_vm5, %v2219_v46  ;;  %v2220_v54 = vpack.c.bf16 %v2370_v51, %v2370_v51  ;;  %v1755_v55 = vpop.f32.mrb[11].mxu1 }
 0x132   : > { %1707 = vst.msk [vmem:[%s2796_s28 + $0x4] sm:$0xf] %vm1705_vm5, %v2210_v49  ;;  %v1823_v56 = vunpack.c.l.bf16 %v1673_v48  ;;  %v1824_v57 = vunpack.c.h.bf16 %v1673_v48  ;;  %v2363_v9 = vpop.f32.mrb[4].mxu0  ;;  %1815 = vst.msk [vmem:[%s2801_s7] sm:$0xf] %vm1705_vm5, %v2217_v50  ;;  %v2218_v60 = vpack.c.bf16 %v1755_v55, %v1755_v55 }
 0x133   : > { %v1835_v61 = vsel %vm1831_vm6, %v1825_v52, 0.0  ;;  %v1837_v45 = vsel %vm1831_vm6, %v1826_v53, 0.0  ;;  %v1857_v62 = vmul.f32 %v1825_v52, %v1825_v52  ;;  %v1650_v63 = vpop.f32.mrb[5].mxu0  ;;  %1818 = vst.msk [vmem:[%s2801_s7 + $0xc] sm:$0xf] %vm1705_vm5, %v2220_v54  ;;  %v1858_v5 = vmul.f32 %v1826_v53, %v1826_v53 }
 0x134   : > { %v1832_v0 = vsel %vm1831_vm6, %v1823_v56, 0.0  ;;  %v1833_v1 = vsel %vm1831_vm6, %v1824_v57, 0.0  ;;  %v1855_v2 = vmul.f32 %v1823_v56, %v1823_v56  ;;  %v1856_v3 = vmul.f32 %v1824_v57, %v1824_v57  ;;  %v2364_v4 = vpop.f32.mrb[6].mxu0  ;;  %1816 = vst.msk [vmem:[%s2801_s7 + $0x4] sm:$0xf] %vm1705_vm5, %v2218_v60 }
 0x135   : > { %v1866_v6 = vsel %vm1831_vm6, %v1857_v62, 0.0  ;;  %v1834_v7 = vadd.f32 %v1833_v1, %v1832_v0  ;;  %v2379_v8 = vadd.f32 %v2363_v9, %v2313_v32  ;;  %v1653_v58 = vpop.f32.mrb[7].mxu0  ;;  %v2380_v14 = vadd.f32 %v1650_v63, %v833_v33 }
 0x136   : > { %v1863_v10 = vsel %vm1831_vm6, %v1855_v2, 0.0  ;;  %v1864_v12 = vsel %vm1831_vm6, %v1856_v3, 0.0  ;;  %v2381_v15 = vadd.f32 %v2364_v4, %v2314_v44  ;;  %v2373_v59 = vpop.f32.mrb[12].mxu1  ;;  %v2382_v21 = vadd.f32 %v1653_v58, %v2790_v25 }
 0x137   : > { %v1836_v17 = vadd.f32 %v1835_v61, %v1834_v7  ;;  %v1865_v19 = vadd.f32 %v1864_v12, %v1863_v10  ;;  %v2215_v20 = vpack.c.bf16 %v2379_v8, %v2379_v8  ;;  %v1768_v22 = vpop.f32.mrb[13].mxu1  ;;  %v2213_v23 = vpack.c.bf16 %v2380_v14, %v2380_v14 }
 0x138   : > { %v1676_v24 = vpack.c.bf16 %v2381_v15, %v2379_v8  ;;  %v2216_v26 = vpack.c.bf16 %v2381_v15, %v2381_v15  ;;  %v2223_v27 = vpack.c.bf16 %v2373_v59, %v2373_v59  ;;  %v2374_v11 = vpop.f32.mrb[14].mxu1  ;;  %v1675_v29 = vpack.c.bf16 %v2382_v21, %v2380_v14 }
 0x139   : > { %v1867_v28 = vadd.f32 %v1866_v6, %v1865_v19  ;;  %1712 = vst.msk [vmem:[%s2796_s28 + $0x18] sm:$0xf] %vm1705_vm5, %v2215_v20  ;;  %v2214_v30 = vpack.c.bf16 %v2382_v21, %v2382_v21  ;;  %v1838_v31 = vadd.f32 %v1837_v45, %v1836_v17  ;;  %v1771_v32 = vpop.f32.mrb[15].mxu1  ;;  %v1868_v33 = vsel %vm1831_vm6, %v1858_v5, 0.0  ;;  %1710 = vst.msk [vmem:[%s2796_s28 + $0x10] sm:$0xf] %vm1705_vm5, %v2213_v23 }
 0x13a   : > { %1713 = vst.msk [vmem:[%s2796_s28 + $0x1c] sm:$0xf] %vm1705_vm5, %v2216_v26  ;;  %v1829_v44 = vunpack.c.l.bf16 %v1676_v24  ;;  %1821 = vst.msk [vmem:[%s2801_s7 + $0x18] sm:$0xf] %vm1705_vm5, %v2223_v27  ;;  %v2221_v25 = vpack.c.bf16 %v1768_v22, %v1768_v22  ;;  %v2224_v34 = vpack.c.bf16 %v2374_v11, %v2374_v11  ;;  %v1827_v13 = vunpack.c.l.bf16 %v1675_v29 }
 0x13b   : > { %1711 = vst.msk [vmem:[%s2796_s28 + $0x14] sm:$0xf] %vm1705_vm5, %v2214_v30  ;;  %v1828_v35 = vunpack.c.h.bf16 %v1675_v29  ;;  %v1869_v16 = vadd.f32 %v1868_v33, %v1867_v28  ;;  %v2222_v18 = vpack.c.bf16 %v1771_v32, %v1771_v32  ;;  %v1830_v36 = vunpack.c.h.bf16 %v1676_v24 }
 0x13c   : > { %1819 = vst.msk [vmem:[%s2801_s7 + $0x10] sm:$0xf] %vm1705_vm5, %v2221_v25  ;;  %1822 = vst.msk [vmem:[%s2801_s7 + $0x1c] sm:$0xf] %vm1705_vm5, %v2224_v34  ;;  %v1839_v37 = vsel %vm1831_vm6, %v1827_v13, 0.0  ;;  %v1859_v38 = vmul.f32 %v1827_v13, %v1827_v13  ;;  %v1861_v41 = vmul.f32 %v1829_v44, %v1829_v44  ;;  %v1843_v48 = vsel %vm1831_vm6, %v1829_v44, 0.0 }
 0x13d   : > { %v1860_v39 = vmul.f32 %v1828_v35, %v1828_v35  ;;  %1820 = vst.msk [vmem:[%s2801_s7 + $0x14] sm:$0xf] %vm1705_vm5, %v2222_v18  ;;  %v1840_v40 = vadd.f32 %v1839_v37, %v1838_v31  ;;  %v1841_v42 = vsel %vm1831_vm6, %v1828_v35, 0.0  ;;  %v1862_v49 = vmul.f32 %v1830_v36, %v1830_v36 }
 0x13e   : > { %v1870_v43 = vsel %vm1831_vm6, %v1859_v38, 0.0  ;;  %v1845_v53 = vsel %vm1831_vm6, %v1830_v36, 0.0  ;;  %v1874_v54 = vsel %vm1831_vm6, %v1861_v41, 0.0 }
 0x13f   : > { %v1842_v46 = vadd.f32 %v1841_v42, %v1840_v40  ;;  %v1871_v47 = vadd.f32 %v1870_v43, %v1869_v16  ;;  %v1872_v50 = vsel %vm1831_vm6, %v1860_v39, 0.0  ;;  %v1876_v57 = vsel %vm1831_vm6, %v1862_v49, 0.0 }
 0x141   : > { %v1844_v51 = vadd.f32 %v1843_v48, %v1842_v46  ;;  %v1873_v52 = vadd.f32 %v1872_v50, %v1871_v47 }
 0x143   : > { %v1846_v55 = vadd.f32 %v1845_v53, %v1844_v51  ;;  %v1875_v56 = vadd.f32 %v1874_v54, %v1873_v52 }
 0x145   : > { %v1847_v9 = vrot.slane %v1846_v55, 4  ;;  %v1877_v60 = vadd.f32 %v1876_v57, %v1875_v56 }
 0x147   : > { %v1848_v61 = vadd.f32 %v1847_v9, %v1846_v55  ;;  %v1878_v45 = vrot.slane %v1877_v60, 4 }
 0x149   : > { %v1849_v62 = vrot.slane %v1848_v61, 2  ;;  %v1879_v63 = vadd.f32 %v1878_v45, %v1877_v60 }
 0x14b   : > { %v1850_v0 = vadd.f32 %v1849_v62, %v1848_v61  ;;  %v1880_v1 = vrot.slane %v1879_v63, 2 }
 0x14d   : > { %v1851_v2 = vrot.slane %v1850_v0, 1  ;;  %v1881_v3 = vadd.f32 %v1880_v1, %v1879_v63 }
 0x14f   : > { %v1852_v4 = vadd.f32 %v1851_v2, %v1850_v0  ;;  %v1882_v5 = vrot.slane %v1881_v3, 1 }
 0x151   : > { %1854 = vst.msk [vmem:[%s277_s10] sm:$0x1] %vm1853_vm7, %v1852_v4  ;;  %v1883_v6 = vadd.f32 %v1882_v5, %v1881_v3 }
 0x153   : > { %1884 = vst.msk [vmem:[%s280_s13] sm:$0x1] %vm1853_vm7, %v1883_v6 }
 0x154 PF: > { %s17_s21 = sadd.s32 1, %s2488_s21  }
 0x155   : > { %p14_p4 = scmp.ge.s32.totalorder %s17_s21, 4  }
 0x157   :  { %16 = sbr.rel (!%p14_p4) target bundleno = 1 (0x1), region = 111 }

// kernel: network_block_forward.15
= control target key start
LH: loop header
LB: loop body
LE: loop exit
PB: predicated region body
PF: predicated region fallthrough
CT: control target
= control target key end

     0   :  { %s2386_s15 = smov 0   ;;  %s2938_s0 = inlined_call_operand.vmem [shape: bf16[2,1,10,10,8], index: 0, kind: input, shape index: {}]   ;;  %s2939_s1 = inlined_call_operand.vmem [shape: bf16[9,8,8], index: 1, kind: input, shape index: {}]   ;;  %s2940_s2 = inlined_call_operand.vmem [shape: bf16[2,8,8,8], index: 2, kind: output, shape index: {0}]   ;;  %s2941_s3 = inlined_call_operand.vmem [shape: f32[2,1,8], index: 3, kind: output, shape index: {1}]   ;;  %s2942_s4 = inlined_call_operand.vmem [shape: f32[2,1,8], index: 4, kind: output, shape index: {2}]  }
   0x1 LB: > { %s1926_s16 = sadd.s32 4294967295, %s2359_s15   ;;  %p1930_p0 = scmp.ge.s32.totalorder %s2359_s15, 1  ;;  %s2359_s15 = sphi %s2386_s15, %s15_s15  }
   0x2   : > { %p167_p1 = scmp.lt.s32.totalorder %s2359_s15, 3 }
   0x4   : > { %p168_p2 = pnand %p1930_p0, %p167_p1 }
   0x5   : > { %v1934_v0 = vld [vmem:[%s2939_s1 + $0x4] sm:$0xf] (!%p168_p2)  ;;  %vm375_vm0 = vcmask (!%p168_p2), 1043456   ;;  %v2400_v1 = vld [vmem:[%s2939_s1 + $0x10] sm:$0xf] (!%p168_p2)  ;;  %p199_p3 = scmp.lt.s32.totalorder (!%p168_p2), %s1926_s16, 1 }
   0x6   : > { %171 = sbr.rel (%p168_p2) target bundleno = 359 (0x167), region = 28  ;;  %2322 = vmatprep.subr.msk.bf16.mxu1 (!%p168_p2), %vm375_vm0, %v1934_v0  ;;  %2326 = vmatprep.subr.msk.bf16.mxu0 (!%p168_p2), %vm375_vm0, %v2400_v1  ;;  %v377_v2 = vsel (!%p168_p2), %vm375_vm0, %v1934_v0, 0  ;;  %v2408_v3 = vsel (!%p168_p2), %vm375_vm0, %v2400_v1, 0  ;;  %v224_v4 = vld [vmem:[%s2939_s1] sm:$0xf] (!%p168_p2)  ;;  %vm362_vm3 = vcmask (!%p168_p2), 64512  }
   0x7   : > { %2167 = vmatpush3.bf16.msra.mxu1 (!%p168_p2), %v377_v2  ;;  %2207 = vmatpush3.bf16.msra.mxu0 (!%p168_p2), %v2408_v3  ;;  %v2026_v5 = vld [vmem:[%s2939_s1 + $0x14] sm:$0xf] (!%p168_p2)  ;;  %vm233_vm1 = vsmask.f32 (!%p168_p2), 3328  ;;  %vm234_vm2 = vsmask.f32 (!%p168_p2), 7440 }
   0x8   : > { %2323 = vmatprep.subr.msk.bf16.mxu1 (!%p168_p2), %vm375_vm0, %v224_v4  ;;  %2328 = vmatprep.subr.msk.bf16.mxu0 (!%p168_p2), %vm375_vm0, %v2026_v5  ;;  %v2447_v17 = vsel (!%p168_p2), %vm375_vm0, %v224_v4, 0  ;;  %v2460_v31 = vld [vmem:[%s2939_s1 + $0x18] sm:$0xf] (!%p168_p2)  ;;  %vm2464_vm4 = vmor (!%p168_p2), %vm233_vm1, %vm234_vm2  ;;  %v2476_v42 = vsel (!%p168_p2), %vm375_vm0, %v2026_v5, 0  ;;  %vm568_vm5 = vcmask (!%p168_p2), 1042432   ;;  %vm569_vm6 = vcmask (!%p168_p2), 1046532  }
   0x9   : > { %v2483_v47 = vsel (!%p168_p2), %vm375_vm0, %v2460_v31, 0  ;;  %vm2575_vm7 = vmor (!%p168_p2), %vm568_vm5, %vm569_vm6  ;;  %vm1751_vm8 = vcmask (!%p168_p2), 60416   ;;  %vm1789_vm9 = vcmask (!%p168_p2), 57344  }
   0xd   : > { %s2948_s16 = smov (!%p199_p3, %s1926_s16), 1 }
   0xe   : > { %s2332_s25 = smul.u32 80, %s2948_s16  ;;  %s2112_s13 = sshll.u32 %s2948_s16, 5 }
   0xf   : > { %s2893_s18 = scalar_lea.vmem %s2940_s2, %s2112_s13  ;;  %s211_s21 = scalar_lea.vmem %s2941_s3, %s2948_s16 }
  0x10   : > { %s2425_s28 = scalar_lea.vmem %s2938_s0, %s2332_s25  ;;  %s214_s24 = scalar_lea.vmem %s2942_s4, %s2948_s16 }
  0x11   : > { %v2428_v6 = vld [vmem:[%s2425_s28] sm:$0xf]  ;;  %v2431_v7 = vld [vmem:[%s2425_s28 + $0x8] sm:$0xf]  ;;  %v2434_v8 = vld [vmem:[%s2425_s28 + $0x4] sm:$0x1] }
  0x12   : > { %v2437_v9 = vld [vmem:[%s2425_s28 + $0xc] sm:$0x1]  ;;  %v237_v10 = vshrl.u32 %v2428_v6, 16  ;;  %v240_v11 = vshll.u32 %v2428_v6, 16  ;;  %v246_v12 = vshll.u32 %v2434_v8, 16  ;;  %v251_v13 = vshrl.u32 %v2431_v7, 16 }
  0x13   : > { %v254_v14 = vshll.u32 %v2431_v7, 16  ;;  %v260_v15 = vshll.u32 %v2437_v9, 16  ;;  %v1985_v16 = vld [vmem:[%s2425_s28 + $0x8] sm:$0xf]  ;;  %v2450_v22 = vld [vmem:[%s2425_s28 + $0xc] sm:$0x1] }
  0x14   : > { %v239_v18 = vrot.slane %v237_v10, 4  ;;  %v242_v19 = vrot.slane %v240_v11, 5  ;;  %v248_v20 = vrot.slane %v246_v12, 5  ;;  %v253_v21 = vrot.slane %v251_v13, 4  ;;  %v1987_v25 = vld [vmem:[%s2425_s28 + $0x10] sm:$0xf] }
  0x15   : > { %v256_v23 = vrot.slane %v254_v14, 5  ;;  %v262_v24 = vrot.slane %v260_v15, 5  ;;  %v2454_v26 = vld [vmem:[%s2425_s28 + $0x14] sm:$0x1]  ;;  %v841_v28 = vshrl.u32 %v1985_v16, 16  ;;  %v844_v29 = vshll.u32 %v1985_v16, 16 }
  0x16   : > { %v243_v27 = vor.u32 %v242_v19, %v239_v18  ;;  %v850_v30 = vshll.u32 %v2450_v22, 16  ;;  %v855_v34 = vshrl.u32 %v1987_v25, 16  ;;  %v858_v35 = vshll.u32 %v1987_v25, 16  ;;  %v2470_v37 = vld [vmem:[%s2425_s28 + $0x10] sm:$0xf] }
  0x17   : > { %v257_v33 = vor.u32 %v256_v23, %v253_v21  ;;  %v864_v36 = vshll.u32 %v2454_v26, 16  ;;  %v843_v39 = vrot.slane %v841_v28, 4  ;;  %v846_v40 = vrot.slane %v844_v29, 5  ;;  %v2473_v41 = vld [vmem:[%s2425_s28 + $0x18] sm:$0xf] }
  0x18   : > { %v244_v38 = vrot.slane %v243_v27, 4  ;;  %v857_v44 = vrot.slane %v855_v34, 4  ;;  %v860_v45 = vrot.slane %v858_v35, 5  ;;  %v2479_v46 = vld [vmem:[%s2425_s28 + $0x14] sm:$0x1]  ;;  %v852_v50 = vrot.slane %v850_v30, 5 }
  0x19   : > { %v258_v43 = vrot.slane %v257_v33, 4  ;;  %v847_v49 = vor.u32 %v846_v40, %v843_v39  ;;  %v866_v51 = vrot.slane %v864_v36, 5  ;;  %v2490_v54 = vld [vmem:[%s2425_s28 + $0x1c] sm:$0x1]  ;;  %v265_v55 = vshrl.u32 %v2470_v37, 16 }
  0x1a   : > { %v249_v48 = vsel %vm2464_vm4, %v244_v38, %v248_v20  ;;  %v861_v53 = vor.u32 %v860_v45, %v857_v44  ;;  %v268_v56 = vshll.u32 %v2470_v37, 16  ;;  %v274_v59 = vshll.u32 %v2479_v46, 16  ;;  %v1989_v2 = vld [vmem:[%s2425_s28 + $0x18] sm:$0xf]  ;;  %v2504_v12 = vld [vmem:[%s2425_s28 + $0x1c] sm:$0x1] }
  0x1b   : > { %v263_v52 = vsel %vm2464_vm4, %v258_v43, %v262_v24  ;;  %v848_v58 = vrot.slane %v847_v49, 4  ;;  %v279_v60 = vshrl.u32 %v2473_v41, 16  ;;  %v267_v62 = vrot.slane %v265_v55, 4  ;;  %v1991_v18 = vld [vmem:[%s2425_s28 + $0x20] sm:$0xf] }
  0x1c   : > { %v1935_v57 = vcombine.low %v249_v48, %v263_v52  ;;  %v862_v61 = vrot.slane %v861_v53, 4  ;;  %v270_v63 = vrot.slane %v268_v56, 5  ;;  %v282_v0 = vshll.u32 %v2473_v41, 16  ;;  %v2510_v19 = vld [vmem:[%s2425_s28 + $0x24] sm:$0x1] }
  0x1d   : > { %v853_v4 = vsel %vm2464_vm4, %v848_v58, %v852_v50  ;;  %v1080_v5 = vrot.slane %v2450_v22, 5  ;;  %v281_v10 = vrot.slane %v279_v60, 4  ;;  %v288_v11 = vshll.u32 %v2490_v54, 16  ;;  %v2517_v36 = vld [vmem:[%s2425_s28 + $0x20] sm:$0xf] }
  0x1e   : > { %2168 = vmatprep.mubr.msk.bf16.mxu1 %vm362_vm3, %v1935_v57  ;;  %v867_v13 = vsel %vm2464_vm4, %v862_v61, %v866_v51  ;;  %v271_v14 = vor.u32 %v270_v63, %v267_v62  ;;  %v276_v15 = vrot.slane %v274_v59, 5  ;;  %v284_v16 = vrot.slane %v282_v0, 5  ;;  %v2522_v44 = vld [vmem:[%s2425_s28 + $0x24] sm:$0x1]  ;;  %v2526_v51 = vld [vmem:[%s2425_s28 + $0x28] sm:$0xf] }
  0x1f   : > { %v2002_v20 = vcombine.low %v853_v4, %v867_v13  ;;  %v1084_v21 = vrot.slane %v2454_v26, 5  ;;  %v290_v23 = vrot.slane %v288_v11, 5  ;;  %v869_v24 = vshrl.u32 %v1989_v2, 16  ;;  %v2532_v56 = vld [vmem:[%s2425_s28 + $0x2c] sm:$0x1] }
  0x20   : > { %v272_v25 = vrot.slane %v271_v14, 4  ;;  %v285_v27 = vor.u32 %v284_v16, %v281_v10  ;;  %v872_v28 = vshll.u32 %v1989_v2, 16  ;;  %v878_v29 = vshll.u32 %v2504_v12, 16  ;;  %v2538_v62 = vld [vmem:[%s2425_s28 + $0x30] sm:$0xf] }
  0x21   : > { %2208 = vmatprep.mubr.msk.bf16.mxu0 %vm362_vm3, %v2002_v20  ;;  %v871_v30 = vrot.slane %v869_v24, 4  ;;  %v883_v33 = vshrl.u32 %v1991_v18, 16  ;;  %v886_v34 = vshll.u32 %v1991_v18, 16  ;;  %v892_v35 = vshll.u32 %v2510_v19, 16  ;;  %v2543_v63 = vld [vmem:[%s2939_s1 + $0x8] sm:$0xf] }
  0x22   : > { %v277_v38 = vsel %vm2464_vm4, %v272_v25, %v276_v15  ;;  %v286_v39 = vrot.slane %v285_v27, 4  ;;  %v874_v40 = vrot.slane %v872_v28, 5  ;;  %v880_v43 = vrot.slane %v878_v29, 5  ;;  %v2548_v11 = vld [vmem:[%s2425_s28 + $0x38] sm:$0xf] }
  0x23   : > { %v885_v45 = vrot.slane %v883_v33, 4  ;;  %v888_v48 = vrot.slane %v886_v34, 5  ;;  %v894_v49 = vrot.slane %v892_v35, 5  ;;  %v1088_v50 = vrot.slane %v2504_v12, 5  ;;  %v2553_v18 = vld [vmem:[%s2425_s28 + $0x34] sm:$0x1] }
  0x24   : > { %v291_v52 = vsel %vm2464_vm4, %v286_v39, %v290_v23  ;;  %v875_v53 = vor.u32 %v874_v40, %v871_v30  ;;  %v1092_v55 = vrot.slane %v2510_v19, 5  ;;  %v293_v57 = vshrl.u32 %v2517_v36, 16  ;;  %v2559_v25 = vld [vmem:[%s2425_s28 + $0x3c] sm:$0x1]  ;;  %v2010_v34 = vld [vmem:[%s2425_s28 + $0x8] sm:$0xe] }
  0x25   : > { %v1936_v58 = vcombine.low %v277_v38, %v291_v52  ;;  %v889_v59 = vor.u32 %v888_v48, %v885_v45  ;;  %v296_v60 = vshll.u32 %v2517_v36, 16  ;;  %v302_v61 = vshll.u32 %v2522_v44, 16  ;;  %v2628_v19 = vld [vmem:[%s2425_s28 + $0x44] sm:$0x1] }
  0x26   : > { %v876_v0 = vrot.slane %v875_v53, 4  ;;  %v295_v2 = vrot.slane %v293_v57, 4  ;;  %v307_v4 = vshrl.u32 %v2526_v51, 16  ;;  %v310_v10 = vshll.u32 %v2526_v51, 16  ;;  %v2013_v57 = vld [vmem:[%s2425_s28 + $0x20] sm:$0xe] }
  0x27   : > { %2169 = vmatmul.mubr.msk.bf16.vlgmr.msra.gmra.mrb[0].mxu1 %vm362_vm3, %v1936_v58  ;;  %v890_v13 = vrot.slane %v889_v59, 4  ;;  %v298_v14 = vrot.slane %v296_v60, 5  ;;  %v304_v15 = vrot.slane %v302_v61, 5  ;;  %v316_v16 = vshll.u32 %v2532_v56, 16 }
  0x28   : > { %2177 = vmatpush3.bf16.msra.mxu1 %v2447_v17  ;;  %v881_v20 = vsel %vm2464_vm4, %v876_v0, %v880_v43  ;;  %v309_v23 = vrot.slane %v307_v4, 4  ;;  %v312_v24 = vrot.slane %v310_v10, 5  ;;  %v321_v27 = vshrl.u32 %v2538_v62, 16  ;;  %v2011_v17 = vld [vmem:[%s2425_s28 + $0x10] sm:$0xe] }
  0x29   : > { %v895_v28 = vsel %vm2464_vm4, %v890_v13, %v894_v49  ;;  %v299_v29 = vor.u32 %v298_v14, %v295_v2  ;;  %v318_v30 = vrot.slane %v316_v16, 5  ;;  %v324_v33 = vshll.u32 %v2538_v62, 16  ;;  %2324 = vmatprep.subr.msk.bf16.mxu1 %vm375_vm0, %v2543_v63  ;;  %v2012_v43 = vld [vmem:[%s2425_s28 + $0x18] sm:$0xe]  ;;  %v2014_v0 = vld [vmem:[%s2425_s28 + $0x28] sm:$0xe] }
  0x2a   : > { %v2003_v35 = vcombine.low %v881_v20, %v895_v28  ;;  %v313_v38 = vor.u32 %v312_v24, %v309_v23  ;;  %v323_v39 = vrot.slane %v321_v27, 4  ;;  %v330_v40 = vshll.u32 %v2553_v18, 16 }
  0x2b   : > { %v300_v45 = vrot.slane %v299_v29, 4  ;;  %v326_v48 = vrot.slane %v324_v33, 5  ;;  %v335_v49 = vshrl.u32 %v2548_v11, 16  ;;  %v338_v52 = vshll.u32 %v2548_v11, 16  ;;  %v2598_v29 = vld [vmem:[%s2425_s28 + $0x34] sm:$0x1] }
  0x2c   : > { %2209 = vmatmul.mubr.msk.bf16.vlgmr.msra.gmra.mrb[0].mxu0 %vm362_vm3, %v2003_v35  ;;  %v314_v58 = vrot.slane %v313_v38, 4  ;;  %v332_v59 = vrot.slane %v330_v40, 5  ;;  %v344_v60 = vshll.u32 %v2559_v25, 16  ;;  %v2018_v61 = vrot.slane %v2010_v34, 9  ;;  %v2016_v38 = vld [vmem:[%s2425_s28 + $0x38] sm:$0xe] }
  0x2d   : > { %2217 = vmatpush3.bf16.msra.mxu0 %v2476_v42  ;;  %v305_v2 = vsel %vm2464_vm4, %v300_v45, %v304_v15  ;;  %v327_v4 = vor.u32 %v326_v48, %v323_v39  ;;  %v337_v10 = vrot.slane %v335_v49, 4  ;;  %v340_v13 = vrot.slane %v338_v52, 5  ;;  %v2595_v42 = vld [vmem:[%s2425_s28 + $0x2c] sm:$0x1]  ;;  %v2017_v45 = vld [vmem:[%s2425_s28 + $0x40] sm:$0xe] }
  0x2e   : > { %v319_v14 = vsel %vm2464_vm4, %v314_v58, %v318_v30  ;;  %v346_v16 = vrot.slane %v344_v60, 5  ;;  %v1081_v20 = vsel %vm2575_vm7, %v2018_v61, %v1080_v5  ;;  %v2019_v23 = vrot.slane %v2011_v17, 9  ;;  %2329 = vmatprep.subr.msk.bf16.mxu0 %vm375_vm0, %v2460_v31  ;;  %v2015_v30 = vld [vmem:[%s2425_s28 + $0x30] sm:$0xe]  ;;  %v2606_v31 = vld [vmem:[%s2425_s28 + $0x3c] sm:$0x1] }
  0x2f   : > { %v1937_v15 = vcombine.low %v305_v2, %v319_v14  ;;  %v328_v24 = vrot.slane %v327_v4, 4  ;;  %v341_v27 = vor.u32 %v340_v13, %v337_v10  ;;  %v2020_v28 = vrot.slane %v2012_v43, 9  ;;  %v2637_v48 = vld [vmem:[%s2939_s1 + $0xc] sm:$0xf]  ;;  %v545_v58 = vld [vmem:[%s2425_s28 + $0x8] sm:$0xe] }
  0x30   : > { %v1085_v22 = vsel %vm2575_vm7, %v2019_v23, %v1084_v21  ;;  %v2021_v5 = vrot.slane %v2013_v57, 9  ;;  %v2022_v33 = vrot.slane %v2014_v0, 9  ;;  %v1096_v39 = vrot.slane %v2595_v42, 5  ;;  %v547_v4 = vld [vmem:[%s2425_s28 + $0x18] sm:$0xe] }
  0x31   : > { %2172 = vmatprep.mubr.msk.bf16.mxu1 %vm362_vm3, %v1937_v15  ;;  %v333_v34 = vsel %vm2464_vm4, %v328_v24, %v332_v59  ;;  %v342_v17 = vrot.slane %v341_v27, 4  ;;  %v2027_v35 = vcombine.low %v1081_v20, %v1085_v22  ;;  %v1089_v26 = vsel %vm2575_vm7, %v2020_v28, %v1088_v50  ;;  %v546_v59 = vld [vmem:[%s2425_s28 + $0x10] sm:$0xe]  ;;  %v548_v20 = vld [vmem:[%s2425_s28 + $0x20] sm:$0xe] }
  0x32   : > { %v1093_v21 = vsel %vm2575_vm7, %v2021_v5, %v1092_v55  ;;  %v2023_v40 = vrot.slane %v2015_v30, 9  ;;  %v1100_v43 = vrot.slane %v2598_v29, 5  ;;  %v1943_v50 = vcombine.low %v2428_v6, %v2431_v7  ;;  %v2068_v55 = vld [vmem:[%s2939_s1 + $0x1c] sm:$0xf]  ;;  %v544_v7 = vld [vmem:[%s2425_s28] sm:$0xe] }
  0x33   : > { %v347_v12 = vsel %vm2464_vm4, %v342_v17, %v346_v16  ;;  %2218 = vmatprep.mubr.msk.bf16.mxu0 %vm362_vm3, %v2027_v35  ;;  %v2028_v52 = vcombine.low %v1089_v26, %v1093_v21  ;;  %v1097_v57 = vsel %vm2575_vm7, %v2022_v33, %v1096_v39  ;;  %v573_v60 = vrot.slane %v2434_v8, 5  ;;  %v2052_v5 = vld [vmem:[%s2425_s28 + $0x10] sm:$0xf]  ;;  %v549_v17 = vld [vmem:[%s2425_s28 + $0x28] sm:$0xe] }
  0x34   : > { %v1938_v49 = vcombine.low %v333_v34, %v347_v12  ;;  %v1101_v6 = vsel %vm2575_vm7, %v2023_v40, %v1100_v43  ;;  %v2024_v0 = vrot.slane %v2016_v38, 9  ;;  %v1104_v2 = vrot.slane %v2606_v31, 5  ;;  %v550_v35 = vld [vmem:[%s2425_s28 + $0x30] sm:$0xe]  ;;  %v2054_v26 = vld [vmem:[%s2425_s28 + $0x18] sm:$0xf] }
  0x35   : > { %v2029_v61 = vcombine.low %v1097_v57, %v1101_v6  ;;  %v577_v10 = vrot.slane %v2437_v9, 5  ;;  %v581_v13 = vrot.slane %v2479_v46, 5  ;;  %v2025_v14 = vrot.slane %v2017_v45, 9  ;;  %v2345_v38 = vld [vmem:[%s2425_s28 + $0x10] ss:$8 sps:$4 sm:$0xff]  }
  0x36   : > { %2173 = vmatmul.mubr.msk.bf16.gmra.mrb[4].mxu1 %vm362_vm3, %v1938_v49  ;;  %v1108_v16 = vrot.slane %v2628_v19, 5  ;;  %v585_v23 = vrot.slane %v2490_v54, 5  ;;  %v1951_v8 = vrot.slane %v544_v7, 9  ;;  %v1952_v15 = vrot.slane %v545_v58, 9  ;;  %v2700_v21 = vld [vmem:[%s2425_s28 + $0x38] sm:$0xe] }
  0x37   : > { %2178 = vmatprep.mubr.msk.bf16.mxu1 %vm362_vm3, %v1943_v50  ;;  %v1953_v24 = vrot.slane %v546_v59, 9  ;;  %v630_v9 = vsel %vm375_vm0, %v2543_v63, 0  ;;  %v2660_v46 = vsel %vm375_vm0, %v2068_v55, 0  ;;  %v1954_v27 = vrot.slane %v547_v4, 9  ;;  %v2703_v39 = vld [vmem:[%s2425_s28 + $0x14] sm:$0x1] }
  0x38   : > { %2219 = vmatmul.mubr.msk.bf16.vlgmr.msra.gmra.mrb[0].mxu0 %vm362_vm3, %v2028_v52  ;;  %v2664_v54 = vsel %vm375_vm0, %v2637_v48, 0  ;;  %v1105_v28 = vsel %vm2575_vm7, %v2024_v0, %v1104_v2  ;;  %v1109_v63 = vsel %vm2575_vm7, %v2025_v14, %v1108_v16  ;;  %v1955_v30 = vrot.slane %v548_v20, 9  ;;  %v2058_v52 = vld [vmem:[%s2425_s28 + $0x28] sm:$0xf]  ;;  %v2722_v59 = vld [vmem:[%s2425_s28 + $0x1c] sm:$0x1] }
  0x39   : > { %2227 = vmatpush3.bf16.msra.mxu0 %v2483_v47  ;;  %2222 = vmatprep.mubr.msk.bf16.mxu0 %vm362_vm3, %v2029_v61  ;;  %v589_v22 = vrot.slane %v2522_v44, 5  ;;  %v1944_v33 = vcombine.low %v2470_v37, %v2473_v41  ;;  %v2679_v47 = vsel %vm2575_vm7, %v1951_v8, %v573_v60  ;;  %v2683_v34 = vsel %vm2575_vm7, %v1952_v15, %v577_v10  ;;  %v2730_v2 = vld [vmem:[%s2425_s28 + $0x24] sm:$0x1]  ;;  %v2060_v20 = vld [vmem:[%s2425_s28 + $0x30] sm:$0xf] }
  0x3a   : > { %2330 = vmatprep.subr.msk.bf16.mxu0 %vm375_vm0, %v2068_v55  ;;  %v1945_v44 = vcombine.low %v2517_v36, %v2526_v51  ;;  %v2693_v37 = vsel %vm2575_vm7, %v1953_v24, %v581_v13  ;;  %v2697_v41 = vsel %vm2575_vm7, %v1954_v27, %v585_v23  ;;  %v2030_v40 = vcombine.low %v1105_v28, %v1109_v63  ;;  %v2056_v36 = vld [vmem:[%s2425_s28 + $0x20] sm:$0xf]  ;;  %v2741_v15 = vld [vmem:[%s2425_s28 + $0x2c] sm:$0x1]  ;;  %v2347_v27 = vld [vmem:[%s2425_s28 + $0x30] ss:$8 sps:$4 sm:$0xff]  }
  0x3b   : > { %v1946_v43 = vcombine.low %v2538_v62, %v2548_v11  ;;  %v1348_v12 = vshrl.u32 %v2052_v5, 16  ;;  %v1351_v50 = vshll.u32 %v2052_v5, 16  ;;  %v1960_v51 = vcombine.low %v2679_v47, %v2683_v34  ;;  %v2346_v23 = vld [vmem:[%s2425_s28 + $0x20] ss:$8 sps:$4 sm:$0xff]   ;;  %v2062_v5 = vld [vmem:[%s2425_s28 + $0x38] sm:$0xf] }
  0x3c   : > { %v2712_v45 = vsel %vm2575_vm7, %v1955_v30, %v589_v22  ;;  %v1956_v55 = vrot.slane %v549_v17, 9  ;;  %v1362_v49 = vshrl.u32 %v2054_v26, 16  ;;  %v1961_v62 = vcombine.low %v2693_v37, %v2697_v41  ;;  %v2752_v17 = vld [vmem:[%s2425_s28 + $0x34] sm:$0x1] }
  0x3d   : > { %v593_v11 = vrot.slane %v2532_v56, 5  ;;  %v1350_v57 = vrot.slane %v1348_v12, 4  ;;  %v1353_v6 = vrot.slane %v1351_v50, 5  ;;  %v1957_v7 = vrot.slane %v550_v35, 9  ;;  %v2064_v12 = vld [vmem:[%s2425_s28 + $0x40] sm:$0xf] }
  0x3e   : > { %2179 = vmatmul.mubr.msk.bf16.vlgmr.msra.gmra.mrb[0].mxu1 %vm362_vm3, %v1944_v33  ;;  %v597_v58 = vrot.slane %v2553_v18, 5  ;;  %v1364_v60 = vrot.slane %v1362_v49, 4  ;;  %v1365_v61 = vshll.u32 %v2054_v26, 16  ;;  %v1958_v56 = vrot.slane %v2700_v21, 9  ;;  %v2762_v21 = vld [vmem:[%s2425_s28 + $0x3c] sm:$0x1] }
  0x3f   : > { %2187 = vmatpush3.bf16.msra.mxu1 %v630_v9  ;;  %2182 = vmatprep.mubr.msk.bf16.mxu1 %vm362_vm3, %v1945_v44  ;;  %v1357_v0 = vshll.u32 %v2703_v39, 16  ;;  %v1376_v18 = vshrl.u32 %v2056_v36, 16  ;;  %v1379_v4 = vshll.u32 %v2056_v36, 16  ;;  %v1354_v10 = vor.u32 %v1353_v6, %v1350_v57  ;;  %v2066_v6 = vld [vmem:[%s2425_s28 + $0x48] sm:$0xf] }
  0x40   : > { %2223 = vmatmul.mubr.msk.bf16.gmra.mrb[4].mxu0 %vm362_vm3, %v2030_v40  ;;  %2325 = vmatprep.subr.msk.bf16.mxu1 %vm375_vm0, %v2637_v48  ;;  %v1367_v13 = vrot.slane %v1365_v61, 5  ;;  %v1390_v14 = vshrl.u32 %v2058_v52, 16  ;;  %v1393_v16 = vshll.u32 %v2058_v52, 16  ;;  %v2737_v48 = vsel %vm2575_vm7, %v1956_v55, %v593_v11 }
  0x41   : > { %2228 = vmatprep.mubr.msk.bf16.mxu0 %vm362_vm3, %v2345_v38  ;;  %v1371_v8 = vshll.u32 %v2722_v59, 16  ;;  %v1378_v24 = vrot.slane %v1376_v18, 4  ;;  %v1381_v9 = vrot.slane %v1379_v4, 5  ;;  %v601_v28 = vrot.slane %v2559_v25, 5  ;;  %v2759_v25 = vld [vmem:[%s2939_s1 + $0x20] sm:$0xf] }
  0x42   : > { %v1368_v63 = vor.u32 %v1367_v13, %v1364_v60  ;;  %v1392_v30 = vrot.slane %v1390_v14, 4  ;;  %v1395_v22 = vrot.slane %v1393_v16, 5  ;;  %v2748_v33 = vsel %vm2575_vm7, %v1957_v7, %v597_v58  ;;  %v2787_v13 = vld [vmem:[%s2425_s28 + $0x44] sm:$0x1] }
  0x43   : > { %v1359_v47 = vrot.slane %v1357_v0, 5  ;;  %v1385_v34 = vshll.u32 %v2730_v2, 16  ;;  %v1404_v35 = vshrl.u32 %v2060_v20, 16  ;;  %v1962_v26 = vcombine.low %v2712_v45, %v2737_v48 }
  0x44   : > { %v1355_v44 = vrot.slane %v1354_v10, 4  ;;  %v1382_v38 = vor.u32 %v1381_v9, %v1378_v24  ;;  %v1407_v40 = vshll.u32 %v2060_v20, 16  ;;  %v1369_v50 = vrot.slane %v1368_v63, 4  ;;  %v2790_v20 = vld [vmem:[%s2425_s28 + $0x4c] sm:$0x1] }
  0x45   : > { %v1373_v36 = vrot.slane %v1371_v8, 5  ;;  %v1406_v55 = vrot.slane %v1404_v35, 4  ;;  %v1418_v49 = vshrl.u32 %v2062_v5, 16  ;;  %v2769_v45 = vsel %vm2575_vm7, %v1958_v56, %v601_v28  ;;  %v2348_v8 = vld [vmem:[%s2425_s28 + $0x40] ss:$8 sps:$4 sm:$0xff]  }
  0x46   : > { %2183 = vmatmul.mubr.msk.bf16.gmra.mrb[4].mxu1 %vm362_vm3, %v1946_v43  ;;  %v1396_v52 = vor.u32 %v1395_v22, %v1392_v30  ;;  %v1399_v11 = vshll.u32 %v2741_v15, 16  ;;  %v1409_v57 = vrot.slane %v1407_v40, 5  ;;  %v2774_v7 = vrot.slane %v1385_v34, 5 }
  0x47   : > { %2188 = vmatprep.mubr.msk.bf16.mxu1 %vm362_vm3, %v1960_v51  ;;  %v1413_v43 = vshll.u32 %v2752_v17, 16  ;;  %v1420_v58 = vrot.slane %v1418_v49, 4  ;;  %v1421_v60 = vshll.u32 %v2062_v5, 16  ;;  %v1360_v51 = vsel %vm2464_vm4, %v1355_v44, %v1359_v47  ;;  %v1995_v49 = vld [vmem:[%s2425_s28 + $0x30] sm:$0xf] }
  0x48   : > { %2229 = vmatmul.mubr.msk.bf16.vlgmr.msra.gmra.mrb[0].mxu0 %vm362_vm3, %v2346_v23  ;;  %v1383_v61 = vrot.slane %v1382_v38, 4  ;;  %v1410_v56 = vor.u32 %v1409_v57, %v1406_v55  ;;  %v1432_v0 = vshrl.u32 %v2064_v12, 16  ;;  %v1374_v18 = vsel %vm2464_vm4, %v1369_v50, %v1373_v36  ;;  %v2077_v38 = vld [vmem:[%s2425_s28 + $0x10] sm:$0xe]  ;;  %v2078_v50 = vld [vmem:[%s2425_s28 + $0x18] sm:$0xe] }
  0x49   : > { %2237 = vmatpush3.bf16.msra.mxu0 %v2660_v46  ;;  %2232 = vmatprep.mubr.msk.bf16.mxu0 %vm362_vm3, %v2347_v27  ;;  %v1423_v4 = vrot.slane %v1421_v60, 5  ;;  %v1427_v10 = vshll.u32 %v2762_v21, 16  ;;  %v1435_v46 = vshll.u32 %v2064_v12, 16  ;;  %v1397_v14 = vrot.slane %v1396_v52, 4  ;;  %v2349_v57 = vld [vmem:[%s2425_s28 + $0x8] ss:$8 sps:$4 sm:$0xff]  }
  0x4a   : > { %2331 = vmatprep.subr.msk.bf16.mxu0 %vm375_vm0, %v2759_v25  ;;  %v1401_v16 = vrot.slane %v1399_v11, 5  ;;  %v1434_v23 = vrot.slane %v1432_v0, 4  ;;  %v1446_v48 = vshrl.u32 %v2066_v6, 16  ;;  %v1415_v24 = vrot.slane %v1413_v43, 5 }
  0x4b   : > { %v1424_v9 = vor.u32 %v1423_v4, %v1420_v58  ;;  %v1437_v27 = vrot.slane %v1435_v46, 5  ;;  %v1449_v28 = vshll.u32 %v2066_v6, 16  ;;  %v2069_v63 = vcombine.low %v1360_v51, %v1374_v18 }
  0x4c   : > { %v1411_v30 = vrot.slane %v1410_v56, 4  ;;  %v1441_v22 = vshll.u32 %v2787_v13, 16  ;;  %v1448_v5 = vrot.slane %v1446_v48, 4  ;;  %v1429_v34 = vrot.slane %v1427_v10, 5 }
  0x4d   : > { %v1425_v47 = vrot.slane %v1424_v9, 4  ;;  %v1451_v35 = vrot.slane %v1449_v28, 5  ;;  %v1455_v44 = vshll.u32 %v2790_v20, 16  ;;  %v1963_v40 = vcombine.low %v2748_v33, %v2769_v45  ;;  %v1999_v28 = vld [vmem:[%s2425_s28 + $0x40] sm:$0xf] }
  0x4e   : > { %2189 = vmatmul.mubr.msk.bf16.vlgmr.msra.gmra.mrb[0].mxu1 %vm362_vm3, %v1961_v62  ;;  %v1438_v12 = vor.u32 %v1437_v27, %v1434_v23  ;;  %v1388_v37 = vsel %vm2464_vm4, %v1383_v61, %v2774_v7  ;;  %v1402_v41 = vsel %vm2464_vm4, %v1397_v14, %v1401_v16  ;;  %v1993_v62 = vld [vmem:[%s2425_s28 + $0x28] sm:$0xf]  ;;  %v1416_v33 = vsel %vm2464_vm4, %v1411_v30, %v1415_v24  ;;  %v1997_v27 = vld [vmem:[%s2425_s28 + $0x38] sm:$0xf] }
  0x4f   : > { %2197 = vmatpush3.bf16.msra.mxu1 %v2664_v54  ;;  %2192 = vmatprep.mubr.msk.bf16.mxu1 %vm362_vm3, %v1962_v26  ;;  %v1452_v54 = vor.u32 %v1451_v35, %v1448_v5  ;;  %v1443_v26 = vrot.slane %v1441_v22, 5  ;;  %v2085_v36 = vrot.slane %v2077_v38, 9  ;;  %v1587_v55 = vrot.slane %v2703_v39, 5  ;;  %v2351_v38 = vld [vmem:[%s2425_s28 + $0x28] ss:$8 sps:$4 sm:$0xff]  }
  0x50   : > { %2233 = vmatmul.mubr.msk.bf16.gmra.mrb[4].mxu0 %vm362_vm3, %v2348_v8  ;;  %2327 = vmatprep.subr.msk.bf16.mxu1 %vm375_vm0, %v2400_v1  ;;  %v1430_v45 = vsel %vm2464_vm4, %v1425_v47, %v1429_v34  ;;  %v1457_v52 = vrot.slane %v1455_v44, 5  ;;  %v2086_v11 = vrot.slane %v2078_v50, 9  ;;  %v1591_v1 = vrot.slane %v2722_v59, 5  ;;  %v2079_v59 = vld [vmem:[%s2425_s28 + $0x20] sm:$0xe] }
  0x51   : > { %2238 = vmatprep.mubr.msk.bf16.mxu0 %vm362_vm3, %v2069_v63  ;;  %v1439_v6 = vrot.slane %v1438_v12, 4  ;;  %v1453_v7 = vrot.slane %v1452_v54, 4  ;;  %v897_v43 = vshrl.u32 %v1993_v62, 16  ;;  %v900_v58 = vshll.u32 %v1993_v62, 16  ;;  %v2350_v63 = vld [vmem:[%s2425_s28 + $0x18] ss:$8 sps:$4 sm:$0xff]  }
  0x52   : > { %v2070_v60 = vcombine.low %v1388_v37, %v1402_v41  ;;  %v911_v51 = vshrl.u32 %v1995_v49, 16  ;;  %v914_v61 = vshll.u32 %v1995_v49, 16  ;;  %v2071_v56 = vcombine.low %v1416_v33, %v1430_v45  ;;  %v2081_v44 = vld [vmem:[%s2425_s28 + $0x30] sm:$0xe] }
  0x53   : > { %v899_v39 = vrot.slane %v897_v43, 4  ;;  %v902_v0 = vrot.slane %v900_v58, 5  ;;  %v1644_v18 = vsel %vm375_vm0, %v2759_v25, 0  ;;  %v1444_v46 = vsel %vm2464_vm4, %v1439_v6, %v1443_v26  ;;  %v2080_v25 = vld [vmem:[%s2425_s28 + $0x28] sm:$0xe] }
  0x54   : > { %v913_v4 = vrot.slane %v911_v51, 4  ;;  %v916_v10 = vrot.slane %v914_v61, 5  ;;  %v1458_v14 = vsel %vm2464_vm4, %v1453_v7, %v1457_v52  ;;  %v1588_v16 = vsel %vm2575_vm7, %v2085_v36, %v1587_v55  ;;  %v2083_v6 = vld [vmem:[%s2425_s28 + $0x40] sm:$0xe]  ;;  %v2084_v7 = vld [vmem:[%s2425_s28 + $0x48] sm:$0xe] }
  0x55   : > { %v1592_v23 = vsel %vm2575_vm7, %v2086_v11, %v1591_v1  ;;  %v903_v48 = vor.u32 %v902_v0, %v899_v39  ;;  %v906_v8 = vshll.u32 %v2595_v42, 16  ;;  %v920_v9 = vshll.u32 %v2598_v29, 16  ;;  %v2082_v42 = vld [vmem:[%s2425_s28 + $0x38] sm:$0xe] }
  0x56   : > { %2193 = vmatmul.mubr.msk.bf16.gmra.mrb[4].mxu1 %vm362_vm3, %v1963_v40  ;;  %v917_v24 = vor.u32 %v916_v10, %v913_v4  ;;  %v2087_v30 = vrot.slane %v2079_v59, 9  ;;  %v1595_v22 = vrot.slane %v2730_v2, 5  ;;  %v2072_v5 = vcombine.low %v1444_v46, %v1458_v14 }
  0x57   : > { %2198 = vmatprep.mubr.msk.bf16.mxu1 %vm362_vm3, %v2349_v57  ;;  %v2094_v47 = vcombine.low %v1588_v16, %v1592_v23  ;;  %v2088_v34 = vrot.slane %v2080_v25, 9  ;;  %v1599_v35 = vrot.slane %v2741_v15, 5  ;;  %v925_v40 = vshrl.u32 %v1997_v27, 16  ;;  %v2352_v57 = vld [vmem:[%s2425_s28 + $0x38] ss:$8 sps:$4 sm:$0xff]  }
  0x58   : > { %2239 = vmatmul.mubr.msk.bf16.vlgmr.msra.gmra.mrb[0].mxu0 %vm362_vm3, %v2070_v60  ;;  %v928_v12 = vshll.u32 %v1997_v27, 16  ;;  %v939_v29 = vshrl.u32 %v1999_v28, 16  ;;  %v942_v50 = vshll.u32 %v1999_v28, 16  ;;  %v904_v37 = vrot.slane %v903_v48, 4 }
  0x59   : > { %2247 = vmatpush3.bf16.msra.mxu0 %v1644_v18  ;;  %2242 = vmatprep.mubr.msk.bf16.mxu0 %vm362_vm3, %v2071_v56  ;;  %v908_v41 = vrot.slane %v906_v8, 5  ;;  %v918_v54 = vrot.slane %v917_v24, 4  ;;  %v922_v62 = vrot.slane %v920_v9, 5  ;;  %v2089_v33 = vrot.slane %v2081_v44, 9 }
  0x5a   : > { %v1603_v26 = vrot.slane %v2752_v17, 5  ;;  %v2090_v2 = vrot.slane %v2082_v42, 9  ;;  %v1607_v36 = vrot.slane %v2762_v21, 5  ;;  %v927_v15 = vrot.slane %v925_v40, 4 }
  0x5b   : > { %v930_v55 = vrot.slane %v928_v12, 5  ;;  %v941_v49 = vrot.slane %v939_v29, 4  ;;  %v944_v45 = vrot.slane %v942_v50, 5  ;;  %v934_v52 = vshll.u32 %v2606_v31, 16 }
  0x5c   : > { %v909_v17 = vsel %vm2464_vm4, %v904_v37, %v908_v41  ;;  %v923_v21 = vsel %vm2464_vm4, %v918_v54, %v922_v62  ;;  %v1600_v11 = vsel %vm2575_vm7, %v2088_v34, %v1599_v35  ;;  %v1604_v1 = vsel %vm2575_vm7, %v2089_v33, %v1603_v26 }
  0x5d   : > { %v1608_v31 = vsel %vm2575_vm7, %v2090_v2, %v1607_v36  ;;  %v948_v43 = vshll.u32 %v2628_v19, 16  ;;  %v2004_v58 = vcombine.low %v909_v17, %v923_v21  ;;  %v931_v60 = vor.u32 %v930_v55, %v927_v15 }
  0x5e   : > { %2199 = vmatmul.mubr.msk.bf16.vlgmr.msra.gmra.mrb[0].mxu1 %vm362_vm3, %v2350_v63  ;;  %v945_v51 = vor.u32 %v944_v45, %v941_v49  ;;  %v2096_v56 = vcombine.low %v1604_v1, %v1608_v31  ;;  %v2091_v39 = vrot.slane %v2083_v6, 9  ;;  %v1611_v0 = vrot.slane %v2787_v13, 5 }
  0x5f   : > { %2257 = vmatpush3.bf16.msra.mxu1 %v2408_v3  ;;  %2202 = vmatprep.mubr.msk.bf16.mxu1 %vm362_vm3, %v2351_v38  ;;  %v1596_v3 = vsel %vm2575_vm7, %v2087_v30, %v1595_v22  ;;  %v2092_v18 = vrot.slane %v2084_v7, 9  ;;  %v1615_v59 = vrot.slane %v2790_v20, 5  ;;  %v936_v4 = vrot.slane %v934_v52, 5 }
  0x60   : > { %2243 = vmatmul.mubr.msk.bf16.gmra.mrb[4].mxu0 %vm362_vm3, %v2072_v5  ;;  %v2095_v61 = vcombine.low %v1596_v3, %v1600_v11  ;;  %v950_v10 = vrot.slane %v948_v43, 5  ;;  %v932_v46 = vrot.slane %v931_v60, 4  ;;  %v946_v19 = vrot.slane %v945_v51, 4 }
  0x61   : > { %2248 = vmatprep.mubr.msk.bf16.mxu0 %vm362_vm3, %v2094_v47  ;;  %v1612_v14 = vsel %vm2575_vm7, %v2091_v39, %v1611_v0  ;;  %v1616_v13 = vsel %vm2575_vm7, %v2092_v18, %v1615_v59 }
  0x62   : > { %v937_v20 = vsel %vm2464_vm4, %v932_v46, %v936_v4  ;;  %v951_v16 = vsel %vm2464_vm4, %v946_v19, %v950_v10  ;;  %v2097_v23 = vcombine.low %v1612_v14, %v1616_v13 }
  0x63   : > { %v2005_v25 = vcombine.low %v937_v20, %v951_v16 }
  0x66   : > { %2203 = vmatmul.mubr.msk.bf16.gmra.mrb[4].mxu1 %vm362_vm3, %v2352_v57 }
  0x67   : > { %2212 = vmatprep.mubr.msk.bf16.mxu1 %vm362_vm3, %v2004_v58 }
  0x68   : > { %2249 = vmatmul.mubr.msk.bf16.vlgmr.msra.gmra.mrb[0].mxu0 %vm362_vm3, %v2095_v61 }
  0x69   : > { %2252 = vmatprep.mubr.msk.bf16.mxu0 %vm362_vm3, %v2096_v56 }
  0x70   : > { %2253 = vmatmul.mubr.msk.bf16.gmra.mrb[4].mxu0 %vm362_vm3, %v2097_v23 }
  0x72   : > { %2213 = vmatmul.mubr.msk.bf16.vlgmr.msra.gmra.mrb[4].mxu1 %vm362_vm3, %v2005_v25 }
 0x131   : > { %v2200_v48 = vpop.f32.mrb[0].mxu1 }
 0x132   : > { %v785_v8 = vpop.f32.mrb[1].mxu1 }
 0x133   : > { %v2201_v24 = vpop.f32.mrb[2].mxu1 }
 0x134   : > { %v788_v9 = vpop.f32.mrb[3].mxu1 }
 0x13b   : > { %v2250_v27 = vpop.f32.mrb[0].mxu0 }
 0x13c   : > { %v2258_v53 = vadd.f32 %v2250_v27, %v2200_v48  ;;  %v1680_v28 = vpop.f32.mrb[1].mxu0 }
 0x13d   : > { %v2259_v32 = vadd.f32 %v1680_v28, %v785_v8  ;;  %v2251_v63 = vpop.f32.mrb[2].mxu0 }
 0x13e   : > { %v2115_v30 = vpack.c.bf16 %v2258_v53, %v2258_v53  ;;  %v2260_v22 = vadd.f32 %v2251_v63, %v2201_v24  ;;  %v1683_v5 = vpop.f32.mrb[3].mxu0 }
 0x13f   : > { %v2113_v47 = vpack.c.bf16 %v2259_v32, %v2259_v32  ;;  %v2261_v34 = vadd.f32 %v1683_v5, %v788_v9 }
 0x140   : > { %1754 = vst.msk [vmem:[%s2893_s18 + $0x8] sm:$0xf] %vm1751_vm8, %v2115_v30  ;;  %v1720_v35 = vpack.c.bf16 %v2260_v22, %v2258_v53  ;;  %v2116_v44 = vpack.c.bf16 %v2260_v22, %v2260_v22 }
 0x141   : > { %1752 = vst.msk [vmem:[%s2893_s18] sm:$0xf] %vm1751_vm8, %v2113_v47  ;;  %v1719_v42 = vpack.c.bf16 %v2261_v34, %v2259_v32  ;;  %v2114_v38 = vpack.c.bf16 %v2261_v34, %v2261_v34 }
 0x142   : > { %1755 = vst.msk [vmem:[%s2893_s18 + $0xc] sm:$0xf] %vm1751_vm8, %v2116_v44  ;;  %v1762_v40 = vunpack.c.l.bf16 %v1720_v35  ;;  %v1763_v12 = vunpack.c.h.bf16 %v1720_v35 }
 0x143   : > { %1753 = vst.msk [vmem:[%s2893_s18 + $0x4] sm:$0xf] %vm1751_vm8, %v2114_v38  ;;  %v1760_v29 = vunpack.c.l.bf16 %v1719_v42  ;;  %v1761_v50 = vunpack.c.h.bf16 %v1719_v42  ;;  %v2254_v37 = vpop.f32.mrb[4].mxu0 }
 0x144   : > { %v1793_v41 = vmul.f32 %v1762_v40, %v1762_v40  ;;  %v1696_v54 = vpop.f32.mrb[5].mxu0  ;;  %v1771_v55 = vsel %vm362_vm3, %v1762_v40, 0.0  ;;  %v1794_v21 = vmul.f32 %v1763_v12, %v1763_v12  ;;  %v1773_v60 = vsel %vm362_vm3, %v1763_v12, 0.0 }
 0x145   : > { %v1768_v62 = vsel %vm362_vm3, %v1760_v29, 0.0  ;;  %v1769_v33 = vsel %vm362_vm3, %v1761_v50, 0.0  ;;  %v1791_v26 = vmul.f32 %v1760_v29, %v1760_v29  ;;  %v1792_v2 = vmul.f32 %v1761_v50, %v1761_v50  ;;  %v2214_v36 = vpop.f32.mrb[4].mxu1  ;;  %v2255_v15 = vpop.f32.mrb[6].mxu0 }
 0x146   : > { %v1770_v49 = vadd.f32 %v1769_v33, %v1768_v62  ;;  %v2262_v45 = vadd.f32 %v2254_v37, %v2214_v36  ;;  %v1031_v52 = vpop.f32.mrb[5].mxu1  ;;  %v1699_v17 = vpop.f32.mrb[7].mxu0  ;;  %v1802_v51 = vsel %vm362_vm3, %v1793_v41, 0.0  ;;  %v1804_v4 = vsel %vm362_vm3, %v1794_v21, 0.0 }
 0x147   : > { %v1799_v3 = vsel %vm362_vm3, %v1791_v26, 0.0  ;;  %v1800_v11 = vsel %vm362_vm3, %v1792_v2, 0.0  ;;  %v2263_v1 = vadd.f32 %v1696_v54, %v1031_v52  ;;  %v2215_v31 = vpop.f32.mrb[6].mxu1 }
 0x148   : > { %v1772_v57 = vadd.f32 %v1771_v55, %v1770_v49  ;;  %v1801_v6 = vadd.f32 %v1800_v11, %v1799_v3  ;;  %v2119_v7 = vpack.c.bf16 %v2262_v45, %v2262_v45  ;;  %v2264_v43 = vadd.f32 %v2255_v15, %v2215_v31  ;;  %v1034_v58 = vpop.f32.mrb[7].mxu1 }
 0x149   : > { %v2117_v61 = vpack.c.bf16 %v2263_v1, %v2263_v1  ;;  %v2265_v56 = vadd.f32 %v1699_v17, %v1034_v58 }
 0x14a   : > { %v1803_v39 = vadd.f32 %v1802_v51, %v1801_v6  ;;  %1758 = vst.msk [vmem:[%s2893_s18 + $0x18] sm:$0xf] %vm1751_vm8, %v2119_v7  ;;  %v1722_v0 = vpack.c.bf16 %v2264_v43, %v2262_v45  ;;  %v2120_v18 = vpack.c.bf16 %v2264_v43, %v2264_v43  ;;  %v1774_v59 = vadd.f32 %v1773_v60, %v1772_v57 }
 0x14b   : > { %1756 = vst.msk [vmem:[%s2893_s18 + $0x10] sm:$0xf] %vm1751_vm8, %v2117_v61  ;;  %v1721_v10 = vpack.c.bf16 %v2265_v56, %v2263_v1  ;;  %v2118_v46 = vpack.c.bf16 %v2265_v56, %v2265_v56 }
 0x14c   : > { %1759 = vst.msk [vmem:[%s2893_s18 + $0x1c] sm:$0xf] %vm1751_vm8, %v2120_v18  ;;  %v1805_v19 = vadd.f32 %v1804_v4, %v1803_v39  ;;  %v1766_v14 = vunpack.c.l.bf16 %v1722_v0  ;;  %v1767_v16 = vunpack.c.h.bf16 %v1722_v0 }
 0x14d   : > { %1757 = vst.msk [vmem:[%s2893_s18 + $0x14] sm:$0xf] %vm1751_vm8, %v2118_v46  ;;  %v1764_v13 = vunpack.c.l.bf16 %v1721_v10  ;;  %v1765_v20 = vunpack.c.h.bf16 %v1721_v10 }
 0x14e   : > { %v1797_v24 = vmul.f32 %v1766_v14, %v1766_v14  ;;  %v1779_v32 = vsel %vm362_vm3, %v1766_v14, 0.0  ;;  %v1798_v63 = vmul.f32 %v1767_v16, %v1767_v16  ;;  %v1781_v47 = vsel %vm362_vm3, %v1767_v16, 0.0 }
 0x14f   : > { %v1775_v23 = vsel %vm362_vm3, %v1764_v13, 0.0  ;;  %v1795_v25 = vmul.f32 %v1764_v13, %v1764_v13  ;;  %v1796_v48 = vmul.f32 %v1765_v20, %v1765_v20  ;;  %v1777_v9 = vsel %vm362_vm3, %v1765_v20, 0.0 }
 0x150   : > { %v1776_v8 = vadd.f32 %v1775_v23, %v1774_v59  ;;  %v1810_v34 = vsel %vm362_vm3, %v1797_v24, 0.0  ;;  %v1812_v42 = vsel %vm362_vm3, %v1798_v63, 0.0 }
 0x151   : > { %v1806_v27 = vsel %vm362_vm3, %v1795_v25, 0.0  ;;  %v1808_v30 = vsel %vm362_vm3, %v1796_v48, 0.0 }
 0x152   : > { %v1778_v53 = vadd.f32 %v1777_v9, %v1776_v8  ;;  %v1807_v28 = vadd.f32 %v1806_v27, %v1805_v19 }
 0x154   : > { %v1780_v22 = vadd.f32 %v1779_v32, %v1778_v53  ;;  %v1809_v5 = vadd.f32 %v1808_v30, %v1807_v28 }
 0x156   : > { %v1782_v35 = vadd.f32 %v1781_v47, %v1780_v22  ;;  %v1811_v44 = vadd.f32 %v1810_v34, %v1809_v5 }
 0x158   : > { %v1783_v38 = vrot.slane %v1782_v35, 4  ;;  %v1813_v40 = vadd.f32 %v1812_v42, %v1811_v44 }
 0x15a   : > { %v1784_v12 = vadd.f32 %v1783_v38, %v1782_v35  ;;  %v1814_v29 = vrot.slane %v1813_v40, 4 }
 0x15c   : > { %v1785_v50 = vrot.slane %v1784_v12, 2  ;;  %v1815_v37 = vadd.f32 %v1814_v29, %v1813_v40 }
 0x15e   : > { %v1786_v41 = vadd.f32 %v1785_v50, %v1784_v12  ;;  %v1816_v54 = vrot.slane %v1815_v37, 2 }
 0x160   : > { %v1787_v62 = vrot.slane %v1786_v41, 1  ;;  %v1817_v33 = vadd.f32 %v1816_v54, %v1815_v37 }
 0x162   : > { %v1788_v26 = vadd.f32 %v1787_v62, %v1786_v41  ;;  %v1818_v2 = vrot.slane %v1817_v33, 1 }
 0x164   : > { %1790 = vst.msk [vmem:[%s211_s21] sm:$0x1] %vm1789_vm9, %v1788_v26  ;;  %v1819_v36 = vadd.f32 %v1818_v2, %v1817_v33 }
 0x166   : > { %1820 = vst.msk [vmem:[%s214_s24] sm:$0x1] %vm1789_vm9, %v1819_v36 }
 0x167 PF: > { %s15_s15 = sadd.s32 1, %s2359_s15  }
 0x168   : > { %p12_p4 = scmp.ge.s32.totalorder %s15_s15, 4  }
 0x16a   :  { %14 = sbr.rel (!%p12_p4) target bundleno = 1 (0x1), region = 92 }

// kernel: network_block_forward.13
= control target key start
LH: loop header
LB: loop body
LE: loop exit
PB: predicated region body
PF: predicated region fallthrough
CT: control target
= control target key end

     0   :  { %s2496_s18 = smov 0   ;;  %s3057_s0 = inlined_call_operand.vmem [shape: bf16[2,1,10,10,8], index: 0, kind: input, shape index: {}]   ;;  %s3058_s1 = inlined_call_operand.vmem [shape: bf16[9,8,8], index: 1, kind: input, shape index: {}]   ;;  %s3059_s2 = inlined_call_operand.vmem [shape: bf16[2,8,8,8], index: 2, kind: input, shape index: {}]   ;;  %s3060_s3 = inlined_call_operand.vmem [shape: bf16[2,8,8,8], index: 3, kind: output, shape index: {0}]   ;;  %s3061_s4 = inlined_call_operand.vmem [shape: f32[2,1,8], index: 4, kind: output, shape index: {1}]   ;;  %s3062_s5 = inlined_call_operand.vmem [shape: f32[2,1,8], index: 5, kind: output, shape index: {2}]  }
   0x1 LB: > { %s2009_s19 = sadd.s32 4294967295, %s2464_s18   ;;  %p2013_p0 = scmp.ge.s32.totalorder %s2464_s18, 1  ;;  %s2464_s18 = sphi %s2496_s18, %s16_s18  }
   0x2   : > { %p202_p1 = scmp.lt.s32.totalorder %s2464_s18, 3 }
   0x4   : > { %p203_p2 = pnand %p2013_p0, %p202_p1 }
   0x5   : > { %v2019_v0 = vld [vmem:[%s3058_s1 + $0x4] sm:$0xf] (!%p203_p2)  ;;  %vm422_vm0 = vcmask (!%p203_p2), 1043456   ;;  %v2510_v1 = vld [vmem:[%s3058_s1 + $0x10] sm:$0xf] (!%p203_p2)  ;;  %p241_p3 = scmp.lt.s32.totalorder (!%p203_p2), %s2009_s19, 1 }
   0x6   : > { %206 = sbr.rel (%p203_p2) target bundleno = 361 (0x169), region = 32  ;;  %2427 = vmatprep.subr.msk.bf16.mxu1 (!%p203_p2), %vm422_vm0, %v2019_v0  ;;  %2431 = vmatprep.subr.msk.bf16.mxu0 (!%p203_p2), %vm422_vm0, %v2510_v1  ;;  %v424_v2 = vsel (!%p203_p2), %vm422_vm0, %v2019_v0, 0  ;;  %v2518_v3 = vsel (!%p203_p2), %vm422_vm0, %v2510_v1, 0  ;;  %v271_v4 = vld [vmem:[%s3058_s1] sm:$0xf] (!%p203_p2)  ;;  %vm409_vm3 = vcmask (!%p203_p2), 64512  }
   0x7   : > { %2272 = vmatpush3.bf16.msra.mxu1 (!%p203_p2), %v424_v2  ;;  %2312 = vmatpush3.bf16.msra.mxu0 (!%p203_p2), %v2518_v3  ;;  %v2111_v5 = vld [vmem:[%s3058_s1 + $0x14] sm:$0xf] (!%p203_p2)  ;;  %vm280_vm1 = vsmask.f32 (!%p203_p2), 3328  ;;  %vm281_vm2 = vsmask.f32 (!%p203_p2), 7440 }
   0x8   : > { %2428 = vmatprep.subr.msk.bf16.mxu1 (!%p203_p2), %vm422_vm0, %v271_v4  ;;  %2433 = vmatprep.subr.msk.bf16.mxu0 (!%p203_p2), %vm422_vm0, %v2111_v5  ;;  %v2557_v17 = vsel (!%p203_p2), %vm422_vm0, %v271_v4, 0  ;;  %v2570_v31 = vld [vmem:[%s3058_s1 + $0x18] sm:$0xf] (!%p203_p2)  ;;  %vm2574_vm4 = vmor (!%p203_p2), %vm280_vm1, %vm281_vm2  ;;  %v2586_v42 = vsel (!%p203_p2), %vm422_vm0, %v2111_v5, 0  ;;  %vm615_vm5 = vcmask (!%p203_p2), 1042432   ;;  %vm616_vm6 = vcmask (!%p203_p2), 1046532  }
   0x9   : > { %v2593_v47 = vsel (!%p203_p2), %vm422_vm0, %v2570_v31, 0  ;;  %vm2685_vm7 = vmor (!%p203_p2), %vm615_vm5, %vm616_vm6  ;;  %vm1822_vm8 = vcmask (!%p203_p2), 60416   ;;  %vm1860_vm9 = vcmask (!%p203_p2), 57344  }
   0xd   : > { %s3068_s19 = smov (!%p241_p3, %s2009_s19), 1 }
   0xe   : > { %s2437_s28 = smul.u32 80, %s3068_s19  ;;  %s2197_s17 = sshll.u32 %s3068_s19, 5 }
   0xf   : > { %s3003_s22 = scalar_lea.vmem %s3059_s2, %s2197_s17  ;;  %s3010_s25 = scalar_lea.vmem %s3060_s3, %s2197_s17 }
  0x10   : > { %s2535_s6 = scalar_lea.vmem %s3057_s0, %s2437_s28  ;;  %v2223_v32 = vld [vmem:[%s3003_s22 + $0x8] sm:$0xff]   ;;  %s258_s28 = scalar_lea.vmem %s3061_s4, %s3068_s19 }
  0x11   : > { %v2538_v6 = vld [vmem:[%s2535_s6] sm:$0xf]  ;;  %v2541_v7 = vld [vmem:[%s2535_s6 + $0x8] sm:$0xf]  ;;  %v2544_v8 = vld [vmem:[%s2535_s6 + $0x4] sm:$0x1] }
  0x12   : > { %v2547_v9 = vld [vmem:[%s2535_s6 + $0xc] sm:$0x1]  ;;  %v284_v10 = vshrl.u32 %v2538_v6, 16  ;;  %v287_v11 = vshll.u32 %v2538_v6, 16  ;;  %v293_v12 = vshll.u32 %v2544_v8, 16  ;;  %v298_v13 = vshrl.u32 %v2541_v7, 16 }
  0x13   : > { %v301_v14 = vshll.u32 %v2541_v7, 16  ;;  %v307_v15 = vshll.u32 %v2547_v9, 16  ;;  %v2070_v16 = vld [vmem:[%s2535_s6 + $0x8] sm:$0xf]  ;;  %v2560_v22 = vld [vmem:[%s2535_s6 + $0xc] sm:$0x1] }
  0x14   : > { %v286_v18 = vrot.slane %v284_v10, 4  ;;  %v289_v19 = vrot.slane %v287_v11, 5  ;;  %v295_v20 = vrot.slane %v293_v12, 5  ;;  %v300_v21 = vrot.slane %v298_v13, 4  ;;  %v2072_v25 = vld [vmem:[%s2535_s6 + $0x10] sm:$0xf] }
  0x15   : > { %v303_v23 = vrot.slane %v301_v14, 5  ;;  %v309_v24 = vrot.slane %v307_v15, 5  ;;  %v2564_v26 = vld [vmem:[%s2535_s6 + $0x14] sm:$0x1]  ;;  %v888_v28 = vshrl.u32 %v2070_v16, 16  ;;  %v891_v29 = vshll.u32 %v2070_v16, 16 }
  0x16   : > { %v290_v27 = vor.u32 %v289_v19, %v286_v18  ;;  %v897_v30 = vshll.u32 %v2560_v22, 16  ;;  %v902_v34 = vshrl.u32 %v2072_v25, 16  ;;  %v905_v35 = vshll.u32 %v2072_v25, 16  ;;  %v2580_v37 = vld [vmem:[%s2535_s6 + $0x10] sm:$0xf] }
  0x17   : > { %v304_v33 = vor.u32 %v303_v23, %v300_v21  ;;  %v911_v36 = vshll.u32 %v2564_v26, 16  ;;  %v890_v39 = vrot.slane %v888_v28, 4  ;;  %v893_v40 = vrot.slane %v891_v29, 5  ;;  %v2583_v41 = vld [vmem:[%s2535_s6 + $0x18] sm:$0xf] }
  0x18   : > { %v291_v38 = vrot.slane %v290_v27, 4  ;;  %v904_v44 = vrot.slane %v902_v34, 4  ;;  %v907_v45 = vrot.slane %v905_v35, 5  ;;  %v2589_v46 = vld [vmem:[%s2535_s6 + $0x14] sm:$0x1]  ;;  %v899_v50 = vrot.slane %v897_v30, 5 }
  0x19   : > { %v305_v43 = vrot.slane %v304_v33, 4  ;;  %v894_v49 = vor.u32 %v893_v40, %v890_v39  ;;  %v913_v51 = vrot.slane %v911_v36, 5  ;;  %v2600_v54 = vld [vmem:[%s2535_s6 + $0x1c] sm:$0x1]  ;;  %v312_v55 = vshrl.u32 %v2580_v37, 16 }
  0x1a   : > { %v296_v48 = vsel %vm2574_vm4, %v291_v38, %v295_v20  ;;  %v908_v53 = vor.u32 %v907_v45, %v904_v44  ;;  %v315_v56 = vshll.u32 %v2580_v37, 16  ;;  %v321_v59 = vshll.u32 %v2589_v46, 16  ;;  %v2074_v2 = vld [vmem:[%s2535_s6 + $0x18] sm:$0xf]  ;;  %v2614_v12 = vld [vmem:[%s2535_s6 + $0x1c] sm:$0x1] }
  0x1b   : > { %v310_v52 = vsel %vm2574_vm4, %v305_v43, %v309_v24  ;;  %v895_v58 = vrot.slane %v894_v49, 4  ;;  %v326_v60 = vshrl.u32 %v2583_v41, 16  ;;  %v314_v62 = vrot.slane %v312_v55, 4  ;;  %v2076_v18 = vld [vmem:[%s2535_s6 + $0x20] sm:$0xf] }
  0x1c   : > { %v2020_v57 = vcombine.low %v296_v48, %v310_v52  ;;  %v909_v61 = vrot.slane %v908_v53, 4  ;;  %v317_v63 = vrot.slane %v315_v56, 5  ;;  %v329_v0 = vshll.u32 %v2583_v41, 16  ;;  %v2620_v19 = vld [vmem:[%s2535_s6 + $0x24] sm:$0x1] }
  0x1d   : > { %v900_v4 = vsel %vm2574_vm4, %v895_v58, %v899_v50  ;;  %v1127_v5 = vrot.slane %v2560_v22, 5  ;;  %v328_v10 = vrot.slane %v326_v60, 4  ;;  %v335_v11 = vshll.u32 %v2600_v54, 16  ;;  %v2627_v36 = vld [vmem:[%s2535_s6 + $0x20] sm:$0xf] }
  0x1e   : > { %2273 = vmatprep.mubr.msk.bf16.mxu1 %vm409_vm3, %v2020_v57  ;;  %v914_v13 = vsel %vm2574_vm4, %v909_v61, %v913_v51  ;;  %v318_v14 = vor.u32 %v317_v63, %v314_v62  ;;  %v323_v15 = vrot.slane %v321_v59, 5  ;;  %v331_v16 = vrot.slane %v329_v0, 5  ;;  %v2632_v44 = vld [vmem:[%s2535_s6 + $0x24] sm:$0x1]  ;;  %v2636_v51 = vld [vmem:[%s2535_s6 + $0x28] sm:$0xf] }
  0x1f   : > { %v2087_v20 = vcombine.low %v900_v4, %v914_v13  ;;  %v1131_v21 = vrot.slane %v2564_v26, 5  ;;  %v337_v23 = vrot.slane %v335_v11, 5  ;;  %v916_v24 = vshrl.u32 %v2074_v2, 16  ;;  %v2642_v56 = vld [vmem:[%s2535_s6 + $0x2c] sm:$0x1] }
  0x20   : > { %v319_v25 = vrot.slane %v318_v14, 4  ;;  %v332_v27 = vor.u32 %v331_v16, %v328_v10  ;;  %v919_v28 = vshll.u32 %v2074_v2, 16  ;;  %v925_v29 = vshll.u32 %v2614_v12, 16  ;;  %v2648_v62 = vld [vmem:[%s2535_s6 + $0x30] sm:$0xf] }
  0x21   : > { %2313 = vmatprep.mubr.msk.bf16.mxu0 %vm409_vm3, %v2087_v20  ;;  %v918_v30 = vrot.slane %v916_v24, 4  ;;  %v930_v33 = vshrl.u32 %v2076_v18, 16  ;;  %v933_v34 = vshll.u32 %v2076_v18, 16  ;;  %v939_v35 = vshll.u32 %v2620_v19, 16  ;;  %v2653_v63 = vld [vmem:[%s3058_s1 + $0x8] sm:$0xf] }
  0x22   : > { %v324_v38 = vsel %vm2574_vm4, %v319_v25, %v323_v15  ;;  %v333_v39 = vrot.slane %v332_v27, 4  ;;  %v921_v40 = vrot.slane %v919_v28, 5  ;;  %v927_v43 = vrot.slane %v925_v29, 5  ;;  %v2658_v11 = vld [vmem:[%s2535_s6 + $0x38] sm:$0xf] }
  0x23   : > { %v932_v45 = vrot.slane %v930_v33, 4  ;;  %v935_v48 = vrot.slane %v933_v34, 5  ;;  %v941_v49 = vrot.slane %v939_v35, 5  ;;  %v1135_v50 = vrot.slane %v2614_v12, 5  ;;  %v2663_v18 = vld [vmem:[%s2535_s6 + $0x34] sm:$0x1] }
  0x24   : > { %v338_v52 = vsel %vm2574_vm4, %v333_v39, %v337_v23  ;;  %v922_v53 = vor.u32 %v921_v40, %v918_v30  ;;  %v1139_v55 = vrot.slane %v2620_v19, 5  ;;  %v340_v57 = vshrl.u32 %v2627_v36, 16  ;;  %v2669_v25 = vld [vmem:[%s2535_s6 + $0x3c] sm:$0x1]  ;;  %v2095_v34 = vld [vmem:[%s2535_s6 + $0x8] sm:$0xe] }
  0x25   : > { %v2021_v58 = vcombine.low %v324_v38, %v338_v52  ;;  %v936_v59 = vor.u32 %v935_v48, %v932_v45  ;;  %v343_v60 = vshll.u32 %v2627_v36, 16  ;;  %v349_v61 = vshll.u32 %v2632_v44, 16  ;;  %v2738_v19 = vld [vmem:[%s2535_s6 + $0x44] sm:$0x1] }
  0x26   : > { %v923_v0 = vrot.slane %v922_v53, 4  ;;  %v342_v2 = vrot.slane %v340_v57, 4  ;;  %v354_v4 = vshrl.u32 %v2636_v51, 16  ;;  %v357_v10 = vshll.u32 %v2636_v51, 16  ;;  %v2098_v57 = vld [vmem:[%s2535_s6 + $0x20] sm:$0xe] }
  0x27   : > { %2274 = vmatmul.mubr.msk.bf16.vlgmr.msra.gmra.mrb[0].mxu1 %vm409_vm3, %v2021_v58  ;;  %v937_v13 = vrot.slane %v936_v59, 4  ;;  %v345_v14 = vrot.slane %v343_v60, 5  ;;  %v351_v15 = vrot.slane %v349_v61, 5  ;;  %v363_v16 = vshll.u32 %v2642_v56, 16  ;;  %v2208_v53 = vld [vmem:[%s3003_s22] sm:$0xff]  }
  0x28   : > { %2282 = vmatpush3.bf16.msra.mxu1 %v2557_v17  ;;  %v928_v20 = vsel %vm2574_vm4, %v923_v0, %v927_v43  ;;  %v356_v23 = vrot.slane %v354_v4, 4  ;;  %v359_v24 = vrot.slane %v357_v10, 5  ;;  %v368_v27 = vshrl.u32 %v2648_v62, 16  ;;  %v2096_v17 = vld [vmem:[%s2535_s6 + $0x10] sm:$0xe] }
  0x29   : > { %v942_v28 = vsel %vm2574_vm4, %v937_v13, %v941_v49  ;;  %v346_v29 = vor.u32 %v345_v14, %v342_v2  ;;  %v365_v30 = vrot.slane %v363_v16, 5  ;;  %v371_v33 = vshll.u32 %v2648_v62, 16  ;;  %2429 = vmatprep.subr.msk.bf16.mxu1 %vm422_vm0, %v2653_v63  ;;  %v2097_v43 = vld [vmem:[%s2535_s6 + $0x18] sm:$0xe]  ;;  %v2099_v0 = vld [vmem:[%s2535_s6 + $0x28] sm:$0xe] }
  0x2a   : > { %v2088_v35 = vcombine.low %v928_v20, %v942_v28  ;;  %v360_v38 = vor.u32 %v359_v24, %v356_v23  ;;  %v370_v39 = vrot.slane %v368_v27, 4  ;;  %v377_v40 = vshll.u32 %v2663_v18, 16 }
  0x2b   : > { %v347_v45 = vrot.slane %v346_v29, 4  ;;  %v373_v48 = vrot.slane %v371_v33, 5  ;;  %v382_v49 = vshrl.u32 %v2658_v11, 16  ;;  %v385_v52 = vshll.u32 %v2658_v11, 16  ;;  %v2708_v29 = vld [vmem:[%s2535_s6 + $0x34] sm:$0x1] }
  0x2c   : > { %2314 = vmatmul.mubr.msk.bf16.vlgmr.msra.gmra.mrb[0].mxu0 %vm409_vm3, %v2088_v35  ;;  %v361_v58 = vrot.slane %v360_v38, 4  ;;  %v379_v59 = vrot.slane %v377_v40, 5  ;;  %v391_v60 = vshll.u32 %v2669_v25, 16  ;;  %v2103_v61 = vrot.slane %v2095_v34, 9  ;;  %v2101_v38 = vld [vmem:[%s2535_s6 + $0x38] sm:$0xe] }
  0x2d   : > { %2322 = vmatpush3.bf16.msra.mxu0 %v2586_v42  ;;  %v352_v2 = vsel %vm2574_vm4, %v347_v45, %v351_v15  ;;  %v374_v4 = vor.u32 %v373_v48, %v370_v39  ;;  %v384_v10 = vrot.slane %v382_v49, 4  ;;  %v387_v13 = vrot.slane %v385_v52, 5  ;;  %v2705_v42 = vld [vmem:[%s2535_s6 + $0x2c] sm:$0x1]  ;;  %v2102_v45 = vld [vmem:[%s2535_s6 + $0x40] sm:$0xe] }
  0x2e   : > { %v366_v14 = vsel %vm2574_vm4, %v361_v58, %v365_v30  ;;  %v393_v16 = vrot.slane %v391_v60, 5  ;;  %v1128_v20 = vsel %vm2685_vm7, %v2103_v61, %v1127_v5  ;;  %v2104_v23 = vrot.slane %v2096_v17, 9  ;;  %2434 = vmatprep.subr.msk.bf16.mxu0 %vm422_vm0, %v2570_v31  ;;  %v2100_v30 = vld [vmem:[%s2535_s6 + $0x30] sm:$0xe]  ;;  %v2716_v31 = vld [vmem:[%s2535_s6 + $0x3c] sm:$0x1] }
  0x2f   : > { %v2022_v15 = vcombine.low %v352_v2, %v366_v14  ;;  %v375_v24 = vrot.slane %v374_v4, 4  ;;  %v388_v27 = vor.u32 %v387_v13, %v384_v10  ;;  %v2105_v28 = vrot.slane %v2097_v43, 9  ;;  %v2747_v48 = vld [vmem:[%s3058_s1 + $0xc] sm:$0xf]  ;;  %v592_v58 = vld [vmem:[%s2535_s6 + $0x8] sm:$0xe] }
  0x30   : > { %v1132_v22 = vsel %vm2685_vm7, %v2104_v23, %v1131_v21  ;;  %v2106_v5 = vrot.slane %v2098_v57, 9  ;;  %v2107_v33 = vrot.slane %v2099_v0, 9  ;;  %v1143_v39 = vrot.slane %v2705_v42, 5  ;;  %v594_v4 = vld [vmem:[%s2535_s6 + $0x18] sm:$0xe] }
  0x31   : > { %2277 = vmatprep.mubr.msk.bf16.mxu1 %vm409_vm3, %v2022_v15  ;;  %v380_v34 = vsel %vm2574_vm4, %v375_v24, %v379_v59  ;;  %v389_v17 = vrot.slane %v388_v27, 4  ;;  %v2112_v35 = vcombine.low %v1128_v20, %v1132_v22  ;;  %v1136_v26 = vsel %vm2685_vm7, %v2105_v28, %v1135_v50  ;;  %v593_v59 = vld [vmem:[%s2535_s6 + $0x10] sm:$0xe]  ;;  %v595_v20 = vld [vmem:[%s2535_s6 + $0x20] sm:$0xe] }
  0x32   : > { %v1140_v21 = vsel %vm2685_vm7, %v2106_v5, %v1139_v55  ;;  %v2108_v40 = vrot.slane %v2100_v30, 9  ;;  %v1147_v43 = vrot.slane %v2708_v29, 5  ;;  %v2028_v50 = vcombine.low %v2538_v6, %v2541_v7  ;;  %v2153_v55 = vld [vmem:[%s3058_s1 + $0x1c] sm:$0xf]  ;;  %v591_v7 = vld [vmem:[%s2535_s6] sm:$0xe] }
  0x33   : > { %v394_v12 = vsel %vm2574_vm4, %v389_v17, %v393_v16  ;;  %2323 = vmatprep.mubr.msk.bf16.mxu0 %vm409_vm3, %v2112_v35  ;;  %v2113_v52 = vcombine.low %v1136_v26, %v1140_v21  ;;  %v1144_v57 = vsel %vm2685_vm7, %v2107_v33, %v1143_v39  ;;  %v620_v60 = vrot.slane %v2544_v8, 5  ;;  %v2137_v5 = vld [vmem:[%s2535_s6 + $0x10] sm:$0xf]  ;;  %v596_v17 = vld [vmem:[%s2535_s6 + $0x28] sm:$0xe] }
  0x34   : > { %v2023_v49 = vcombine.low %v380_v34, %v394_v12  ;;  %v1148_v6 = vsel %vm2685_vm7, %v2108_v40, %v1147_v43  ;;  %v2109_v0 = vrot.slane %v2101_v38, 9  ;;  %v1151_v2 = vrot.slane %v2716_v31, 5  ;;  %v597_v35 = vld [vmem:[%s2535_s6 + $0x30] sm:$0xe]  ;;  %v2139_v26 = vld [vmem:[%s2535_s6 + $0x18] sm:$0xf] }
  0x35   : > { %v2114_v61 = vcombine.low %v1144_v57, %v1148_v6  ;;  %v624_v10 = vrot.slane %v2547_v9, 5  ;;  %v628_v13 = vrot.slane %v2589_v46, 5  ;;  %v2110_v14 = vrot.slane %v2102_v45, 9  ;;  %v2450_v38 = vld [vmem:[%s2535_s6 + $0x10] ss:$8 sps:$4 sm:$0xff]  }
  0x36   : > { %2278 = vmatmul.mubr.msk.bf16.gmra.mrb[4].mxu1 %vm409_vm3, %v2023_v49  ;;  %v1155_v16 = vrot.slane %v2738_v19, 5  ;;  %v632_v23 = vrot.slane %v2600_v54, 5  ;;  %v2036_v8 = vrot.slane %v591_v7, 9  ;;  %v2037_v15 = vrot.slane %v592_v58, 9  ;;  %v2810_v21 = vld [vmem:[%s2535_s6 + $0x38] sm:$0xe] }
  0x37   : > { %2283 = vmatprep.mubr.msk.bf16.mxu1 %vm409_vm3, %v2028_v50  ;;  %v2038_v24 = vrot.slane %v593_v59, 9  ;;  %v677_v9 = vsel %vm422_vm0, %v2653_v63, 0  ;;  %v2770_v46 = vsel %vm422_vm0, %v2153_v55, 0  ;;  %v2039_v27 = vrot.slane %v594_v4, 9  ;;  %v2813_v39 = vld [vmem:[%s2535_s6 + $0x14] sm:$0x1] }
  0x38   : > { %2324 = vmatmul.mubr.msk.bf16.vlgmr.msra.gmra.mrb[0].mxu0 %vm409_vm3, %v2113_v52  ;;  %v2774_v54 = vsel %vm422_vm0, %v2747_v48, 0  ;;  %v1152_v28 = vsel %vm2685_vm7, %v2109_v0, %v1151_v2  ;;  %v1156_v63 = vsel %vm2685_vm7, %v2110_v14, %v1155_v16  ;;  %v2040_v30 = vrot.slane %v595_v20, 9  ;;  %v2143_v52 = vld [vmem:[%s2535_s6 + $0x28] sm:$0xf]  ;;  %v2832_v59 = vld [vmem:[%s2535_s6 + $0x1c] sm:$0x1] }
  0x39   : > { %2332 = vmatpush3.bf16.msra.mxu0 %v2593_v47  ;;  %2327 = vmatprep.mubr.msk.bf16.mxu0 %vm409_vm3, %v2114_v61  ;;  %v636_v22 = vrot.slane %v2632_v44, 5  ;;  %v2029_v33 = vcombine.low %v2580_v37, %v2583_v41  ;;  %v2789_v47 = vsel %vm2685_vm7, %v2036_v8, %v620_v60  ;;  %v2793_v34 = vsel %vm2685_vm7, %v2037_v15, %v624_v10  ;;  %v2840_v2 = vld [vmem:[%s2535_s6 + $0x24] sm:$0x1]  ;;  %v2145_v20 = vld [vmem:[%s2535_s6 + $0x30] sm:$0xf] }
  0x3a   : > { %2435 = vmatprep.subr.msk.bf16.mxu0 %vm422_vm0, %v2153_v55  ;;  %v2030_v44 = vcombine.low %v2627_v36, %v2636_v51  ;;  %v2803_v37 = vsel %vm2685_vm7, %v2038_v24, %v628_v13  ;;  %v2807_v41 = vsel %vm2685_vm7, %v2039_v27, %v632_v23  ;;  %v2115_v40 = vcombine.low %v1152_v28, %v1156_v63  ;;  %v2141_v36 = vld [vmem:[%s2535_s6 + $0x20] sm:$0xf]  ;;  %v2851_v15 = vld [vmem:[%s2535_s6 + $0x2c] sm:$0x1]  ;;  %v2452_v27 = vld [vmem:[%s2535_s6 + $0x30] ss:$8 sps:$4 sm:$0xff]  }
  0x3b   : > { %v2031_v43 = vcombine.low %v2648_v62, %v2658_v11  ;;  %v1395_v12 = vshrl.u32 %v2137_v5, 16  ;;  %v1398_v50 = vshll.u32 %v2137_v5, 16  ;;  %v2045_v51 = vcombine.low %v2789_v47, %v2793_v34  ;;  %v2451_v23 = vld [vmem:[%s2535_s6 + $0x20] ss:$8 sps:$4 sm:$0xff]   ;;  %v2147_v5 = vld [vmem:[%s2535_s6 + $0x38] sm:$0xf] }
  0x3c   : > { %v2822_v45 = vsel %vm2685_vm7, %v2040_v30, %v636_v22  ;;  %v2041_v55 = vrot.slane %v596_v17, 9  ;;  %v1409_v49 = vshrl.u32 %v2139_v26, 16  ;;  %v2046_v62 = vcombine.low %v2803_v37, %v2807_v41  ;;  %v2862_v17 = vld [vmem:[%s2535_s6 + $0x34] sm:$0x1] }
  0x3d   : > { %v640_v11 = vrot.slane %v2642_v56, 5  ;;  %v1397_v57 = vrot.slane %v1395_v12, 4  ;;  %v1400_v6 = vrot.slane %v1398_v50, 5  ;;  %v2042_v7 = vrot.slane %v597_v35, 9  ;;  %v2149_v12 = vld [vmem:[%s2535_s6 + $0x40] sm:$0xf] }
  0x3e   : > { %2284 = vmatmul.mubr.msk.bf16.vlgmr.msra.gmra.mrb[0].mxu1 %vm409_vm3, %v2029_v33  ;;  %v644_v58 = vrot.slane %v2663_v18, 5  ;;  %v1411_v60 = vrot.slane %v1409_v49, 4  ;;  %v1412_v61 = vshll.u32 %v2139_v26, 16  ;;  %v2043_v56 = vrot.slane %v2810_v21, 9  ;;  %v2872_v21 = vld [vmem:[%s2535_s6 + $0x3c] sm:$0x1] }
  0x3f   : > { %2292 = vmatpush3.bf16.msra.mxu1 %v677_v9  ;;  %2287 = vmatprep.mubr.msk.bf16.mxu1 %vm409_vm3, %v2030_v44  ;;  %v1404_v0 = vshll.u32 %v2813_v39, 16  ;;  %v1423_v18 = vshrl.u32 %v2141_v36, 16  ;;  %v1426_v4 = vshll.u32 %v2141_v36, 16  ;;  %v1401_v10 = vor.u32 %v1400_v6, %v1397_v57  ;;  %v2151_v6 = vld [vmem:[%s2535_s6 + $0x48] sm:$0xf] }
  0x40   : > { %2328 = vmatmul.mubr.msk.bf16.gmra.mrb[4].mxu0 %vm409_vm3, %v2115_v40  ;;  %2430 = vmatprep.subr.msk.bf16.mxu1 %vm422_vm0, %v2747_v48  ;;  %v1414_v13 = vrot.slane %v1412_v61, 5  ;;  %v1437_v14 = vshrl.u32 %v2143_v52, 16  ;;  %v1440_v16 = vshll.u32 %v2143_v52, 16  ;;  %v2847_v48 = vsel %vm2685_vm7, %v2041_v55, %v640_v11 }
  0x41   : > { %2333 = vmatprep.mubr.msk.bf16.mxu0 %vm409_vm3, %v2450_v38  ;;  %v1418_v8 = vshll.u32 %v2832_v59, 16  ;;  %v1425_v24 = vrot.slane %v1423_v18, 4  ;;  %v1428_v9 = vrot.slane %v1426_v4, 5  ;;  %v648_v28 = vrot.slane %v2669_v25, 5  ;;  %v2869_v25 = vld [vmem:[%s3058_s1 + $0x20] sm:$0xf] }
  0x42   : > { %v1415_v63 = vor.u32 %v1414_v13, %v1411_v60  ;;  %v1439_v30 = vrot.slane %v1437_v14, 4  ;;  %v1442_v22 = vrot.slane %v1440_v16, 5  ;;  %v2858_v33 = vsel %vm2685_vm7, %v2042_v7, %v644_v58  ;;  %v2897_v13 = vld [vmem:[%s2535_s6 + $0x44] sm:$0x1] }
  0x43   : > { %v1406_v47 = vrot.slane %v1404_v0, 5  ;;  %v1432_v34 = vshll.u32 %v2840_v2, 16  ;;  %v1451_v35 = vshrl.u32 %v2145_v20, 16  ;;  %v2047_v26 = vcombine.low %v2822_v45, %v2847_v48 }
  0x44   : > { %v1402_v44 = vrot.slane %v1401_v10, 4  ;;  %v1429_v38 = vor.u32 %v1428_v9, %v1425_v24  ;;  %v1454_v40 = vshll.u32 %v2145_v20, 16  ;;  %v1416_v50 = vrot.slane %v1415_v63, 4  ;;  %v2900_v20 = vld [vmem:[%s2535_s6 + $0x4c] sm:$0x1] }
  0x45   : > { %v1420_v36 = vrot.slane %v1418_v8, 5  ;;  %v1453_v55 = vrot.slane %v1451_v35, 4  ;;  %v1465_v49 = vshrl.u32 %v2147_v5, 16  ;;  %v2879_v45 = vsel %vm2685_vm7, %v2043_v56, %v648_v28  ;;  %v2453_v8 = vld [vmem:[%s2535_s6 + $0x40] ss:$8 sps:$4 sm:$0xff]  }
  0x46   : > { %2288 = vmatmul.mubr.msk.bf16.gmra.mrb[4].mxu1 %vm409_vm3, %v2031_v43  ;;  %v1443_v52 = vor.u32 %v1442_v22, %v1439_v30  ;;  %v1446_v11 = vshll.u32 %v2851_v15, 16  ;;  %v1456_v57 = vrot.slane %v1454_v40, 5  ;;  %v2884_v7 = vrot.slane %v1432_v34, 5 }
  0x47   : > { %2293 = vmatprep.mubr.msk.bf16.mxu1 %vm409_vm3, %v2045_v51  ;;  %v1460_v43 = vshll.u32 %v2862_v17, 16  ;;  %v1467_v58 = vrot.slane %v1465_v49, 4  ;;  %v1468_v60 = vshll.u32 %v2147_v5, 16  ;;  %v1407_v51 = vsel %vm2574_vm4, %v1402_v44, %v1406_v47  ;;  %v2080_v49 = vld [vmem:[%s2535_s6 + $0x30] sm:$0xf] }
  0x48   : > { %2334 = vmatmul.mubr.msk.bf16.vlgmr.msra.gmra.mrb[0].mxu0 %vm409_vm3, %v2451_v23  ;;  %v1430_v61 = vrot.slane %v1429_v38, 4  ;;  %v1457_v56 = vor.u32 %v1456_v57, %v1453_v55  ;;  %v1479_v0 = vshrl.u32 %v2149_v12, 16  ;;  %v1421_v18 = vsel %vm2574_vm4, %v1416_v50, %v1420_v36  ;;  %v2162_v38 = vld [vmem:[%s2535_s6 + $0x10] sm:$0xe]  ;;  %v2163_v50 = vld [vmem:[%s2535_s6 + $0x18] sm:$0xe] }
  0x49   : > { %2342 = vmatpush3.bf16.msra.mxu0 %v2770_v46  ;;  %2337 = vmatprep.mubr.msk.bf16.mxu0 %vm409_vm3, %v2452_v27  ;;  %v1470_v4 = vrot.slane %v1468_v60, 5  ;;  %v1474_v10 = vshll.u32 %v2872_v21, 16  ;;  %v1482_v46 = vshll.u32 %v2149_v12, 16  ;;  %v1444_v14 = vrot.slane %v1443_v52, 4  ;;  %v2454_v57 = vld [vmem:[%s2535_s6 + $0x8] ss:$8 sps:$4 sm:$0xff]  }
  0x4a   : > { %2436 = vmatprep.subr.msk.bf16.mxu0 %vm422_vm0, %v2869_v25  ;;  %v1448_v16 = vrot.slane %v1446_v11, 5  ;;  %v1481_v23 = vrot.slane %v1479_v0, 4  ;;  %v1493_v48 = vshrl.u32 %v2151_v6, 16  ;;  %v1462_v24 = vrot.slane %v1460_v43, 5 }
  0x4b   : > { %v1471_v9 = vor.u32 %v1470_v4, %v1467_v58  ;;  %v1484_v27 = vrot.slane %v1482_v46, 5  ;;  %v1496_v28 = vshll.u32 %v2151_v6, 16  ;;  %v2154_v63 = vcombine.low %v1407_v51, %v1421_v18 }
  0x4c   : > { %v1458_v30 = vrot.slane %v1457_v56, 4  ;;  %v1488_v22 = vshll.u32 %v2897_v13, 16  ;;  %v1495_v5 = vrot.slane %v1493_v48, 4  ;;  %v1476_v34 = vrot.slane %v1474_v10, 5 }
  0x4d   : > { %v1472_v47 = vrot.slane %v1471_v9, 4  ;;  %v1498_v35 = vrot.slane %v1496_v28, 5  ;;  %v1502_v44 = vshll.u32 %v2900_v20, 16  ;;  %v2048_v40 = vcombine.low %v2858_v33, %v2879_v45  ;;  %v2084_v28 = vld [vmem:[%s2535_s6 + $0x40] sm:$0xf] }
  0x4e   : > { %2294 = vmatmul.mubr.msk.bf16.vlgmr.msra.gmra.mrb[0].mxu1 %vm409_vm3, %v2046_v62  ;;  %v1485_v12 = vor.u32 %v1484_v27, %v1481_v23  ;;  %v1435_v37 = vsel %vm2574_vm4, %v1430_v61, %v2884_v7  ;;  %v1449_v41 = vsel %vm2574_vm4, %v1444_v14, %v1448_v16  ;;  %v2078_v62 = vld [vmem:[%s2535_s6 + $0x28] sm:$0xf]  ;;  %v1463_v33 = vsel %vm2574_vm4, %v1458_v30, %v1462_v24  ;;  %v2082_v27 = vld [vmem:[%s2535_s6 + $0x38] sm:$0xf] }
  0x4f   : > { %2302 = vmatpush3.bf16.msra.mxu1 %v2774_v54  ;;  %2297 = vmatprep.mubr.msk.bf16.mxu1 %vm409_vm3, %v2047_v26  ;;  %v1499_v54 = vor.u32 %v1498_v35, %v1495_v5  ;;  %v1490_v26 = vrot.slane %v1488_v22, 5  ;;  %v2170_v36 = vrot.slane %v2162_v38, 9  ;;  %v1634_v55 = vrot.slane %v2813_v39, 5  ;;  %v2456_v38 = vld [vmem:[%s2535_s6 + $0x28] ss:$8 sps:$4 sm:$0xff]  }
  0x50   : > { %2338 = vmatmul.mubr.msk.bf16.gmra.mrb[4].mxu0 %vm409_vm3, %v2453_v8  ;;  %2432 = vmatprep.subr.msk.bf16.mxu1 %vm422_vm0, %v2510_v1  ;;  %v1477_v45 = vsel %vm2574_vm4, %v1472_v47, %v1476_v34  ;;  %v1504_v52 = vrot.slane %v1502_v44, 5  ;;  %v2171_v11 = vrot.slane %v2163_v50, 9  ;;  %v1638_v1 = vrot.slane %v2832_v59, 5  ;;  %v2164_v59 = vld [vmem:[%s2535_s6 + $0x20] sm:$0xe] }
  0x51   : > { %2343 = vmatprep.mubr.msk.bf16.mxu0 %vm409_vm3, %v2154_v63  ;;  %v1486_v6 = vrot.slane %v1485_v12, 4  ;;  %v1500_v7 = vrot.slane %v1499_v54, 4  ;;  %v944_v43 = vshrl.u32 %v2078_v62, 16  ;;  %v947_v58 = vshll.u32 %v2078_v62, 16  ;;  %v2455_v63 = vld [vmem:[%s2535_s6 + $0x18] ss:$8 sps:$4 sm:$0xff]  }
  0x52   : > { %v2155_v60 = vcombine.low %v1435_v37, %v1449_v41  ;;  %v958_v51 = vshrl.u32 %v2080_v49, 16  ;;  %v961_v61 = vshll.u32 %v2080_v49, 16  ;;  %v2156_v56 = vcombine.low %v1463_v33, %v1477_v45  ;;  %v2166_v44 = vld [vmem:[%s2535_s6 + $0x30] sm:$0xe] }
  0x53   : > { %v946_v39 = vrot.slane %v944_v43, 4  ;;  %v949_v0 = vrot.slane %v947_v58, 5  ;;  %v1691_v18 = vsel %vm422_vm0, %v2869_v25, 0  ;;  %v1491_v46 = vsel %vm2574_vm4, %v1486_v6, %v1490_v26  ;;  %v2165_v25 = vld [vmem:[%s2535_s6 + $0x28] sm:$0xe] }
  0x54   : > { %v960_v4 = vrot.slane %v958_v51, 4  ;;  %v963_v10 = vrot.slane %v961_v61, 5  ;;  %v1505_v14 = vsel %vm2574_vm4, %v1500_v7, %v1504_v52  ;;  %v1635_v16 = vsel %vm2685_vm7, %v2170_v36, %v1634_v55  ;;  %v2168_v6 = vld [vmem:[%s2535_s6 + $0x40] sm:$0xe]  ;;  %v2169_v7 = vld [vmem:[%s2535_s6 + $0x48] sm:$0xe] }
  0x55   : > { %v1639_v23 = vsel %vm2685_vm7, %v2171_v11, %v1638_v1  ;;  %v950_v48 = vor.u32 %v949_v0, %v946_v39  ;;  %v953_v8 = vshll.u32 %v2705_v42, 16  ;;  %v967_v9 = vshll.u32 %v2708_v29, 16  ;;  %v2167_v42 = vld [vmem:[%s2535_s6 + $0x38] sm:$0xe] }
  0x56   : > { %2298 = vmatmul.mubr.msk.bf16.gmra.mrb[4].mxu1 %vm409_vm3, %v2048_v40  ;;  %v964_v24 = vor.u32 %v963_v10, %v960_v4  ;;  %v2172_v30 = vrot.slane %v2164_v59, 9  ;;  %v1642_v22 = vrot.slane %v2840_v2, 5  ;;  %v2157_v5 = vcombine.low %v1491_v46, %v1505_v14 }
  0x57   : > { %2303 = vmatprep.mubr.msk.bf16.mxu1 %vm409_vm3, %v2454_v57  ;;  %v2179_v47 = vcombine.low %v1635_v16, %v1639_v23  ;;  %v2173_v34 = vrot.slane %v2165_v25, 9  ;;  %v1646_v35 = vrot.slane %v2851_v15, 5  ;;  %v972_v40 = vshrl.u32 %v2082_v27, 16  ;;  %v2457_v57 = vld [vmem:[%s2535_s6 + $0x38] ss:$8 sps:$4 sm:$0xff]   ;;  %s261_s6 = scalar_lea.vmem %s3062_s5, %s3068_s19 }
  0x58   : > { %2344 = vmatmul.mubr.msk.bf16.vlgmr.msra.gmra.mrb[0].mxu0 %vm409_vm3, %v2155_v60  ;;  %v975_v12 = vshll.u32 %v2082_v27, 16  ;;  %v986_v29 = vshrl.u32 %v2084_v28, 16  ;;  %v989_v50 = vshll.u32 %v2084_v28, 16  ;;  %v951_v37 = vrot.slane %v950_v48, 4 }
  0x59   : > { %2352 = vmatpush3.bf16.msra.mxu0 %v1691_v18  ;;  %2347 = vmatprep.mubr.msk.bf16.mxu0 %vm409_vm3, %v2156_v56  ;;  %v955_v41 = vrot.slane %v953_v8, 5  ;;  %v965_v54 = vrot.slane %v964_v24, 4  ;;  %v969_v62 = vrot.slane %v967_v9, 5  ;;  %v2174_v33 = vrot.slane %v2166_v44, 9 }
  0x5a   : > { %v1650_v26 = vrot.slane %v2862_v17, 5  ;;  %v2175_v2 = vrot.slane %v2167_v42, 9  ;;  %v1654_v36 = vrot.slane %v2872_v21, 5  ;;  %v974_v15 = vrot.slane %v972_v40, 4 }
  0x5b   : > { %v977_v55 = vrot.slane %v975_v12, 5  ;;  %v988_v49 = vrot.slane %v986_v29, 4  ;;  %v991_v45 = vrot.slane %v989_v50, 5  ;;  %v981_v52 = vshll.u32 %v2716_v31, 16 }
  0x5c   : > { %v956_v17 = vsel %vm2574_vm4, %v951_v37, %v955_v41  ;;  %v970_v21 = vsel %vm2574_vm4, %v965_v54, %v969_v62  ;;  %v1647_v11 = vsel %vm2685_vm7, %v2173_v34, %v1646_v35  ;;  %v1651_v1 = vsel %vm2685_vm7, %v2174_v33, %v1650_v26  ;;  %v2225_v33 = vld [vmem:[%s3003_s22 + $0x18] sm:$0xff]  }
  0x5d   : > { %v1655_v31 = vsel %vm2685_vm7, %v2175_v2, %v1654_v36  ;;  %v995_v43 = vshll.u32 %v2738_v19, 16  ;;  %v2089_v58 = vcombine.low %v956_v17, %v970_v21  ;;  %v978_v60 = vor.u32 %v977_v55, %v974_v15  ;;  %v2224_v15 = vld [vmem:[%s3003_s22 + $0x10] sm:$0xff]  }
  0x5e   : > { %2304 = vmatmul.mubr.msk.bf16.vlgmr.msra.gmra.mrb[0].mxu1 %vm409_vm3, %v2455_v63  ;;  %v992_v51 = vor.u32 %v991_v45, %v988_v49  ;;  %v2181_v56 = vcombine.low %v1651_v1, %v1655_v31  ;;  %v2176_v39 = vrot.slane %v2168_v6, 9  ;;  %v1658_v0 = vrot.slane %v2897_v13, 5 }
  0x5f   : > { %2362 = vmatpush3.bf16.msra.mxu1 %v2518_v3  ;;  %2307 = vmatprep.mubr.msk.bf16.mxu1 %vm409_vm3, %v2456_v38  ;;  %v1643_v3 = vsel %vm2685_vm7, %v2172_v30, %v1642_v22  ;;  %v2177_v18 = vrot.slane %v2169_v7, 9  ;;  %v1662_v59 = vrot.slane %v2900_v20, 5  ;;  %v983_v4 = vrot.slane %v981_v52, 5 }
  0x60   : > { %2348 = vmatmul.mubr.msk.bf16.gmra.mrb[4].mxu0 %vm409_vm3, %v2157_v5  ;;  %v2180_v61 = vcombine.low %v1643_v3, %v1647_v11  ;;  %v997_v10 = vrot.slane %v995_v43, 5  ;;  %v979_v46 = vrot.slane %v978_v60, 4  ;;  %v993_v19 = vrot.slane %v992_v51, 4 }
  0x61   : > { %2353 = vmatprep.mubr.msk.bf16.mxu0 %vm409_vm3, %v2179_v47  ;;  %v1659_v14 = vsel %vm2685_vm7, %v2176_v39, %v1658_v0  ;;  %v1663_v13 = vsel %vm2685_vm7, %v2177_v18, %v1662_v59  ;;  %v2213_v27 = vunpack.c.l.bf16 %v2223_v32  ;;  %v2209_v63 = vunpack.c.l.bf16 %v2208_v53 }
  0x62   : > { %v984_v20 = vsel %vm2574_vm4, %v979_v46, %v983_v4  ;;  %v998_v16 = vsel %vm2574_vm4, %v993_v19, %v997_v10  ;;  %v2182_v23 = vcombine.low %v1659_v14, %v1663_v13  ;;  %v2214_v5 = vunpack.c.h.bf16 %v2223_v32 }
  0x63   : > { %v2090_v25 = vcombine.low %v984_v20, %v998_v16  ;;  %v2210_v35 = vunpack.c.h.bf16 %v2208_v53  ;;  %v2221_v3 = vunpack.c.l.bf16 %v2225_v33  ;;  %v2222_v6 = vunpack.c.h.bf16 %v2225_v33 }
  0x64   : > { %v2218_v43 = vunpack.c.h.bf16 %v2224_v15 }
  0x66   : > { %2308 = vmatmul.mubr.msk.bf16.gmra.mrb[4].mxu1 %vm409_vm3, %v2457_v57  ;;  %v2217_v57 = vunpack.c.l.bf16 %v2224_v15 }
  0x67   : > { %2317 = vmatprep.mubr.msk.bf16.mxu1 %vm409_vm3, %v2089_v58 }
  0x68   : > { %2354 = vmatmul.mubr.msk.bf16.vlgmr.msra.gmra.mrb[0].mxu0 %vm409_vm3, %v2180_v61 }
  0x69   : > { %2357 = vmatprep.mubr.msk.bf16.mxu0 %vm409_vm3, %v2181_v56 }
  0x70   : > { %2358 = vmatmul.mubr.msk.bf16.gmra.mrb[4].mxu0 %vm409_vm3, %v2182_v23 }
  0x72   : > { %2318 = vmatmul.mubr.msk.bf16.vlgmr.msra.gmra.mrb[4].mxu1 %vm409_vm3, %v2090_v25 }
 0x131   : > { %v2305_v48 = vpop.f32.mrb[0].mxu1 }
 0x132   : > { %v832_v8 = vpop.f32.mrb[1].mxu1 }
 0x133   : > { %v2306_v24 = vpop.f32.mrb[2].mxu1 }
 0x134   : > { %v835_v9 = vpop.f32.mrb[3].mxu1 }
 0x13b   : > { %v2355_v28 = vpop.f32.mrb[0].mxu0 }
 0x13c   : > { %v2363_v30 = vadd.f32 %v2355_v28, %v2305_v48  ;;  %v1727_v22 = vpop.f32.mrb[1].mxu0 }
 0x13d   : > { %v2364_v47 = vadd.f32 %v1727_v22, %v832_v8  ;;  %v2356_v34 = vpop.f32.mrb[2].mxu0 }
 0x13e   : > { %v1784_v44 = vadd.f32 %v2363_v30, %v2213_v27  ;;  %v2365_v42 = vadd.f32 %v2356_v34, %v2306_v24  ;;  %v1730_v38 = vpop.f32.mrb[3].mxu0 }
 0x13f   : > { %v1782_v40 = vadd.f32 %v2364_v47, %v2209_v63  ;;  %v2366_v12 = vadd.f32 %v1730_v38, %v835_v9 }
 0x140   : > { %v2201_v29 = vpack.c.bf16 %v1784_v44, %v1784_v44  ;;  %v1785_v50 = vadd.f32 %v2365_v42, %v2214_v5 }
 0x141   : > { %v2199_v37 = vpack.c.bf16 %v1782_v40, %v1782_v40  ;;  %v1783_v41 = vadd.f32 %v2366_v12, %v2210_v35 }
 0x142   : > { %1825 = vst.msk [vmem:[%s3010_s25 + $0x8] sm:$0xf] %vm1822_vm8, %v2201_v29  ;;  %v1791_v54 = vpack.c.bf16 %v1785_v50, %v1784_v44  ;;  %v2202_v62 = vpack.c.bf16 %v1785_v50, %v1785_v50 }
 0x143   : > { %1823 = vst.msk [vmem:[%s3010_s25] sm:$0xf] %vm1822_vm8, %v2199_v37  ;;  %v1790_v26 = vpack.c.bf16 %v1783_v41, %v1782_v40  ;;  %v2200_v2 = vpack.c.bf16 %v1783_v41, %v1783_v41  ;;  %v2359_v36 = vpop.f32.mrb[4].mxu0 }
 0x144   : > { %1826 = vst.msk [vmem:[%s3010_s25 + $0xc] sm:$0xf] %vm1822_vm8, %v2202_v62  ;;  %v1833_v55 = vunpack.c.l.bf16 %v1791_v54  ;;  %v1834_v49 = vunpack.c.h.bf16 %v1791_v54  ;;  %v1743_v45 = vpop.f32.mrb[5].mxu0 }
 0x145   : > { %1824 = vst.msk [vmem:[%s3010_s25 + $0x4] sm:$0xf] %vm1822_vm8, %v2200_v2  ;;  %v1831_v52 = vunpack.c.l.bf16 %v1790_v26  ;;  %v1832_v17 = vunpack.c.h.bf16 %v1790_v26  ;;  %v2319_v21 = vpop.f32.mrb[4].mxu1  ;;  %v2360_v11 = vpop.f32.mrb[6].mxu0 }
 0x146   : > { %v1864_v1 = vmul.f32 %v1833_v55, %v1833_v55  ;;  %v1078_v31 = vpop.f32.mrb[5].mxu1  ;;  %v1746_v7 = vpop.f32.mrb[7].mxu0  ;;  %v1842_v39 = vsel %vm409_vm3, %v1833_v55, 0.0  ;;  %v1865_v0 = vmul.f32 %v1834_v49, %v1834_v49  ;;  %v2367_v59 = vadd.f32 %v2359_v36, %v2319_v21 }
 0x147   : > { %v1839_v58 = vsel %vm409_vm3, %v1831_v52, 0.0  ;;  %v1840_v60 = vsel %vm409_vm3, %v1832_v17, 0.0  ;;  %v1862_v51 = vmul.f32 %v1831_v52, %v1831_v52  ;;  %v1863_v61 = vmul.f32 %v1832_v17, %v1832_v17  ;;  %v2320_v56 = vpop.f32.mrb[6].mxu1 }
 0x148   : > { %v1841_v18 = vadd.f32 %v1840_v60, %v1839_v58  ;;  %v1081_v4 = vpop.f32.mrb[7].mxu1  ;;  %v2368_v19 = vadd.f32 %v1743_v45, %v1078_v31  ;;  %v2369_v14 = vadd.f32 %v2360_v11, %v2320_v56  ;;  %v1788_v16 = vadd.f32 %v2367_v59, %v2221_v3 }
 0x149   : > { %v1870_v10 = vsel %vm409_vm3, %v1862_v51, 0.0  ;;  %v1871_v46 = vsel %vm409_vm3, %v1863_v61, 0.0  ;;  %v2370_v23 = vadd.f32 %v1746_v7, %v1081_v4  ;;  %v1844_v25 = vsel %vm409_vm3, %v1834_v49, 0.0 }
 0x14a   : > { %v1843_v13 = vadd.f32 %v1842_v39, %v1841_v18  ;;  %v1872_v20 = vadd.f32 %v1871_v46, %v1870_v10  ;;  %v1873_v48 = vsel %vm409_vm3, %v1864_v1, 0.0  ;;  %v1786_v8 = vadd.f32 %v2368_v19, %v2217_v57 }
 0x14b   : > { %v1789_v24 = vadd.f32 %v2369_v14, %v2222_v6  ;;  %v2205_v32 = vpack.c.bf16 %v1788_v16, %v1788_v16  ;;  %v1787_v53 = vadd.f32 %v2370_v23, %v2218_v43  ;;  %v1875_v28 = vsel %vm409_vm3, %v1865_v0, 0.0 }
 0x14c   : > { %v1874_v9 = vadd.f32 %v1873_v48, %v1872_v20  ;;  %v1845_v27 = vadd.f32 %v1844_v25, %v1843_v13  ;;  %v2203_v63 = vpack.c.bf16 %v1786_v8, %v1786_v8 }
 0x14d   : > { %v1793_v30 = vpack.c.bf16 %v1789_v24, %v1788_v16  ;;  %v2206_v22 = vpack.c.bf16 %v1789_v24, %v1789_v24  ;;  %1829 = vst.msk [vmem:[%s3010_s25 + $0x18] sm:$0xf] %vm1822_vm8, %v2205_v32  ;;  %v1792_v5 = vpack.c.bf16 %v1787_v53, %v1786_v8  ;;  %v2204_v47 = vpack.c.bf16 %v1787_v53, %v1787_v53 }
 0x14e   : > { %v1876_v34 = vadd.f32 %v1875_v28, %v1874_v9  ;;  %1827 = vst.msk [vmem:[%s3010_s25 + $0x10] sm:$0xf] %vm1822_vm8, %v2203_v63 }
 0x14f   : > { %1830 = vst.msk [vmem:[%s3010_s25 + $0x1c] sm:$0xf] %vm1822_vm8, %v2206_v22  ;;  %v1837_v35 = vunpack.c.l.bf16 %v1793_v30  ;;  %1828 = vst.msk [vmem:[%s3010_s25 + $0x14] sm:$0xf] %vm1822_vm8, %v2204_v47  ;;  %v1835_v44 = vunpack.c.l.bf16 %v1792_v5  ;;  %v1836_v42 = vunpack.c.h.bf16 %v1792_v5  ;;  %v1838_v38 = vunpack.c.h.bf16 %v1793_v30 }
 0x151   : > { %v1846_v40 = vsel %vm409_vm3, %v1835_v44, 0.0  ;;  %v1866_v12 = vmul.f32 %v1835_v44, %v1835_v44  ;;  %v1867_v29 = vmul.f32 %v1836_v42, %v1836_v42  ;;  %v1868_v37 = vmul.f32 %v1837_v35, %v1837_v35 }
 0x152   : > { %v1847_v50 = vadd.f32 %v1846_v40, %v1845_v27  ;;  %v1848_v41 = vsel %vm409_vm3, %v1836_v42, 0.0  ;;  %v1850_v26 = vsel %vm409_vm3, %v1837_v35, 0.0  ;;  %v1869_v2 = vmul.f32 %v1838_v38, %v1838_v38 }
 0x153   : > { %v1877_v54 = vsel %vm409_vm3, %v1866_v12, 0.0  ;;  %v1879_v36 = vsel %vm409_vm3, %v1867_v29, 0.0  ;;  %v1852_v49 = vsel %vm409_vm3, %v1838_v38, 0.0  ;;  %v1881_v45 = vsel %vm409_vm3, %v1868_v37, 0.0 }
 0x154   : > { %v1849_v62 = vadd.f32 %v1848_v41, %v1847_v50  ;;  %v1878_v33 = vadd.f32 %v1877_v54, %v1876_v34  ;;  %v1883_v21 = vsel %vm409_vm3, %v1869_v2, 0.0 }
 0x156   : > { %v1851_v15 = vadd.f32 %v1850_v26, %v1849_v62  ;;  %v1880_v55 = vadd.f32 %v1879_v36, %v1878_v33 }
 0x158   : > { %v1853_v52 = vadd.f32 %v1852_v49, %v1851_v15  ;;  %v1882_v17 = vadd.f32 %v1881_v45, %v1880_v55 }
 0x15a   : > { %v1854_v3 = vrot.slane %v1853_v52, 4  ;;  %v1884_v11 = vadd.f32 %v1883_v21, %v1882_v17 }
 0x15c   : > { %v1855_v1 = vadd.f32 %v1854_v3, %v1853_v52  ;;  %v1885_v31 = vrot.slane %v1884_v11, 4 }
 0x15e   : > { %v1856_v57 = vrot.slane %v1855_v1, 2  ;;  %v1886_v6 = vadd.f32 %v1885_v31, %v1884_v11 }
 0x160   : > { %v1857_v7 = vadd.f32 %v1856_v57, %v1855_v1  ;;  %v1887_v43 = vrot.slane %v1886_v6, 2 }
 0x162   : > { %v1858_v58 = vrot.slane %v1857_v7, 1  ;;  %v1888_v60 = vadd.f32 %v1887_v43, %v1886_v6 }
 0x164   : > { %v1859_v51 = vadd.f32 %v1858_v58, %v1857_v7  ;;  %v1889_v61 = vrot.slane %v1888_v60, 1 }
 0x166   : > { %1861 = vst.msk [vmem:[%s258_s28] sm:$0x1] %vm1860_vm9, %v1859_v51  ;;  %v1890_v56 = vadd.f32 %v1889_v61, %v1888_v60 }
 0x168   : > { %1891 = vst.msk [vmem:[%s261_s6] sm:$0x1] %vm1860_vm9, %v1890_v56 }
 0x169 PF: > { %s16_s18 = sadd.s32 1, %s2464_s18  }
 0x16a   : > { %p13_p4 = scmp.ge.s32.totalorder %s16_s18, 4  }
 0x16c   :  { %15 = sbr.rel (!%p13_p4) target bundleno = 1 (0x1), region = 99 }

// kernel: network_block_forward.17
= control target key start
LH: loop header
LB: loop body
LE: loop exit
PB: predicated region body
PF: predicated region fallthrough
CT: control target
= control target key end

     0   :  { %s2304_s12 = smov 0   ;;  %s2835_s0 = inlined_call_operand.vmem [shape: bf16[2,1,10,10,8], index: 0, kind: input, shape index: {}]   ;;  %s2836_s1 = inlined_call_operand.vmem [shape: bf16[9,8,8], index: 1, kind: input, shape index: {}]   ;;  %s2837_s2 = inlined_call_operand.vmem [shape: bf16[2,8,8,8], index: 2, kind: input, shape index: {}]   ;;  %s2838_s3 = inlined_call_operand.vmem [shape: bf16[2,8,8,8], index: 3, kind: output, shape index: {}]  }
   0x1 LB: > { %s1827_s13 = sadd.s32 4294967295, %s2282_s12   ;;  %p1831_p0 = scmp.ge.s32.totalorder %s2282_s12, 1  ;;  %s2282_s12 = sphi %s2304_s12, %s13_s12  }
   0x2   : > { %p147_p1 = scmp.lt.s32.totalorder %s2282_s12, 3 }
   0x4   : > { %p148_p2 = pnand %p1831_p0, %p147_p1 }
   0x5   : > { %v1837_v0 = vld [vmem:[%s2836_s1 + $0x4] sm:$0xf] (!%p148_p2)  ;;  %vm351_vm0 = vcmask (!%p148_p2), 1043456   ;;  %v2318_v1 = vld [vmem:[%s2836_s1 + $0x10] sm:$0xf] (!%p148_p2)  ;;  %p176_p3 = scmp.lt.s32.totalorder (!%p148_p2), %s1827_s13, 1 }
   0x6   : > { %151 = sbr.rel (%p148_p2) target bundleno = 336 (0x150), region = 32  ;;  %2245 = vmatprep.subr.msk.bf16.mxu1 (!%p148_p2), %vm351_vm0, %v1837_v0  ;;  %2249 = vmatprep.subr.msk.bf16.mxu0 (!%p148_p2), %vm351_vm0, %v2318_v1  ;;  %v353_v2 = vsel (!%p148_p2), %vm351_vm0, %v1837_v0, 0  ;;  %v2326_v3 = vsel (!%p148_p2), %vm351_vm0, %v2318_v1, 0  ;;  %v200_v4 = vld [vmem:[%s2836_s1] sm:$0xf] (!%p148_p2)  ;;  %vm338_vm3 = vcmask (!%p148_p2), 64512  }
   0x7   : > { %2090 = vmatpush3.bf16.msra.mxu1 (!%p148_p2), %v353_v2  ;;  %2130 = vmatpush3.bf16.msra.mxu0 (!%p148_p2), %v2326_v3  ;;  %v1929_v5 = vld [vmem:[%s2836_s1 + $0x14] sm:$0xf] (!%p148_p2)  ;;  %vm209_vm1 = vsmask.f32 (!%p148_p2), 3328  ;;  %vm210_vm2 = vsmask.f32 (!%p148_p2), 7440 }
   0x8   : > { %2246 = vmatprep.subr.msk.bf16.mxu1 (!%p148_p2), %vm351_vm0, %v200_v4  ;;  %2251 = vmatprep.subr.msk.bf16.mxu0 (!%p148_p2), %vm351_vm0, %v1929_v5  ;;  %v2365_v17 = vsel (!%p148_p2), %vm351_vm0, %v200_v4, 0  ;;  %v2378_v31 = vld [vmem:[%s2836_s1 + $0x18] sm:$0xf] (!%p148_p2)  ;;  %vm2382_vm4 = vmor (!%p148_p2), %vm209_vm1, %vm210_vm2  ;;  %v2394_v42 = vsel (!%p148_p2), %vm351_vm0, %v1929_v5, 0  ;;  %vm544_vm5 = vcmask (!%p148_p2), 1042432   ;;  %vm545_vm6 = vcmask (!%p148_p2), 1046532  }
   0x9   : > { %v2401_v47 = vsel (!%p148_p2), %vm351_vm0, %v2378_v31, 0  ;;  %vm2493_vm7 = vmor (!%p148_p2), %vm544_vm5, %vm545_vm6  ;;  %vm1751_vm8 = vcmask (!%p148_p2), 60416  }
   0xd   : > { %s2844_s13 = smov (!%p176_p3, %s1827_s13), 1 }
   0xe   : > { %s2255_s22 = smul.u32 80, %s2844_s13  ;;  %s2015_s9 = sshll.u32 %s2844_s13, 5 }
   0xf   : > { %s185_s14 = scalar_lea.vmem %s2837_s2, %s2015_s9  ;;  %s2814_s16 = scalar_lea.vmem %s2838_s3, %s2015_s9 }
  0x10   : > { %s2343_s25 = scalar_lea.vmem %s2835_s0, %s2255_s22 }
  0x11   : > { %v2346_v6 = vld [vmem:[%s2343_s25] sm:$0xf]  ;;  %v2349_v7 = vld [vmem:[%s2343_s25 + $0x8] sm:$0xf]  ;;  %v2352_v8 = vld [vmem:[%s2343_s25 + $0x4] sm:$0x1] }
  0x12   : > { %v2355_v9 = vld [vmem:[%s2343_s25 + $0xc] sm:$0x1]  ;;  %v213_v10 = vshrl.u32 %v2346_v6, 16  ;;  %v216_v11 = vshll.u32 %v2346_v6, 16  ;;  %v222_v12 = vshll.u32 %v2352_v8, 16  ;;  %v227_v13 = vshrl.u32 %v2349_v7, 16 }
  0x13   : > { %v230_v14 = vshll.u32 %v2349_v7, 16  ;;  %v236_v15 = vshll.u32 %v2355_v9, 16  ;;  %v1888_v16 = vld [vmem:[%s2343_s25 + $0x8] sm:$0xf]  ;;  %v2368_v22 = vld [vmem:[%s2343_s25 + $0xc] sm:$0x1] }
  0x14   : > { %v215_v18 = vrot.slane %v213_v10, 4  ;;  %v218_v19 = vrot.slane %v216_v11, 5  ;;  %v224_v20 = vrot.slane %v222_v12, 5  ;;  %v229_v21 = vrot.slane %v227_v13, 4  ;;  %v1890_v25 = vld [vmem:[%s2343_s25 + $0x10] sm:$0xf] }
  0x15   : > { %v232_v23 = vrot.slane %v230_v14, 5  ;;  %v238_v24 = vrot.slane %v236_v15, 5  ;;  %v2372_v26 = vld [vmem:[%s2343_s25 + $0x14] sm:$0x1]  ;;  %v817_v28 = vshrl.u32 %v1888_v16, 16  ;;  %v820_v29 = vshll.u32 %v1888_v16, 16 }
  0x16   : > { %v219_v27 = vor.u32 %v218_v19, %v215_v18  ;;  %v826_v30 = vshll.u32 %v2368_v22, 16  ;;  %v831_v34 = vshrl.u32 %v1890_v25, 16  ;;  %v834_v35 = vshll.u32 %v1890_v25, 16  ;;  %v2388_v37 = vld [vmem:[%s2343_s25 + $0x10] sm:$0xf] }
  0x17   : > { %v233_v33 = vor.u32 %v232_v23, %v229_v21  ;;  %v840_v36 = vshll.u32 %v2372_v26, 16  ;;  %v819_v39 = vrot.slane %v817_v28, 4  ;;  %v822_v40 = vrot.slane %v820_v29, 5  ;;  %v2391_v41 = vld [vmem:[%s2343_s25 + $0x18] sm:$0xf] }
  0x18   : > { %v220_v38 = vrot.slane %v219_v27, 4  ;;  %v833_v44 = vrot.slane %v831_v34, 4  ;;  %v836_v45 = vrot.slane %v834_v35, 5  ;;  %v2397_v46 = vld [vmem:[%s2343_s25 + $0x14] sm:$0x1]  ;;  %v828_v50 = vrot.slane %v826_v30, 5 }
  0x19   : > { %v234_v43 = vrot.slane %v233_v33, 4  ;;  %v823_v49 = vor.u32 %v822_v40, %v819_v39  ;;  %v842_v51 = vrot.slane %v840_v36, 5  ;;  %v2408_v54 = vld [vmem:[%s2343_s25 + $0x1c] sm:$0x1]  ;;  %v241_v55 = vshrl.u32 %v2388_v37, 16 }
  0x1a   : > { %v225_v48 = vsel %vm2382_vm4, %v220_v38, %v224_v20  ;;  %v837_v53 = vor.u32 %v836_v45, %v833_v44  ;;  %v244_v56 = vshll.u32 %v2388_v37, 16  ;;  %v250_v59 = vshll.u32 %v2397_v46, 16  ;;  %v1892_v2 = vld [vmem:[%s2343_s25 + $0x18] sm:$0xf]  ;;  %v2422_v12 = vld [vmem:[%s2343_s25 + $0x1c] sm:$0x1] }
  0x1b   : > { %v239_v52 = vsel %vm2382_vm4, %v234_v43, %v238_v24  ;;  %v824_v58 = vrot.slane %v823_v49, 4  ;;  %v255_v60 = vshrl.u32 %v2391_v41, 16  ;;  %v243_v62 = vrot.slane %v241_v55, 4  ;;  %v1894_v18 = vld [vmem:[%s2343_s25 + $0x20] sm:$0xf] }
  0x1c   : > { %v1838_v57 = vcombine.low %v225_v48, %v239_v52  ;;  %v838_v61 = vrot.slane %v837_v53, 4  ;;  %v246_v63 = vrot.slane %v244_v56, 5  ;;  %v258_v0 = vshll.u32 %v2391_v41, 16  ;;  %v2428_v19 = vld [vmem:[%s2343_s25 + $0x24] sm:$0x1] }
  0x1d   : > { %v829_v4 = vsel %vm2382_vm4, %v824_v58, %v828_v50  ;;  %v1056_v5 = vrot.slane %v2368_v22, 5  ;;  %v257_v10 = vrot.slane %v255_v60, 4  ;;  %v264_v11 = vshll.u32 %v2408_v54, 16  ;;  %v2435_v36 = vld [vmem:[%s2343_s25 + $0x20] sm:$0xf] }
  0x1e   : > { %2091 = vmatprep.mubr.msk.bf16.mxu1 %vm338_vm3, %v1838_v57  ;;  %v843_v13 = vsel %vm2382_vm4, %v838_v61, %v842_v51  ;;  %v247_v14 = vor.u32 %v246_v63, %v243_v62  ;;  %v252_v15 = vrot.slane %v250_v59, 5  ;;  %v260_v16 = vrot.slane %v258_v0, 5  ;;  %v2440_v44 = vld [vmem:[%s2343_s25 + $0x24] sm:$0x1]  ;;  %v2444_v51 = vld [vmem:[%s2343_s25 + $0x28] sm:$0xf] }
  0x1f   : > { %v1905_v20 = vcombine.low %v829_v4, %v843_v13  ;;  %v1060_v21 = vrot.slane %v2372_v26, 5  ;;  %v266_v23 = vrot.slane %v264_v11, 5  ;;  %v845_v24 = vshrl.u32 %v1892_v2, 16  ;;  %v2450_v56 = vld [vmem:[%s2343_s25 + $0x2c] sm:$0x1] }
  0x20   : > { %v248_v25 = vrot.slane %v247_v14, 4  ;;  %v261_v27 = vor.u32 %v260_v16, %v257_v10  ;;  %v848_v28 = vshll.u32 %v1892_v2, 16  ;;  %v854_v29 = vshll.u32 %v2422_v12, 16  ;;  %v2456_v62 = vld [vmem:[%s2343_s25 + $0x30] sm:$0xf] }
  0x21   : > { %2131 = vmatprep.mubr.msk.bf16.mxu0 %vm338_vm3, %v1905_v20  ;;  %v847_v30 = vrot.slane %v845_v24, 4  ;;  %v859_v33 = vshrl.u32 %v1894_v18, 16  ;;  %v862_v34 = vshll.u32 %v1894_v18, 16  ;;  %v868_v35 = vshll.u32 %v2428_v19, 16  ;;  %v2461_v63 = vld [vmem:[%s2836_s1 + $0x8] sm:$0xf] }
  0x22   : > { %v253_v38 = vsel %vm2382_vm4, %v248_v25, %v252_v15  ;;  %v262_v39 = vrot.slane %v261_v27, 4  ;;  %v850_v40 = vrot.slane %v848_v28, 5  ;;  %v856_v43 = vrot.slane %v854_v29, 5  ;;  %v2466_v11 = vld [vmem:[%s2343_s25 + $0x38] sm:$0xf] }
  0x23   : > { %v861_v45 = vrot.slane %v859_v33, 4  ;;  %v864_v48 = vrot.slane %v862_v34, 5  ;;  %v870_v49 = vrot.slane %v868_v35, 5  ;;  %v1064_v50 = vrot.slane %v2422_v12, 5  ;;  %v2471_v18 = vld [vmem:[%s2343_s25 + $0x34] sm:$0x1] }
  0x24   : > { %v267_v52 = vsel %vm2382_vm4, %v262_v39, %v266_v23  ;;  %v851_v53 = vor.u32 %v850_v40, %v847_v30  ;;  %v1068_v55 = vrot.slane %v2428_v19, 5  ;;  %v269_v57 = vshrl.u32 %v2435_v36, 16  ;;  %v2477_v25 = vld [vmem:[%s2343_s25 + $0x3c] sm:$0x1]  ;;  %v1913_v34 = vld [vmem:[%s2343_s25 + $0x8] sm:$0xe] }
  0x25   : > { %v1839_v58 = vcombine.low %v253_v38, %v267_v52  ;;  %v865_v59 = vor.u32 %v864_v48, %v861_v45  ;;  %v272_v60 = vshll.u32 %v2435_v36, 16  ;;  %v278_v61 = vshll.u32 %v2440_v44, 16  ;;  %v2546_v19 = vld [vmem:[%s2343_s25 + $0x44] sm:$0x1] }
  0x26   : > { %v852_v0 = vrot.slane %v851_v53, 4  ;;  %v271_v2 = vrot.slane %v269_v57, 4  ;;  %v283_v4 = vshrl.u32 %v2444_v51, 16  ;;  %v286_v10 = vshll.u32 %v2444_v51, 16  ;;  %v1916_v57 = vld [vmem:[%s2343_s25 + $0x20] sm:$0xe] }
  0x27   : > { %2092 = vmatmul.mubr.msk.bf16.vlgmr.msra.gmra.mrb[0].mxu1 %vm338_vm3, %v1839_v58  ;;  %v866_v13 = vrot.slane %v865_v59, 4  ;;  %v274_v14 = vrot.slane %v272_v60, 5  ;;  %v280_v15 = vrot.slane %v278_v61, 5  ;;  %v292_v16 = vshll.u32 %v2450_v56, 16  ;;  %v2041_v53 = vld [vmem:[%s185_s14 + $0x8] sm:$0xff]  }
  0x28   : > { %2100 = vmatpush3.bf16.msra.mxu1 %v2365_v17  ;;  %v857_v20 = vsel %vm2382_vm4, %v852_v0, %v856_v43  ;;  %v285_v23 = vrot.slane %v283_v4, 4  ;;  %v288_v24 = vrot.slane %v286_v10, 5  ;;  %v297_v27 = vshrl.u32 %v2456_v62, 16  ;;  %v1914_v17 = vld [vmem:[%s2343_s25 + $0x10] sm:$0xe] }
  0x29   : > { %v871_v28 = vsel %vm2382_vm4, %v866_v13, %v870_v49  ;;  %v275_v29 = vor.u32 %v274_v14, %v271_v2  ;;  %v294_v30 = vrot.slane %v292_v16, 5  ;;  %v300_v33 = vshll.u32 %v2456_v62, 16  ;;  %2247 = vmatprep.subr.msk.bf16.mxu1 %vm351_vm0, %v2461_v63  ;;  %v1915_v43 = vld [vmem:[%s2343_s25 + $0x18] sm:$0xe]  ;;  %v1917_v0 = vld [vmem:[%s2343_s25 + $0x28] sm:$0xe] }
  0x2a   : > { %v1906_v35 = vcombine.low %v857_v20, %v871_v28  ;;  %v289_v38 = vor.u32 %v288_v24, %v285_v23  ;;  %v299_v39 = vrot.slane %v297_v27, 4  ;;  %v306_v40 = vshll.u32 %v2471_v18, 16 }
  0x2b   : > { %v276_v45 = vrot.slane %v275_v29, 4  ;;  %v302_v48 = vrot.slane %v300_v33, 5  ;;  %v311_v49 = vshrl.u32 %v2466_v11, 16  ;;  %v314_v52 = vshll.u32 %v2466_v11, 16  ;;  %v2516_v29 = vld [vmem:[%s2343_s25 + $0x34] sm:$0x1] }
  0x2c   : > { %2132 = vmatmul.mubr.msk.bf16.vlgmr.msra.gmra.mrb[0].mxu0 %vm338_vm3, %v1906_v35  ;;  %v290_v58 = vrot.slane %v289_v38, 4  ;;  %v308_v59 = vrot.slane %v306_v40, 5  ;;  %v320_v60 = vshll.u32 %v2477_v25, 16  ;;  %v1921_v61 = vrot.slane %v1913_v34, 9  ;;  %v1919_v38 = vld [vmem:[%s2343_s25 + $0x38] sm:$0xe] }
  0x2d   : > { %2140 = vmatpush3.bf16.msra.mxu0 %v2394_v42  ;;  %v281_v2 = vsel %vm2382_vm4, %v276_v45, %v280_v15  ;;  %v303_v4 = vor.u32 %v302_v48, %v299_v39  ;;  %v313_v10 = vrot.slane %v311_v49, 4  ;;  %v316_v13 = vrot.slane %v314_v52, 5  ;;  %v2513_v42 = vld [vmem:[%s2343_s25 + $0x2c] sm:$0x1]  ;;  %v1920_v45 = vld [vmem:[%s2343_s25 + $0x40] sm:$0xe] }
  0x2e   : > { %v295_v14 = vsel %vm2382_vm4, %v290_v58, %v294_v30  ;;  %v322_v16 = vrot.slane %v320_v60, 5  ;;  %v1057_v20 = vsel %vm2493_vm7, %v1921_v61, %v1056_v5  ;;  %v1922_v23 = vrot.slane %v1914_v17, 9  ;;  %2252 = vmatprep.subr.msk.bf16.mxu0 %vm351_vm0, %v2378_v31  ;;  %v1918_v30 = vld [vmem:[%s2343_s25 + $0x30] sm:$0xe]  ;;  %v2524_v31 = vld [vmem:[%s2343_s25 + $0x3c] sm:$0x1] }
  0x2f   : > { %v1840_v15 = vcombine.low %v281_v2, %v295_v14  ;;  %v304_v24 = vrot.slane %v303_v4, 4  ;;  %v317_v27 = vor.u32 %v316_v13, %v313_v10  ;;  %v1923_v28 = vrot.slane %v1915_v43, 9  ;;  %v2555_v48 = vld [vmem:[%s2836_s1 + $0xc] sm:$0xf]  ;;  %v521_v58 = vld [vmem:[%s2343_s25 + $0x8] sm:$0xe] }
  0x30   : > { %v1061_v22 = vsel %vm2493_vm7, %v1922_v23, %v1060_v21  ;;  %v1924_v5 = vrot.slane %v1916_v57, 9  ;;  %v1925_v33 = vrot.slane %v1917_v0, 9  ;;  %v1072_v39 = vrot.slane %v2513_v42, 5  ;;  %v523_v4 = vld [vmem:[%s2343_s25 + $0x18] sm:$0xe] }
  0x31   : > { %2095 = vmatprep.mubr.msk.bf16.mxu1 %vm338_vm3, %v1840_v15  ;;  %v309_v34 = vsel %vm2382_vm4, %v304_v24, %v308_v59  ;;  %v318_v17 = vrot.slane %v317_v27, 4  ;;  %v1930_v35 = vcombine.low %v1057_v20, %v1061_v22  ;;  %v1065_v26 = vsel %vm2493_vm7, %v1923_v28, %v1064_v50  ;;  %v522_v59 = vld [vmem:[%s2343_s25 + $0x10] sm:$0xe]  ;;  %v524_v20 = vld [vmem:[%s2343_s25 + $0x20] sm:$0xe] }
  0x32   : > { %v1069_v21 = vsel %vm2493_vm7, %v1924_v5, %v1068_v55  ;;  %v1926_v40 = vrot.slane %v1918_v30, 9  ;;  %v1076_v43 = vrot.slane %v2516_v29, 5  ;;  %v1846_v50 = vcombine.low %v2346_v6, %v2349_v7  ;;  %v1971_v55 = vld [vmem:[%s2836_s1 + $0x1c] sm:$0xf]  ;;  %v520_v7 = vld [vmem:[%s2343_s25] sm:$0xe] }
  0x33   : > { %v323_v12 = vsel %vm2382_vm4, %v318_v17, %v322_v16  ;;  %2141 = vmatprep.mubr.msk.bf16.mxu0 %vm338_vm3, %v1930_v35  ;;  %v1931_v52 = vcombine.low %v1065_v26, %v1069_v21  ;;  %v1073_v57 = vsel %vm2493_vm7, %v1925_v33, %v1072_v39  ;;  %v549_v60 = vrot.slane %v2352_v8, 5  ;;  %v1955_v5 = vld [vmem:[%s2343_s25 + $0x10] sm:$0xf]  ;;  %v525_v17 = vld [vmem:[%s2343_s25 + $0x28] sm:$0xe] }
  0x34   : > { %v1841_v49 = vcombine.low %v309_v34, %v323_v12  ;;  %v1077_v6 = vsel %vm2493_vm7, %v1926_v40, %v1076_v43  ;;  %v1927_v0 = vrot.slane %v1919_v38, 9  ;;  %v1080_v2 = vrot.slane %v2524_v31, 5  ;;  %v526_v35 = vld [vmem:[%s2343_s25 + $0x30] sm:$0xe]  ;;  %v1957_v26 = vld [vmem:[%s2343_s25 + $0x18] sm:$0xf] }
  0x35   : > { %v1932_v61 = vcombine.low %v1073_v57, %v1077_v6  ;;  %v553_v10 = vrot.slane %v2355_v9, 5  ;;  %v557_v13 = vrot.slane %v2397_v46, 5  ;;  %v1928_v14 = vrot.slane %v1920_v45, 9  ;;  %v2268_v38 = vld [vmem:[%s2343_s25 + $0x10] ss:$8 sps:$4 sm:$0xff]  }
  0x36   : > { %2096 = vmatmul.mubr.msk.bf16.gmra.mrb[4].mxu1 %vm338_vm3, %v1841_v49  ;;  %v1084_v16 = vrot.slane %v2546_v19, 5  ;;  %v561_v23 = vrot.slane %v2408_v54, 5  ;;  %v1854_v8 = vrot.slane %v520_v7, 9  ;;  %v1855_v15 = vrot.slane %v521_v58, 9  ;;  %v2618_v21 = vld [vmem:[%s2343_s25 + $0x38] sm:$0xe] }
  0x37   : > { %2101 = vmatprep.mubr.msk.bf16.mxu1 %vm338_vm3, %v1846_v50  ;;  %v1856_v24 = vrot.slane %v522_v59, 9  ;;  %v606_v9 = vsel %vm351_vm0, %v2461_v63, 0  ;;  %v2578_v46 = vsel %vm351_vm0, %v1971_v55, 0  ;;  %v1857_v27 = vrot.slane %v523_v4, 9  ;;  %v2621_v39 = vld [vmem:[%s2343_s25 + $0x14] sm:$0x1] }
  0x38   : > { %2142 = vmatmul.mubr.msk.bf16.vlgmr.msra.gmra.mrb[0].mxu0 %vm338_vm3, %v1931_v52  ;;  %v2582_v54 = vsel %vm351_vm0, %v2555_v48, 0  ;;  %v1081_v28 = vsel %vm2493_vm7, %v1927_v0, %v1080_v2  ;;  %v1085_v63 = vsel %vm2493_vm7, %v1928_v14, %v1084_v16  ;;  %v1858_v30 = vrot.slane %v524_v20, 9  ;;  %v1961_v52 = vld [vmem:[%s2343_s25 + $0x28] sm:$0xf]  ;;  %v2640_v59 = vld [vmem:[%s2343_s25 + $0x1c] sm:$0x1] }
  0x39   : > { %2150 = vmatpush3.bf16.msra.mxu0 %v2401_v47  ;;  %2145 = vmatprep.mubr.msk.bf16.mxu0 %vm338_vm3, %v1932_v61  ;;  %v565_v22 = vrot.slane %v2440_v44, 5  ;;  %v1847_v33 = vcombine.low %v2388_v37, %v2391_v41  ;;  %v2597_v47 = vsel %vm2493_vm7, %v1854_v8, %v549_v60  ;;  %v2601_v34 = vsel %vm2493_vm7, %v1855_v15, %v553_v10  ;;  %v2648_v2 = vld [vmem:[%s2343_s25 + $0x24] sm:$0x1]  ;;  %v1963_v20 = vld [vmem:[%s2343_s25 + $0x30] sm:$0xf] }
  0x3a   : > { %2253 = vmatprep.subr.msk.bf16.mxu0 %vm351_vm0, %v1971_v55  ;;  %v1848_v44 = vcombine.low %v2435_v36, %v2444_v51  ;;  %v2611_v37 = vsel %vm2493_vm7, %v1856_v24, %v557_v13  ;;  %v2615_v41 = vsel %vm2493_vm7, %v1857_v27, %v561_v23  ;;  %v1933_v40 = vcombine.low %v1081_v28, %v1085_v63  ;;  %v1959_v36 = vld [vmem:[%s2343_s25 + $0x20] sm:$0xf]  ;;  %v2659_v15 = vld [vmem:[%s2343_s25 + $0x2c] sm:$0x1]  ;;  %v2270_v27 = vld [vmem:[%s2343_s25 + $0x30] ss:$8 sps:$4 sm:$0xff]  }
  0x3b   : > { %v1849_v43 = vcombine.low %v2456_v62, %v2466_v11  ;;  %v1324_v12 = vshrl.u32 %v1955_v5, 16  ;;  %v1327_v50 = vshll.u32 %v1955_v5, 16  ;;  %v1863_v51 = vcombine.low %v2597_v47, %v2601_v34  ;;  %v2269_v23 = vld [vmem:[%s2343_s25 + $0x20] ss:$8 sps:$4 sm:$0xff]   ;;  %v1965_v5 = vld [vmem:[%s2343_s25 + $0x38] sm:$0xf] }
  0x3c   : > { %v2630_v45 = vsel %vm2493_vm7, %v1858_v30, %v565_v22  ;;  %v1859_v55 = vrot.slane %v525_v17, 9  ;;  %v1338_v49 = vshrl.u32 %v1957_v26, 16  ;;  %v1864_v62 = vcombine.low %v2611_v37, %v2615_v41  ;;  %v2670_v17 = vld [vmem:[%s2343_s25 + $0x34] sm:$0x1] }
  0x3d   : > { %v569_v11 = vrot.slane %v2450_v56, 5  ;;  %v1326_v57 = vrot.slane %v1324_v12, 4  ;;  %v1329_v6 = vrot.slane %v1327_v50, 5  ;;  %v1860_v7 = vrot.slane %v526_v35, 9  ;;  %v1967_v12 = vld [vmem:[%s2343_s25 + $0x40] sm:$0xf] }
  0x3e   : > { %2102 = vmatmul.mubr.msk.bf16.vlgmr.msra.gmra.mrb[0].mxu1 %vm338_vm3, %v1847_v33  ;;  %v573_v58 = vrot.slane %v2471_v18, 5  ;;  %v1340_v60 = vrot.slane %v1338_v49, 4  ;;  %v1341_v61 = vshll.u32 %v1957_v26, 16  ;;  %v1861_v56 = vrot.slane %v2618_v21, 9  ;;  %v2680_v21 = vld [vmem:[%s2343_s25 + $0x3c] sm:$0x1] }
  0x3f   : > { %2110 = vmatpush3.bf16.msra.mxu1 %v606_v9  ;;  %2105 = vmatprep.mubr.msk.bf16.mxu1 %vm338_vm3, %v1848_v44  ;;  %v1333_v0 = vshll.u32 %v2621_v39, 16  ;;  %v1352_v18 = vshrl.u32 %v1959_v36, 16  ;;  %v1355_v4 = vshll.u32 %v1959_v36, 16  ;;  %v1330_v10 = vor.u32 %v1329_v6, %v1326_v57  ;;  %v1969_v6 = vld [vmem:[%s2343_s25 + $0x48] sm:$0xf] }
  0x40   : > { %2146 = vmatmul.mubr.msk.bf16.gmra.mrb[4].mxu0 %vm338_vm3, %v1933_v40  ;;  %2248 = vmatprep.subr.msk.bf16.mxu1 %vm351_vm0, %v2555_v48  ;;  %v1343_v13 = vrot.slane %v1341_v61, 5  ;;  %v1366_v14 = vshrl.u32 %v1961_v52, 16  ;;  %v1369_v16 = vshll.u32 %v1961_v52, 16  ;;  %v2655_v48 = vsel %vm2493_vm7, %v1859_v55, %v569_v11 }
  0x41   : > { %2151 = vmatprep.mubr.msk.bf16.mxu0 %vm338_vm3, %v2268_v38  ;;  %v1347_v8 = vshll.u32 %v2640_v59, 16  ;;  %v1354_v24 = vrot.slane %v1352_v18, 4  ;;  %v1357_v9 = vrot.slane %v1355_v4, 5  ;;  %v577_v28 = vrot.slane %v2477_v25, 5  ;;  %v2677_v25 = vld [vmem:[%s2836_s1 + $0x20] sm:$0xf] }
  0x42   : > { %v1344_v63 = vor.u32 %v1343_v13, %v1340_v60  ;;  %v1368_v30 = vrot.slane %v1366_v14, 4  ;;  %v1371_v22 = vrot.slane %v1369_v16, 5  ;;  %v2666_v33 = vsel %vm2493_vm7, %v1860_v7, %v573_v58  ;;  %v2705_v13 = vld [vmem:[%s2343_s25 + $0x44] sm:$0x1] }
  0x43   : > { %v1335_v47 = vrot.slane %v1333_v0, 5  ;;  %v1361_v34 = vshll.u32 %v2648_v2, 16  ;;  %v1380_v35 = vshrl.u32 %v1963_v20, 16  ;;  %v1865_v26 = vcombine.low %v2630_v45, %v2655_v48 }
  0x44   : > { %v1331_v44 = vrot.slane %v1330_v10, 4  ;;  %v1358_v38 = vor.u32 %v1357_v9, %v1354_v24  ;;  %v1383_v40 = vshll.u32 %v1963_v20, 16  ;;  %v1345_v50 = vrot.slane %v1344_v63, 4  ;;  %v2708_v20 = vld [vmem:[%s2343_s25 + $0x4c] sm:$0x1] }
  0x45   : > { %v1349_v36 = vrot.slane %v1347_v8, 5  ;;  %v1382_v55 = vrot.slane %v1380_v35, 4  ;;  %v1394_v49 = vshrl.u32 %v1965_v5, 16  ;;  %v2687_v45 = vsel %vm2493_vm7, %v1861_v56, %v577_v28  ;;  %v2271_v8 = vld [vmem:[%s2343_s25 + $0x40] ss:$8 sps:$4 sm:$0xff]  }
  0x46   : > { %2106 = vmatmul.mubr.msk.bf16.gmra.mrb[4].mxu1 %vm338_vm3, %v1849_v43  ;;  %v1372_v52 = vor.u32 %v1371_v22, %v1368_v30  ;;  %v1375_v11 = vshll.u32 %v2659_v15, 16  ;;  %v1385_v57 = vrot.slane %v1383_v40, 5  ;;  %v2692_v7 = vrot.slane %v1361_v34, 5 }
  0x47   : > { %2111 = vmatprep.mubr.msk.bf16.mxu1 %vm338_vm3, %v1863_v51  ;;  %v1389_v43 = vshll.u32 %v2670_v17, 16  ;;  %v1396_v58 = vrot.slane %v1394_v49, 4  ;;  %v1397_v60 = vshll.u32 %v1965_v5, 16  ;;  %v1336_v51 = vsel %vm2382_vm4, %v1331_v44, %v1335_v47  ;;  %v1898_v49 = vld [vmem:[%s2343_s25 + $0x30] sm:$0xf] }
  0x48   : > { %2152 = vmatmul.mubr.msk.bf16.vlgmr.msra.gmra.mrb[0].mxu0 %vm338_vm3, %v2269_v23  ;;  %v1359_v61 = vrot.slane %v1358_v38, 4  ;;  %v1386_v56 = vor.u32 %v1385_v57, %v1382_v55  ;;  %v1408_v0 = vshrl.u32 %v1967_v12, 16  ;;  %v1350_v18 = vsel %vm2382_vm4, %v1345_v50, %v1349_v36  ;;  %v1980_v38 = vld [vmem:[%s2343_s25 + $0x10] sm:$0xe]  ;;  %v1981_v50 = vld [vmem:[%s2343_s25 + $0x18] sm:$0xe] }
  0x49   : > { %2160 = vmatpush3.bf16.msra.mxu0 %v2578_v46  ;;  %2155 = vmatprep.mubr.msk.bf16.mxu0 %vm338_vm3, %v2270_v27  ;;  %v1399_v4 = vrot.slane %v1397_v60, 5  ;;  %v1403_v10 = vshll.u32 %v2680_v21, 16  ;;  %v1411_v46 = vshll.u32 %v1967_v12, 16  ;;  %v1373_v14 = vrot.slane %v1372_v52, 4  ;;  %v2272_v57 = vld [vmem:[%s2343_s25 + $0x8] ss:$8 sps:$4 sm:$0xff]  }
  0x4a   : > { %2254 = vmatprep.subr.msk.bf16.mxu0 %vm351_vm0, %v2677_v25  ;;  %v1377_v16 = vrot.slane %v1375_v11, 5  ;;  %v1410_v23 = vrot.slane %v1408_v0, 4  ;;  %v1422_v48 = vshrl.u32 %v1969_v6, 16  ;;  %v1391_v24 = vrot.slane %v1389_v43, 5 }
  0x4b   : > { %v1400_v9 = vor.u32 %v1399_v4, %v1396_v58  ;;  %v1413_v27 = vrot.slane %v1411_v46, 5  ;;  %v1425_v28 = vshll.u32 %v1969_v6, 16  ;;  %v1972_v63 = vcombine.low %v1336_v51, %v1350_v18 }
  0x4c   : > { %v1387_v30 = vrot.slane %v1386_v56, 4  ;;  %v1417_v22 = vshll.u32 %v2705_v13, 16  ;;  %v1424_v5 = vrot.slane %v1422_v48, 4  ;;  %v1405_v34 = vrot.slane %v1403_v10, 5 }
  0x4d   : > { %v1401_v47 = vrot.slane %v1400_v9, 4  ;;  %v1427_v35 = vrot.slane %v1425_v28, 5  ;;  %v1431_v44 = vshll.u32 %v2708_v20, 16  ;;  %v1866_v40 = vcombine.low %v2666_v33, %v2687_v45  ;;  %v1902_v28 = vld [vmem:[%s2343_s25 + $0x40] sm:$0xf] }
  0x4e   : > { %2112 = vmatmul.mubr.msk.bf16.vlgmr.msra.gmra.mrb[0].mxu1 %vm338_vm3, %v1864_v62  ;;  %v1414_v12 = vor.u32 %v1413_v27, %v1410_v23  ;;  %v1364_v37 = vsel %vm2382_vm4, %v1359_v61, %v2692_v7  ;;  %v1378_v41 = vsel %vm2382_vm4, %v1373_v14, %v1377_v16  ;;  %v1896_v62 = vld [vmem:[%s2343_s25 + $0x28] sm:$0xf]  ;;  %v1392_v33 = vsel %vm2382_vm4, %v1387_v30, %v1391_v24  ;;  %v1900_v27 = vld [vmem:[%s2343_s25 + $0x38] sm:$0xf] }
  0x4f   : > { %2120 = vmatpush3.bf16.msra.mxu1 %v2582_v54  ;;  %2115 = vmatprep.mubr.msk.bf16.mxu1 %vm338_vm3, %v1865_v26  ;;  %v1428_v54 = vor.u32 %v1427_v35, %v1424_v5  ;;  %v1419_v26 = vrot.slane %v1417_v22, 5  ;;  %v1988_v36 = vrot.slane %v1980_v38, 9  ;;  %v1563_v55 = vrot.slane %v2621_v39, 5  ;;  %v2274_v38 = vld [vmem:[%s2343_s25 + $0x28] ss:$8 sps:$4 sm:$0xff]  }
  0x50   : > { %2156 = vmatmul.mubr.msk.bf16.gmra.mrb[4].mxu0 %vm338_vm3, %v2271_v8  ;;  %2250 = vmatprep.subr.msk.bf16.mxu1 %vm351_vm0, %v2318_v1  ;;  %v1406_v45 = vsel %vm2382_vm4, %v1401_v47, %v1405_v34  ;;  %v1433_v52 = vrot.slane %v1431_v44, 5  ;;  %v1989_v11 = vrot.slane %v1981_v50, 9  ;;  %v1567_v1 = vrot.slane %v2640_v59, 5  ;;  %v1982_v59 = vld [vmem:[%s2343_s25 + $0x20] sm:$0xe] }
  0x51   : > { %2161 = vmatprep.mubr.msk.bf16.mxu0 %vm338_vm3, %v1972_v63  ;;  %v1415_v6 = vrot.slane %v1414_v12, 4  ;;  %v1429_v7 = vrot.slane %v1428_v54, 4  ;;  %v873_v43 = vshrl.u32 %v1896_v62, 16  ;;  %v876_v58 = vshll.u32 %v1896_v62, 16  ;;  %v2273_v63 = vld [vmem:[%s2343_s25 + $0x18] ss:$8 sps:$4 sm:$0xff]  }
  0x52   : > { %v1973_v60 = vcombine.low %v1364_v37, %v1378_v41  ;;  %v887_v51 = vshrl.u32 %v1898_v49, 16  ;;  %v890_v61 = vshll.u32 %v1898_v49, 16  ;;  %v1974_v56 = vcombine.low %v1392_v33, %v1406_v45  ;;  %v1984_v44 = vld [vmem:[%s2343_s25 + $0x30] sm:$0xe] }
  0x53   : > { %v875_v39 = vrot.slane %v873_v43, 4  ;;  %v878_v0 = vrot.slane %v876_v58, 5  ;;  %v1620_v18 = vsel %vm351_vm0, %v2677_v25, 0  ;;  %v1420_v46 = vsel %vm2382_vm4, %v1415_v6, %v1419_v26  ;;  %v1983_v25 = vld [vmem:[%s2343_s25 + $0x28] sm:$0xe] }
  0x54   : > { %v889_v4 = vrot.slane %v887_v51, 4  ;;  %v892_v10 = vrot.slane %v890_v61, 5  ;;  %v1434_v14 = vsel %vm2382_vm4, %v1429_v7, %v1433_v52  ;;  %v1564_v16 = vsel %vm2493_vm7, %v1988_v36, %v1563_v55  ;;  %v1986_v6 = vld [vmem:[%s2343_s25 + $0x40] sm:$0xe]  ;;  %v1987_v7 = vld [vmem:[%s2343_s25 + $0x48] sm:$0xe] }
  0x55   : > { %v1568_v23 = vsel %vm2493_vm7, %v1989_v11, %v1567_v1  ;;  %v879_v48 = vor.u32 %v878_v0, %v875_v39  ;;  %v882_v8 = vshll.u32 %v2513_v42, 16  ;;  %v896_v9 = vshll.u32 %v2516_v29, 16  ;;  %v1985_v42 = vld [vmem:[%s2343_s25 + $0x38] sm:$0xe] }
  0x56   : > { %2116 = vmatmul.mubr.msk.bf16.gmra.mrb[4].mxu1 %vm338_vm3, %v1866_v40  ;;  %v893_v24 = vor.u32 %v892_v10, %v889_v4  ;;  %v1990_v30 = vrot.slane %v1982_v59, 9  ;;  %v1571_v22 = vrot.slane %v2648_v2, 5  ;;  %v1975_v5 = vcombine.low %v1420_v46, %v1434_v14 }
  0x57   : > { %2121 = vmatprep.mubr.msk.bf16.mxu1 %vm338_vm3, %v2272_v57  ;;  %v1997_v47 = vcombine.low %v1564_v16, %v1568_v23  ;;  %v1991_v34 = vrot.slane %v1983_v25, 9  ;;  %v1575_v35 = vrot.slane %v2659_v15, 5  ;;  %v901_v40 = vshrl.u32 %v1900_v27, 16  ;;  %v2275_v57 = vld [vmem:[%s2343_s25 + $0x38] ss:$8 sps:$4 sm:$0xff]  }
  0x58   : > { %2162 = vmatmul.mubr.msk.bf16.vlgmr.msra.gmra.mrb[0].mxu0 %vm338_vm3, %v1973_v60  ;;  %v904_v12 = vshll.u32 %v1900_v27, 16  ;;  %v915_v29 = vshrl.u32 %v1902_v28, 16  ;;  %v918_v50 = vshll.u32 %v1902_v28, 16  ;;  %v880_v37 = vrot.slane %v879_v48, 4  ;;  %v2026_v27 = vld [vmem:[%s185_s14] sm:$0xff]  }
  0x59   : > { %2170 = vmatpush3.bf16.msra.mxu0 %v1620_v18  ;;  %2165 = vmatprep.mubr.msk.bf16.mxu0 %vm338_vm3, %v1974_v56  ;;  %v884_v41 = vrot.slane %v882_v8, 5  ;;  %v894_v54 = vrot.slane %v893_v24, 4  ;;  %v898_v62 = vrot.slane %v896_v9, 5  ;;  %v1992_v33 = vrot.slane %v1984_v44, 9 }
  0x5a   : > { %v1579_v26 = vrot.slane %v2670_v17, 5  ;;  %v1993_v2 = vrot.slane %v1985_v42, 9  ;;  %v1583_v36 = vrot.slane %v2680_v21, 5  ;;  %v903_v15 = vrot.slane %v901_v40, 4 }
  0x5b   : > { %v906_v55 = vrot.slane %v904_v12, 5  ;;  %v917_v49 = vrot.slane %v915_v29, 4  ;;  %v920_v45 = vrot.slane %v918_v50, 5  ;;  %v910_v52 = vshll.u32 %v2524_v31, 16 }
  0x5c   : > { %v885_v17 = vsel %vm2382_vm4, %v880_v37, %v884_v41  ;;  %v899_v21 = vsel %vm2382_vm4, %v894_v54, %v898_v62  ;;  %v1576_v11 = vsel %vm2493_vm7, %v1991_v34, %v1575_v35  ;;  %v1580_v1 = vsel %vm2493_vm7, %v1992_v33, %v1579_v26  ;;  %v2043_v54 = vld [vmem:[%s185_s14 + $0x18] sm:$0xff]   ;;  %v2042_v33 = vld [vmem:[%s185_s14 + $0x10] sm:$0xff]  }
  0x5d   : > { %v1584_v31 = vsel %vm2493_vm7, %v1993_v2, %v1583_v36  ;;  %v924_v43 = vshll.u32 %v2546_v19, 16  ;;  %v1907_v58 = vcombine.low %v885_v17, %v899_v21  ;;  %v907_v60 = vor.u32 %v906_v55, %v903_v15 }
  0x5e   : > { %2122 = vmatmul.mubr.msk.bf16.vlgmr.msra.gmra.mrb[0].mxu1 %vm338_vm3, %v2273_v63  ;;  %v921_v51 = vor.u32 %v920_v45, %v917_v49  ;;  %v1999_v56 = vcombine.low %v1580_v1, %v1584_v31  ;;  %v1994_v39 = vrot.slane %v1986_v6, 9  ;;  %v1587_v0 = vrot.slane %v2705_v13, 5 }
  0x5f   : > { %2180 = vmatpush3.bf16.msra.mxu1 %v2326_v3  ;;  %2125 = vmatprep.mubr.msk.bf16.mxu1 %vm338_vm3, %v2274_v38  ;;  %v1572_v3 = vsel %vm2493_vm7, %v1990_v30, %v1571_v22  ;;  %v1995_v18 = vrot.slane %v1987_v7, 9  ;;  %v1591_v59 = vrot.slane %v2708_v20, 5  ;;  %v912_v4 = vrot.slane %v910_v52, 5 }
  0x60   : > { %2166 = vmatmul.mubr.msk.bf16.gmra.mrb[4].mxu0 %vm338_vm3, %v1975_v5  ;;  %v1998_v61 = vcombine.low %v1572_v3, %v1576_v11  ;;  %v926_v10 = vrot.slane %v924_v43, 5  ;;  %v908_v46 = vrot.slane %v907_v60, 4  ;;  %v922_v19 = vrot.slane %v921_v51, 4 }
  0x61   : > { %2171 = vmatprep.mubr.msk.bf16.mxu0 %vm338_vm3, %v1997_v47  ;;  %v1588_v14 = vsel %vm2493_vm7, %v1994_v39, %v1587_v0  ;;  %v1592_v13 = vsel %vm2493_vm7, %v1995_v18, %v1591_v59  ;;  %v2031_v28 = vunpack.c.l.bf16 %v2041_v53  ;;  %v2027_v63 = vunpack.c.l.bf16 %v2026_v27 }
  0x62   : > { %v913_v20 = vsel %vm2382_vm4, %v908_v46, %v912_v4  ;;  %v927_v16 = vsel %vm2382_vm4, %v922_v19, %v926_v10  ;;  %v2000_v23 = vcombine.low %v1588_v14, %v1592_v13  ;;  %v2032_v5 = vunpack.c.h.bf16 %v2041_v53 }
  0x63   : > { %v1908_v25 = vcombine.low %v913_v20, %v927_v16  ;;  %v2028_v35 = vunpack.c.h.bf16 %v2026_v27  ;;  %v2039_v36 = vunpack.c.l.bf16 %v2043_v54  ;;  %v2035_v49 = vunpack.c.l.bf16 %v2042_v33 }
  0x64   : > { %v2040_v21 = vunpack.c.h.bf16 %v2043_v54  ;;  %v2036_v31 = vunpack.c.h.bf16 %v2042_v33 }
  0x66   : > { %2126 = vmatmul.mubr.msk.bf16.gmra.mrb[4].mxu1 %vm338_vm3, %v2275_v57 }
  0x67   : > { %2135 = vmatprep.mubr.msk.bf16.mxu1 %vm338_vm3, %v1907_v58 }
  0x68   : > { %2172 = vmatmul.mubr.msk.bf16.vlgmr.msra.gmra.mrb[0].mxu0 %vm338_vm3, %v1998_v61 }
  0x69   : > { %2175 = vmatprep.mubr.msk.bf16.mxu0 %vm338_vm3, %v1999_v56 }
  0x70   : > { %2176 = vmatmul.mubr.msk.bf16.gmra.mrb[4].mxu0 %vm338_vm3, %v2000_v23 }
  0x72   : > { %2136 = vmatmul.mubr.msk.bf16.vlgmr.msra.gmra.mrb[4].mxu1 %vm338_vm3, %v1908_v25 }
 0x131   : > { %v2123_v48 = vpop.f32.mrb[0].mxu1 }
 0x132   : > { %v761_v8 = vpop.f32.mrb[1].mxu1 }
 0x133   : > { %v2124_v24 = vpop.f32.mrb[2].mxu1 }
 0x134   : > { %v764_v9 = vpop.f32.mrb[3].mxu1 }
 0x13b   : > { %v2173_v32 = vpop.f32.mrb[0].mxu0 }
 0x13c   : > { %v2181_v30 = vadd.f32 %v2173_v32, %v2123_v48  ;;  %v1656_v22 = vpop.f32.mrb[1].mxu0 }
 0x13d   : > { %v2182_v47 = vadd.f32 %v1656_v22, %v761_v8  ;;  %v2174_v34 = vpop.f32.mrb[2].mxu0 }
 0x13e   : > { %v1713_v44 = vadd.f32 %v2181_v30, %v2031_v28  ;;  %v2183_v42 = vadd.f32 %v2174_v34, %v2124_v24  ;;  %v1659_v38 = vpop.f32.mrb[3].mxu0 }
 0x13f   : > { %v1711_v40 = vadd.f32 %v2182_v47, %v2027_v63  ;;  %v2184_v12 = vadd.f32 %v1659_v38, %v764_v9 }
 0x140   : > { %v2019_v29 = vpack.c.bf16 %v1713_v44, %v1713_v44  ;;  %v1714_v50 = vadd.f32 %v2183_v42, %v2032_v5 }
 0x141   : > { %v2017_v37 = vpack.c.bf16 %v1711_v40, %v1711_v40  ;;  %v1712_v41 = vadd.f32 %v2184_v12, %v2028_v35 }
 0x142   : > { %1754 = vst.msk [vmem:[%s2814_s16 + $0x8] sm:$0xf] %vm1751_vm8, %v2019_v29  ;;  %v2020_v62 = vpack.c.bf16 %v1714_v50, %v1714_v50 }
 0x143   : > { %1752 = vst.msk [vmem:[%s2814_s16] sm:$0xf] %vm1751_vm8, %v2017_v37  ;;  %v2018_v26 = vpack.c.bf16 %v1712_v41, %v1712_v41  ;;  %v2177_v2 = vpop.f32.mrb[4].mxu0 }
 0x144   : > { %1755 = vst.msk [vmem:[%s2814_s16 + $0xc] sm:$0xf] %vm1751_vm8, %v2020_v62  ;;  %v1672_v15 = vpop.f32.mrb[5].mxu0 }
 0x145   : > { %1753 = vst.msk [vmem:[%s2814_s16 + $0x4] sm:$0xf] %vm1751_vm8, %v2018_v26  ;;  %v2137_v55 = vpop.f32.mrb[4].mxu1  ;;  %v2178_v45 = vpop.f32.mrb[6].mxu0 }
 0x146   : > { %v2185_v52 = vadd.f32 %v2177_v2, %v2137_v55  ;;  %v1007_v17 = vpop.f32.mrb[5].mxu1  ;;  %v1675_v3 = vpop.f32.mrb[7].mxu0 }
 0x147   : > { %v2186_v11 = vadd.f32 %v1672_v15, %v1007_v17  ;;  %v2138_v1 = vpop.f32.mrb[6].mxu1 }
 0x148   : > { %v1717_v57 = vadd.f32 %v2185_v52, %v2039_v36  ;;  %v2187_v6 = vadd.f32 %v2178_v45, %v2138_v1  ;;  %v1010_v7 = vpop.f32.mrb[7].mxu1 }
 0x149   : > { %v1715_v43 = vadd.f32 %v2186_v11, %v2035_v49  ;;  %v2188_v58 = vadd.f32 %v1675_v3, %v1010_v7 }
 0x14a   : > { %v2023_v60 = vpack.c.bf16 %v1717_v57, %v1717_v57  ;;  %v1718_v51 = vadd.f32 %v2187_v6, %v2040_v21 }
 0x14b   : > { %v2021_v61 = vpack.c.bf16 %v1715_v43, %v1715_v43  ;;  %v1716_v56 = vadd.f32 %v2188_v58, %v2036_v31 }
 0x14c   : > { %1758 = vst.msk [vmem:[%s2814_s16 + $0x18] sm:$0xf] %vm1751_vm8, %v2023_v60  ;;  %v2024_v39 = vpack.c.bf16 %v1718_v51, %v1718_v51 }
 0x14d   : > { %1756 = vst.msk [vmem:[%s2814_s16 + $0x10] sm:$0xf] %vm1751_vm8, %v2021_v61  ;;  %v2022_v0 = vpack.c.bf16 %v1716_v56, %v1716_v56 }
 0x14e   : > { %1759 = vst.msk [vmem:[%s2814_s16 + $0x1c] sm:$0xf] %vm1751_vm8, %v2024_v39 }
 0x14f   : > { %1757 = vst.msk [vmem:[%s2814_s16 + $0x14] sm:$0xf] %vm1751_vm8, %v2022_v0 }
 0x150 PF: > { %s13_s12 = sadd.s32 1, %s2282_s12  }
 0x151   : > { %p10_p4 = scmp.ge.s32.totalorder %s13_s12, 4  }
 0x153   :  { %12 = sbr.rel (!%p10_p4) target bundleno = 1 (0x1), region = 75 }

</bundles_post_ra>
